<compile_context>
chip_gen: v7x
topology: tpu7x:2x2x1
jax: 0.10.0
libtpu: 0.0.40
codegen_flags: <defaults>
</compile_context>

<pallas_src>
import functools

import jax
import jax.numpy as jnp
from jax.experimental import pallas as pl
from jax.experimental.pallas import tpu as pltpu


def _round_up(n, m):
    return ((n + m - 1) // m) * m


def _cdiv(a, b):
    return (a + b - 1) // b


# ---------------------------------------------------------------------------
# Matmul kernel:  out = act(x @ w + b)
#   grid = (nm, nj); K is a single full block (no reduction grid axis, no
#   scratch accumulator).  x block index is constant across the inner j axis,
#   so the A stripe is read from HBM once per M tile.
# ---------------------------------------------------------------------------
def _mm_kernel(x_ref, w_ref, b_ref, o_ref, *, act):
    acc = jnp.dot(x_ref[...].astype(jnp.bfloat16),
                  w_ref[...].astype(jnp.bfloat16),
                  preferred_element_type=jnp.float32)
    r = acc + b_ref[...]
    if act == "relu":
        r = jnp.maximum(r, 0.0)
    elif act == "sigmoid":
        r = jax.nn.sigmoid(r)
    o_ref[...] = r


def pallas_matmul(x, w, b=None, act="none"):
    """out = act(x @ w + b); x:(M,K), w:(K,N), b:(N,) -> (M,N) float32."""
    M, K = x.shape
    K2, Nn = w.shape
    assert K == K2
    wb = w.astype(jnp.bfloat16)                       # weights are small; cast once
    if b is None:
        b2 = jnp.zeros((1, Nn), jnp.float32)
    else:
        b2 = b.astype(jnp.float32).reshape(1, Nn)

    # Lane tiling of the output: 256-wide tiles for the 256^2 MXUs when the
    # channel count allows, 128 otherwise; a single full-width (masked-store)
    # block when N is not a multiple of 128 (avoids weight/output padding and
    # the slice copy it would force downstream).
    if Nn % 256 == 0:
        tn = 256
    elif Nn % 128 == 0:
        tn = 128
    else:
        tn = Nn
    nj = Nn // tn

    x_bytes = x.dtype.itemsize
    # Pick the largest M tile whose double-buffered x/out blocks stay well
    # inside the 16 MiB (v5e) scoped-VMEM default.
    tm = 512
    while tm > 8 and 2 * tm * (K * x_bytes + tn * 4) > 6 * 1024 * 1024:
        tm //= 2
    tm = min(tm, _round_up(M, 8))
    nm = _cdiv(M, tm)

    est = 2 * (tm * K * x_bytes + K * tn * 2 + tm * tn * 4 + tn * 4)
    cp = dict(dimension_semantics=("parallel", "parallel"))
    if est > 12 * 1024 * 1024:
        cp["vmem_limit_bytes"] = min(2 * est, 48 * 1024 * 1024)

    return pl.pallas_call(
        functools.partial(_mm_kernel, act=act),
        out_shape=jax.ShapeDtypeStruct((M, Nn), jnp.float32),
        grid=(nm, nj),
        in_specs=[
            pl.BlockSpec((tm, K), lambda m, j: (m, 0)),
            pl.BlockSpec((K, tn), lambda m, j: (0, j)),
            pl.BlockSpec((1, tn), lambda m, j: (0, j)),
        ],
        out_specs=pl.BlockSpec((tm, tn), lambda m, j: (m, j)),
        compiler_params=pltpu.CompilerParams(**cp),
        cost_estimate=pl.CostEstimate(
            flops=2 * M * K * Nn,
            transcendentals=0,
            bytes_accessed=M * K * x_bytes + K * Nn * 2 + M * Nn * 4),
    )(x, wb, b2)


# ---------------------------------------------------------------------------
# BatchNorm (training-mode batch statistics) + optional ReLU, two tiled passes.
# ---------------------------------------------------------------------------
def _bn_stats_kernel(x_ref, s_ref, acc_ref, *, m_true):
    m = pl.program_id(0)

    @pl.when(m == 0)
    def _():
        acc_ref[...] = jnp.zeros_like(acc_ref)

    x = x_ref[...]
    # Mask rows that fall outside the true M (partial last tile reads garbage).
    rows = jax.lax.broadcasted_iota(jnp.int32, x.shape, 0) + m * x_ref.shape[0]
    x = jnp.where(rows < m_true, x, 0.0)
    acc_ref[0:1, :] += jnp.sum(x, axis=0, keepdims=True)
    acc_ref[1:2, :] += jnp.sum(x * x, axis=0, keepdims=True)

    @pl.when(m == pl.num_programs(0) - 1)
    def _():
        s_ref[...] = acc_ref[...]


def _bn_apply_kernel(x_ref, s_ref, g_ref, b_ref, o_ref, *, m_true, eps, relu):
    inv_m = 1.0 / m_true
    mean = s_ref[0:1, :] * inv_m
    var = jnp.maximum(s_ref[1:2, :] * inv_m - mean * mean, 0.0)   # clamp: no NaN
    inv = jax.lax.rsqrt(var + eps)
    y = (x_ref[...] - mean) * (inv * g_ref[...]) + b_ref[...]
    if relu:
        y = jnp.maximum(y, 0.0)
    o_ref[...] = y


def pallas_bn_act(x2d, gamma, beta, relu=True, eps=1e-5):
    M, C = x2d.shape
    x2d = x2d.astype(jnp.float32)
    g2 = gamma.astype(jnp.float32).reshape(1, C)
    b2 = beta.astype(jnp.float32).reshape(1, C)
    tm = min(512, _round_up(M, 8))
    nm = _cdiv(M, tm)

    # TODO(synk): fuse the sum/sumsq pass into the producing matmul's epilogue
    # to remove one activation read per conv+BN pair.
    stats = pl.pallas_call(
        functools.partial(_bn_stats_kernel, m_true=M),
        out_shape=jax.ShapeDtypeStruct((8, C), jnp.float32),
        grid=(nm,),
        in_specs=[pl.BlockSpec((tm, C), lambda m: (m, 0))],
        out_specs=pl.BlockSpec((8, C), lambda m: (0, 0)),
        scratch_shapes=[pltpu.VMEM((8, C), jnp.float32)],
        compiler_params=pltpu.CompilerParams(
            dimension_semantics=("arbitrary",)),
    )(x2d)

    out = pl.pallas_call(
        functools.partial(_bn_apply_kernel, m_true=float(M), eps=eps, relu=relu),
        out_shape=jax.ShapeDtypeStruct((M, C), jnp.float32),
        grid=(nm,),
        in_specs=[
            pl.BlockSpec((tm, C), lambda m: (m, 0)),
            pl.BlockSpec((8, C), lambda m: (0, 0)),
            pl.BlockSpec((1, C), lambda m: (0, 0)),
            pl.BlockSpec((1, C), lambda m: (0, 0)),
        ],
        out_specs=pl.BlockSpec((tm, C), lambda m: (m, 0)),
        compiler_params=pltpu.CompilerParams(
            dimension_semantics=("parallel",)),
    )(x2d, stats, g2, b2)
    return out


def bn_nhwc(x, g, b, relu=True):
    shp = x.shape
    return pallas_bn_act(x.reshape(-1, shp[-1]), g, b, relu=relu).reshape(shp)


# ---------------------------------------------------------------------------
# Attention multiply: (M, C) * (M, 1) with the broadcast done inside the kernel
# (no HBM materialization of the channel-expanded attention map).
# ---------------------------------------------------------------------------
def _mul_bcast_kernel(x_ref, a_ref, o_ref):
    o_ref[...] = x_ref[...] * a_ref[...]


def pallas_mul_bcast(x2d, a_col):
    M, C = x2d.shape
    tm = min(512, _round_up(M, 8))
    nm = _cdiv(M, tm)
    return pl.pallas_call(
        _mul_bcast_kernel,
        out_shape=jax.ShapeDtypeStruct((M, C), jnp.float32),
        grid=(nm,),
        in_specs=[pl.BlockSpec((tm, C), lambda m: (m, 0)),
                  pl.BlockSpec((tm, 1), lambda m: (m, 0))],
        out_specs=pl.BlockSpec((tm, C), lambda m: (m, 0)),
        compiler_params=pltpu.CompilerParams(
            dimension_semantics=("parallel",)),
    )(x2d.astype(jnp.float32), a_col.astype(jnp.float32))


# ---------------------------------------------------------------------------
# Convolutions: bf16 im2col in JAX glue, matmul (bias/act fused) in Pallas.
# ---------------------------------------------------------------------------
def conv2d_nhwc(x, w, b, ph, pw, act="none"):
    """x:(N,H,W,Cin), w: torch layout (Cout,Cin,kh,kw), stride 1."""
    N, H, W_, Cin = x.shape
    Cout, _, kh, kw = w.shape
    if kh == 1 and kw == 1:
        patches = x.reshape(N * H * W_, Cin)          # no im2col for 1x1 convs
    else:
        # TODO(synk): replace materialized im2col with an in-kernel tap-loop
        # conv (halo blocks) to avoid the kh*kw x HBM blow-up at full scale;
        # patches are built in bf16 to halve that traffic meanwhile.
        xp = jnp.pad(x.astype(jnp.bfloat16), ((0, 0), (ph, ph), (pw, pw), (0, 0)))
        cols = [xp[:, i:i + H, j:j + W_, :] for i in range(kh) for j in range(kw)]
        patches = jnp.stack(cols, axis=3).reshape(N * H * W_, kh * kw * Cin)
    w2 = jnp.transpose(w, (2, 3, 1, 0)).reshape(kh * kw * Cin, Cout)
    y = pallas_matmul(patches, w2, b, act)
    return y.reshape(N, H, W_, Cout)


def conv1d_nlc(x, w, b, pad, act="none"):
    """x:(N,L,Cin), w: torch layout (Cout,Cin,k), stride 1."""
    N, L, Cin = x.shape
    Cout, _, k = w.shape
    xp = jnp.pad(x.astype(jnp.bfloat16), ((0, 0), (pad, pad), (0, 0)))
    cols = [xp[:, i:i + L, :] for i in range(k)]
    patches = jnp.stack(cols, axis=2).reshape(N * L, k * Cin)
    w2 = jnp.transpose(w, (2, 1, 0)).reshape(k * Cin, Cout)
    y = pallas_matmul(patches, w2, b, act)
    return y.reshape(N, L, Cout)


# ---------------------------------------------------------------------------
# LSTM recurrence kernel: Whh^T resident in VMEM (bf16) across the time loop;
# the time-parallel input projection is done once with the Pallas matmul.
# ---------------------------------------------------------------------------
def _lstm_kernel(xg_ref, whh_ref, hs_ref, h_sc, c_sc):
    T = xg_ref.shape[0]
    H = hs_ref.shape[2]
    h_sc[...] = jnp.zeros_like(h_sc)
    c_sc[...] = jnp.zeros_like(c_sc)

    def step(t, carry):
        g = xg_ref[t] + jnp.dot(h_sc[...].astype(jnp.bfloat16), whh_ref[...],
                                preferred_element_type=jnp.float32)
        i = jax.nn.sigmoid(g[:, 0 * H:1 * H])
        f = jax.nn.sigmoid(g[:, 1 * H:2 * H])
        gg = jnp.tanh(g[:, 2 * H:3 * H])
        o = jax.nn.sigmoid(g[:, 3 * H:4 * H])
        c = f * c_sc[...] + i * gg
        h = o * jnp.tanh(c)
        c_sc[...] = c
        h_sc[...] = h
        hs_ref[t] = h
        return carry

    jax.lax.fori_loop(0, T, step, 0)


def pallas_lstm_scan(xg_tng, whh_t_bf16):
    T, N, G = xg_tng.shape
    H = G // 4
    return pl.pallas_call(
        _lstm_kernel,
        out_shape=jax.ShapeDtypeStruct((T, N, H), jnp.float32),
        grid=(1,),
        in_specs=[pl.BlockSpec((T, N, G), lambda i: (0, 0, 0)),
                  pl.BlockSpec((H, G), lambda i: (0, 0))],
        out_specs=pl.BlockSpec((T, N, H), lambda i: (0, 0, 0)),
        scratch_shapes=[pltpu.VMEM((N, H), jnp.float32),
                        pltpu.VMEM((N, H), jnp.float32)],
        compiler_params=pltpu.CompilerParams(
            dimension_semantics=("arbitrary",)),
    )(xg_tng, whh_t_bf16)


def lstm_dir(seq, Wih, Whh, bih, bhh):
    """Single-direction LSTM.  seq: (N, T, Fin) -> (N, T, H)."""
    N, T, Fin = seq.shape
    H = Whh.shape[1]
    xg = pallas_matmul(seq.reshape(N * T, Fin), Wih.T, bih + bhh)     # (N*T,4H)
    xg = xg.reshape(N, T, 4 * H).transpose(1, 0, 2)                   # (T,N,4H)
    hs = pallas_lstm_scan(xg, jnp.transpose(Whh).astype(jnp.bfloat16))
    return hs.transpose(1, 0, 2)


def bilstm(p, seq):
    fwd = lstm_dir(seq, p["wih_f"], p["whh_f"], p["bih_f"], p["bhh_f"])
    bwd = lstm_dir(seq[:, ::-1, :], p["wih_b"], p["whh_b"],
                   p["bih_b"], p["bhh_b"])[:, ::-1, :]
    return jnp.concatenate([fwd, bwd], axis=-1)


# ---------------------------------------------------------------------------
# Model blocks
# ---------------------------------------------------------------------------
def ftb_fwd(p, x):
    """FTB.  x: (N, T, F, Ca) -> (N, T, F, Ca)."""
    N, T, F, Ca = x.shape
    Cr = p["att_w"].shape[0]
    # conv_att: 1x1 conv -> BN -> ReLU
    a = conv2d_nhwc(x, p["att_w"], p["att_b"], 0, 0)
    a = bn_nhwc(a, p["att_bn_g"], p["att_bn_b"], relu=True)           # (N,T,F,Cr)
    # channels (cr*F + f), matching torch reshape(N, F*Cr, T)
    a = jnp.transpose(a, (0, 1, 3, 2)).reshape(N, T, Cr * F)
    # conv_att_1d: k=9 pad=4 -> BN1d -> ReLU
    a = conv1d_nlc(a, p["att1d_w"], p["att1d_b"], pad=4)              # (N,T,F)
    a = pallas_bn_act(a.reshape(N * T, F), p["att1d_bn_g"],
                      p["att1d_bn_b"], relu=True).reshape(N, T, F)
    # attention multiply: broadcast over Ca inside the kernel
    x_p = pallas_mul_bcast(x.reshape(N * T * F, Ca),
                           a.reshape(N * T * F, 1)).reshape(N, T, F, Ca)
    # freq_fc over the F axis (no bias)
    t = jnp.transpose(x_p, (0, 1, 3, 2)).reshape(N * T * Ca, F)
    xff = pallas_matmul(t, jnp.transpose(p["freq_fc_w"]))
    xff = xff.reshape(N, T, Ca, F).transpose(0, 1, 3, 2)
    # concat along channel, then conv_out: 1x1 -> BN -> ReLU
    xc = jnp.concatenate([x, xff], axis=-1)
    y = conv2d_nhwc(xc, p["out_w"], p["out_b"], 0, 0)
    y = bn_nhwc(y, p["out_bn_g"], p["out_bn_b"], relu=True)
    return y


def tsb_fwd(p, x):
    x = ftb_fwd(p["ftb1"], x)
    x = conv2d_nhwc(x, p["c1_w"], p["c1_b"], 2, 2)
    x = bn_nhwc(x, p["c1_bn_g"], p["c1_bn_b"])
    x = conv2d_nhwc(x, p["c2_w"], p["c2_b"], 12, 0)
    x = bn_nhwc(x, p["c2_bn_g"], p["c2_bn_b"])
    x = conv2d_nhwc(x, p["c3_w"], p["c3_b"], 2, 2)
    x = bn_nhwc(x, p["c3_bn_g"], p["c3_bn_b"])
    x = ftb_fwd(p["ftb2"], x)
    return x


def phasen_fwd(p, x_nchw):
    """x_nchw: (N, 2, T, F) -> cIRM mask (N, 2, T, F)."""
    x = jnp.transpose(x_nchw, (0, 2, 3, 1)).astype(jnp.float32)       # NHWC
    # conv_a: (1,7) pad (0,3) then (7,1) pad (3,0), bias, no activation
    x = conv2d_nhwc(x, p["ca1_w"], p["ca1_b"], 0, 3)
    x = conv2d_nhwc(x, p["ca2_w"], p["ca2_b"], 3, 0)
    x = tsb_fwd(p["tsb1"], x)
    x = tsb_fwd(p["tsb2"], x)
    x = tsb_fwd(p["tsb3"], x)
    # amp_conv: 1x1 Ca -> Cr_out
    m = conv2d_nhwc(x, p["amp_w"], p["amp_b"], 0, 0)                  # (N,T,F,Co)
    N, T, F, Co = m.shape
    seq = m.reshape(N, T, F * Co)                                     # f*Co + c
    out = bilstm(p["lstm"], seq)                                      # (N,T,2H)
    r = out.reshape(N * T, -1)
    r = pallas_matmul(r, p["fc1_w"].T, p["fc1_b"], act="relu")
    r = pallas_matmul(r, p["fc2_w"].T, p["fc2_b"], act="relu")
    r = pallas_matmul(r, p["fc3_w"].T, p["fc3_b"], act="sigmoid")     # (N*T, 2F)
    mask = r.reshape(N, T, F, 2).transpose(0, 3, 1, 2)                # (N,2,T,F)
    return mask


# ---------------------------------------------------------------------------
# Deterministic parameter initialization
# ---------------------------------------------------------------------------
class RNG:
    def __init__(self, key):
        self.key = key

    def __call__(self, shape, scale=0.1):
        self.key, sub = jax.random.split(self.key)
        return (scale * jax.random.normal(sub, shape)).astype(jnp.float32)


def init_ftb(rng, Ca, Cr, F):
    return dict(
        att_w=rng((Cr, Ca, 1, 1)), att_b=rng((Cr,)),
        att_bn_g=jnp.ones((Cr,), jnp.float32), att_bn_b=jnp.zeros((Cr,), jnp.float32),
        att1d_w=rng((F, F * Cr, 9)), att1d_b=rng((F,)),
        att1d_bn_g=jnp.ones((F,), jnp.float32), att1d_bn_b=jnp.zeros((F,), jnp.float32),
        freq_fc_w=rng((F, F)),
        out_w=rng((Ca, 2 * Ca, 1, 1)), out_b=rng((Ca,)),
        out_bn_g=jnp.ones((Ca,), jnp.float32), out_bn_b=jnp.zeros((Ca,), jnp.float32),
    )


def init_tsb(rng, Ca, Cr, F):
    return dict(
        ftb1=init_ftb(rng, Ca, Cr, F),
        c1_w=rng((Ca, Ca, 5, 5)), c1_b=rng((Ca,)),
        c1_bn_g=jnp.ones((Ca,), jnp.float32), c1_bn_b=jnp.zeros((Ca,), jnp.float32),
        c2_w=rng((Ca, Ca, 25, 1)), c2_b=rng((Ca,)),
        c2_bn_g=jnp.ones((Ca,), jnp.float32), c2_bn_b=jnp.zeros((Ca,), jnp.float32),
        c3_w=rng((Ca, Ca, 5, 5)), c3_b=rng((Ca,)),
        c3_bn_g=jnp.ones((Ca,), jnp.float32), c3_bn_b=jnp.zeros((Ca,), jnp.float32),
        ftb2=init_ftb(rng, Ca, Cr, F),
    )


def init_phasen(key, Ca, Cr_tsb, Cr_out, H, F):
    rng = RNG(key)
    Fin = F * Cr_out
    lstm = dict(
        wih_f=rng((4 * H, Fin)), whh_f=rng((4 * H, H)),
        bih_f=rng((4 * H,)), bhh_f=rng((4 * H,)),
        wih_b=rng((4 * H, Fin)), whh_b=rng((4 * H, H)),
        bih_b=rng((4 * H,)), bhh_b=rng((4 * H,)),
    )
    return dict(
        ca1_w=rng((Ca, 2, 1, 7)), ca1_b=rng((Ca,)),
        ca2_w=rng((Ca, Ca, 7, 1)), ca2_b=rng((Ca,)),
        tsb1=init_tsb(rng, Ca, Cr_tsb, F),
        tsb2=init_tsb(rng, Ca, Cr_tsb, F),
        tsb3=init_tsb(rng, Ca, Cr_tsb, F),
        amp_w=rng((Cr_out, Ca, 1, 1)), amp_b=rng((Cr_out,)),
        lstm=lstm,
        fc1_w=rng((H, 2 * H)), fc1_b=rng((H,)),
        fc2_w=rng((H, H)), fc2_b=rng((H,)),
        fc3_w=rng((2 * F, H)), fc3_b=rng((2 * F,)),
    )


# ---------------------------------------------------------------------------
if __name__ == "__main__":
    # Small synthetic configuration (PHASEN_one_strm with scaled-down dims).
    N, Ca, Cr_tsb, Cr_out, H, T, F = 2, 8, 2, 4, 16, 8, 16

    key = jax.random.PRNGKey(0)
    pkey, xkey = jax.random.split(key)
    params = init_phasen(pkey, Ca, Cr_tsb, Cr_out, H, F)
    x = jax.random.normal(xkey, (N, 2, T, F), dtype=jnp.float32)  # NCHW input

    fwd = jax.jit(phasen_fwd)
    out = fwd(params, x)
    out = jax.block_until_ready(out)

    assert out.shape == (N, 2, T, F), out.shape
    assert jnp.all(jnp.isfinite(out))
    print("KERNEL_OK")
</pallas_src>

<mosaic_0001>
module attributes {stable_mosaic.version = 11 : i64} {
  func.func @_mm_kernel(%arg0: i32, %arg1: i32, %arg2: memref<256x14xbf16, #tpu.memory_space<vmem>>, %arg3: memref<14x8xbf16, #tpu.memory_space<vmem>>, %arg4: memref<1x8xf32, #tpu.memory_space<vmem>>, %arg5: memref<256x8xf32, #tpu.memory_space<vmem>>) attributes {dimension_semantics = [#tpu.dimension_semantics<parallel>, #tpu.dimension_semantics<parallel>], iteration_bounds = array<i64: 1, 1>, scalar_prefetch = 0 : i64, scratch_operands = 0 : i64, tpu.core_type = #tpu.core_type<tc>, window_params = [{transform_indices = @transform_0, window_bounds = array<i64: 256, 14>}, {transform_indices = @transform_1, window_bounds = array<i64: 14, 8>}, {transform_indices = @transform_2, window_bounds = array<i64: 1, 8>}, {transform_indices = @transform_3, window_bounds = array<i64: 256, 8>}]} {
    %c0 = arith.constant 0 : index
    %c0_0 = arith.constant 0 : index
    %0 = vector.load %arg2[%c0, %c0_0] : memref<256x14xbf16, #tpu.memory_space<vmem>>, vector<256x14xbf16>
    %c0_1 = arith.constant 0 : index
    %c0_2 = arith.constant 0 : index
    %1 = vector.load %arg3[%c0_1, %c0_2] : memref<14x8xbf16, #tpu.memory_space<vmem>>, vector<14x8xbf16>
    %cst = arith.constant dense<0.000000e+00> : vector<256x8xf32>
    %2 = tpu.matmul %0, %1, %cst {dimension_numbers = #tpu.dot_dimension_numbers<[1], [0], [0], [1], [0, 0, 1, 1], [], []>} : vector<256x14xbf16>, vector<14x8xbf16>, vector<256x8xf32> -> vector<256x8xf32>
    %c0_3 = arith.constant 0 : index
    %c0_4 = arith.constant 0 : index
    %3 = vector.load %arg4[%c0_3, %c0_4] : memref<1x8xf32, #tpu.memory_space<vmem>>, vector<1x8xf32>
    %4 = vector.broadcast %3 : vector<1x8xf32> to vector<256x8xf32>
    %5 = arith.addf %2, %4 : vector<256x8xf32>
    %c0_5 = arith.constant 0 : index
    %c0_6 = arith.constant 0 : index
    %6 = vector.load %arg5[%c0_5, %c0_6] : memref<256x8xf32, #tpu.memory_space<vmem>>, vector<256x8xf32>
    tpu.vector_store %arg5[%c0_5, %c0_6], %5 {strides = array<i32>} : memref<256x8xf32, #tpu.memory_space<vmem>>, vector<256x8xf32>,
    return
  }
  func.func @transform_0(%arg0: i32, %arg1: i32) -> (i32, i32) {
    %c0_i32 = arith.constant 0 : i32
    %c0_i32_0 = arith.constant 0 : i32
    return %arg0, %c0_i32 : i32, i32
  }
  func.func @transform_1(%arg0: i32, %arg1: i32) -> (i32, i32) {
    %c0_i32 = arith.constant 0 : i32
    %c0_i32_0 = arith.constant 0 : i32
    return %c0_i32, %arg1 : i32, i32
  }
  func.func @transform_2(%arg0: i32, %arg1: i32) -> (i32, i32) {
    %c0_i32 = arith.constant 0 : i32
    %c0_i32_0 = arith.constant 0 : i32
    return %c0_i32, %arg1 : i32, i32
  }
  func.func @transform_3(%arg0: i32, %arg1: i32) -> (i32, i32) {
    %c0_i32 = arith.constant 0 : i32
    return %arg0, %arg1 : i32, i32
  }
}

module attributes {stable_mosaic.version = 11 : i64} {
  func.func @_mm_kernel(%arg0: i32, %arg1: i32, %arg2: memref<256x56xbf16, #tpu.memory_space<vmem>>, %arg3: memref<56x8xbf16, #tpu.memory_space<vmem>>, %arg4: memref<1x8xf32, #tpu.memory_space<vmem>>, %arg5: memref<256x8xf32, #tpu.memory_space<vmem>>) attributes {dimension_semantics = [#tpu.dimension_semantics<parallel>, #tpu.dimension_semantics<parallel>], iteration_bounds = array<i64: 1, 1>, scalar_prefetch = 0 : i64, scratch_operands = 0 : i64, tpu.core_type = #tpu.core_type<tc>, window_params = [{transform_indices = @transform_0, window_bounds = array<i64: 256, 56>}, {transform_indices = @transform_1, window_bounds = array<i64: 56, 8>}, {transform_indices = @transform_2, window_bounds = array<i64: 1, 8>}, {transform_indices = @transform_3, window_bounds = array<i64: 256, 8>}]} {
    %c0 = arith.constant 0 : index
    %c0_0 = arith.constant 0 : index
    %0 = vector.load %arg2[%c0, %c0_0] : memref<256x56xbf16, #tpu.memory_space<vmem>>, vector<256x56xbf16>
    %c0_1 = arith.constant 0 : index
    %c0_2 = arith.constant 0 : index
    %1 = vector.load %arg3[%c0_1, %c0_2] : memref<56x8xbf16, #tpu.memory_space<vmem>>, vector<56x8xbf16>
    %cst = arith.constant dense<0.000000e+00> : vector<256x8xf32>
    %2 = tpu.matmul %0, %1, %cst {dimension_numbers = #tpu.dot_dimension_numbers<[1], [0], [0], [1], [0, 0, 1, 1], [], []>} : vector<256x56xbf16>, vector<56x8xbf16>, vector<256x8xf32> -> vector<256x8xf32>
    %c0_3 = arith.constant 0 : index
    %c0_4 = arith.constant 0 : index
    %3 = vector.load %arg4[%c0_3, %c0_4] : memref<1x8xf32, #tpu.memory_space<vmem>>, vector<1x8xf32>
    %4 = vector.broadcast %3 : vector<1x8xf32> to vector<256x8xf32>
    %5 = arith.addf %2, %4 : vector<256x8xf32>
    %c0_5 = arith.constant 0 : index
    %c0_6 = arith.constant 0 : index
    %6 = vector.load %arg5[%c0_5, %c0_6] : memref<256x8xf32, #tpu.memory_space<vmem>>, vector<256x8xf32>
    tpu.vector_store %arg5[%c0_5, %c0_6], %5 {strides = array<i32>} : memref<256x8xf32, #tpu.memory_space<vmem>>, vector<256x8xf32>,
    return
  }
  func.func @transform_0(%arg0: i32, %arg1: i32) -> (i32, i32) {
    %c0_i32 = arith.constant 0 : i32
    %c0_i32_0 = arith.constant 0 : i32
    return %arg0, %c0_i32 : i32, i32
  }
  func.func @transform_1(%arg0: i32, %arg1: i32) -> (i32, i32) {
    %c0_i32 = arith.constant 0 : i32
    %c0_i32_0 = arith.constant 0 : i32
    return %c0_i32, %arg1 : i32, i32
  }
  func.func @transform_2(%arg0: i32, %arg1: i32) -> (i32, i32) {
    %c0_i32 = arith.constant 0 : i32
    %c0_i32_0 = arith.constant 0 : i32
    return %c0_i32, %arg1 : i32, i32
  }
  func.func @transform_3(%arg0: i32, %arg1: i32) -> (i32, i32) {
    %c0_i32 = arith.constant 0 : i32
    return %arg0, %arg1 : i32, i32
  }
}

module attributes {stable_mosaic.version = 11 : i64} {
  func.func @_mm_kernel(%arg0: i32, %arg1: i32, %arg2: memref<256x8xf32, #tpu.memory_space<vmem>>, %arg3: memref<8x2xbf16, #tpu.memory_space<vmem>>, %arg4: memref<1x2xf32, #tpu.memory_space<vmem>>, %arg5: memref<256x2xf32, #tpu.memory_space<vmem>>) attributes {dimension_semantics = [#tpu.dimension_semantics<parallel>, #tpu.dimension_semantics<parallel>], iteration_bounds = array<i64: 1, 1>, scalar_prefetch = 0 : i64, scratch_operands = 0 : i64, tpu.core_type = #tpu.core_type<tc>, window_params = [{transform_indices = @transform_0, window_bounds = array<i64: 256, 8>}, {transform_indices = @transform_1, window_bounds = array<i64: 8, 2>}, {transform_indices = @transform_2, window_bounds = array<i64: 1, 2>}, {transform_indices = @transform_3, window_bounds = array<i64: 256, 2>}]} {
    %c0 = arith.constant 0 : index
    %c0_0 = arith.constant 0 : index
    %0 = vector.load %arg2[%c0, %c0_0] : memref<256x8xf32, #tpu.memory_space<vmem>>, vector<256x8xf32>
    %1 = arith.truncf %0 : vector<256x8xf32> to vector<256x8xbf16>
    %c0_1 = arith.constant 0 : index
    %c0_2 = arith.constant 0 : index
    %2 = vector.load %arg3[%c0_1, %c0_2] : memref<8x2xbf16, #tpu.memory_space<vmem>>, vector<8x2xbf16>
    %cst = arith.constant dense<0.000000e+00> : vector<256x2xf32>
    %3 = tpu.matmul %1, %2, %cst {dimension_numbers = #tpu.dot_dimension_numbers<[1], [0], [0], [1], [0, 0, 1, 1], [], []>} : vector<256x8xbf16>, vector<8x2xbf16>, vector<256x2xf32> -> vector<256x2xf32>
    %c0_3 = arith.constant 0 : index
    %c0_4 = arith.constant 0 : index
    %4 = vector.load %arg4[%c0_3, %c0_4] : memref<1x2xf32, #tpu.memory_space<vmem>>, vector<1x2xf32>
    %5 = vector.broadcast %4 : vector<1x2xf32> to vector<256x2xf32>
    %6 = arith.addf %3, %5 : vector<256x2xf32>
    %c0_5 = arith.constant 0 : index
    %c0_6 = arith.constant 0 : index
    %7 = vector.load %arg5[%c0_5, %c0_6] : memref<256x2xf32, #tpu.memory_space<vmem>>, vector<256x2xf32>
    tpu.vector_store %arg5[%c0_5, %c0_6], %6 {strides = array<i32>} : memref<256x2xf32, #tpu.memory_space<vmem>>, vector<256x2xf32>,
    return
  }
  func.func @transform_0(%arg0: i32, %arg1: i32) -> (i32, i32) {
    %c0_i32 = arith.constant 0 : i32
    %c0_i32_0 = arith.constant 0 : i32
    return %arg0, %c0_i32 : i32, i32
  }
  func.func @transform_1(%arg0: i32, %arg1: i32) -> (i32, i32) {
    %c0_i32 = arith.constant 0 : i32
    %c0_i32_0 = arith.constant 0 : i32
    return %c0_i32, %arg1 : i32, i32
  }
  func.func @transform_2(%arg0: i32, %arg1: i32) -> (i32, i32) {
    %c0_i32 = arith.constant 0 : i32
    %c0_i32_0 = arith.constant 0 : i32
    return %c0_i32, %arg1 : i32, i32
  }
  func.func @transform_3(%arg0: i32, %arg1: i32) -> (i32, i32) {
    %c0_i32 = arith.constant 0 : i32
    return %arg0, %arg1 : i32, i32
  }
}

module attributes {stable_mosaic.version = 11 : i64} {
  func.func @_bn_stats_kernel(%arg0: i32, %arg1: memref<256x2xf32, #tpu.memory_space<vmem>>, %arg2: memref<8x2xf32, #tpu.memory_space<vmem>>, %arg3: memref<8x2xf32, #tpu.memory_space<vmem>>) attributes {dimension_semantics = [#tpu.dimension_semantics<arbitrary>], iteration_bounds = array<i64: 1>, scalar_prefetch = 0 : i64, scratch_operands = 1 : i64, tpu.core_type = #tpu.core_type<tc>, window_params = [{transform_indices = @transform_0, window_bounds = array<i64: 256, 2>}, {pipeline_mode = #tpu.pipeline_mode<synchronous>, transform_indices = @transform_1, window_bounds = array<i64: 8, 2>}]} {
    %c0_i32 = arith.constant 0 : i32
    %0 = arith.cmpi eq, %arg0, %c0_i32 : i32
    %1 = arith.extui %0 : i1 to i32
    %c0_i32_0 = arith.constant 0 : i32
    %2 = arith.cmpi ne, %1, %c0_i32_0 : i32
    scf.if %2 {
      %cst_14 = arith.constant 0.000000e+00 : f32
      %26 = vector.broadcast %cst_14 : f32 to vector<8x2xf32>
      %c0_15 = arith.constant 0 : index
      %c0_16 = arith.constant 0 : index
      %27 = vector.load %arg3[%c0_15, %c0_16] : memref<8x2xf32, #tpu.memory_space<vmem>>, vector<8x2xf32>
      tpu.vector_store %arg3[%c0_15, %c0_16], %26 {strides = array<i32>} : memref<8x2xf32, #tpu.memory_space<vmem>>, vector<8x2xf32>,
    } else {
    }
    %c0 = arith.constant 0 : index
    %c0_1 = arith.constant 0 : index
    %3 = vector.load %arg1[%c0, %c0_1] : memref<256x2xf32, #tpu.memory_space<vmem>>, vector<256x2xf32>
    %4 = tpu.iota {dimensions = array<i32: 0>} : vector<256x2xi32>
    %c256_i32 = arith.constant 256 : i32
    %5 = arith.muli %arg0, %c256_i32 : i32
    %6 = vector.broadcast %5 : i32 to vector<256x2xi32>
    %7 = arith.addi %4, %6 : vector<256x2xi32>
    %c256_i32_2 = arith.constant 256 : i32
    %8 = vector.broadcast %c256_i32_2 : i32 to vector<256x2xi32>
    %9 = arith.cmpi slt, %7, %8 : vector<256x2xi32>
    %cst = arith.constant 0.000000e+00 : f32
    %10 = vector.broadcast %cst : f32 to vector<256x2xf32>
    %11 = arith.select %9, %3, %10 : vector<256x2xi1>, vector<256x2xf32>
    %c0_3 = arith.constant 0 : index
    %c0_4 = arith.constant 0 : index
    %12 = vector.load %arg3[%c0_3, %c0_4] : memref<8x2xf32, #tpu.memory_space<vmem>>, vector<1x2xf32>
    %cst_5 = arith.constant dense<0.000000e+00> : vector<2xf32>
    %13 = vector.multi_reduction <add>, %11, %cst_5 [0] : vector<256x2xf32> to vector<2xf32>
    %14 = vector.shape_cast %13 : vector<2xf32> to vector<1x2xf32>
    %15 = arith.addf %12, %14 : vector<1x2xf32>
    %c0_6 = arith.constant 0 : index
    %c0_7 = arith.constant 0 : index
    %16 = vector.load %arg3[%c0_6, %c0_7] : memref<8x2xf32, #tpu.memory_space<vmem>>, vector<1x2xf32>
    tpu.vector_store %arg3[%c0_6, %c0_7], %15 {strides = array<i32>} : memref<8x2xf32, #tpu.memory_space<vmem>>, vector<1x2xf32>,
    %c1 = arith.constant 1 : index
    %c0_8 = arith.constant 0 : index
    %17 = vector.load %arg3[%c1, %c0_8] : memref<8x2xf32, #tpu.memory_space<vmem>>, vector<1x2xf32>
    %18 = arith.mulf %11, %11 : vector<256x2xf32>
    %cst_9 = arith.constant dense<0.000000e+00> : vector<2xf32>
    %19 = vector.multi_reduction <add>, %18, %cst_9 [0] : vector<256x2xf32> to vector<2xf32>
    %20 = vector.shape_cast %19 : vector<2xf32> to vector<1x2xf32>
    %21 = arith.addf %17, %20 : vector<1x2xf32>
    %c1_10 = arith.constant 1 : index
    %c0_11 = arith.constant 0 : index
    %22 = vector.load %arg3[%c1_10, %c0_11] : memref<8x2xf32, #tpu.memory_space<vmem>>, vector<1x2xf32>
    tpu.vector_store %arg3[%c1_10, %c0_11], %21 {strides = array<i32>} : memref<8x2xf32, #tpu.memory_space<vmem>>, vector<1x2xf32>,
    %c0_i32_12 = arith.constant 0 : i32
    %23 = arith.cmpi eq, %arg0, %c0_i32_12 : i32
    %24 = arith.extui %23 : i1 to i32
    %c0_i32_13 = arith.constant 0 : i32
    %25 = arith.cmpi ne, %24, %c0_i32_13 : i32
    scf.if %25 {
      %c0_14 = arith.constant 0 : index
      %c0_15 = arith.constant 0 : index
      %26 = vector.load %arg3[%c0_14, %c0_15] : memref<8x2xf32, #tpu.memory_space<vmem>>, vector<8x2xf32>
      %c0_16 = arith.constant 0 : index
      %c0_17 = arith.constant 0 : index
      %27 = vector.load %arg2[%c0_16, %c0_17] : memref<8x2xf32, #tpu.memory_space<vmem>>, vector<8x2xf32>
      tpu.vector_store %arg2[%c0_16, %c0_17], %26 {strides = array<i32>} : memref<8x2xf32, #tpu.memory_space<vmem>>, vector<8x2xf32>,
    } else {
    }
    return
  }
  func.func @transform_0(%arg0: i32) -> (i32, i32) {
    %c0_i32 = arith.constant 0 : i32
    %c0_i32_0 = arith.constant 0 : i32
    return %arg0, %c0_i32 : i32, i32
  }
  func.func @transform_1(%arg0: i32) -> (i32, i32) {
    %c0_i32 = arith.constant 0 : i32
    %c0_i32_0 = arith.constant 0 : i32
    %c0_i32_1 = arith.constant 0 : i32
    return %c0_i32, %c0_i32_0 : i32, i32
  }
}

module attributes {stable_mosaic.version = 11 : i64} {
  func.func @_bn_apply_kernel(%arg0: i32, %arg1: memref<256x2xf32, #tpu.memory_space<vmem>>, %arg2: memref<8x2xf32, #tpu.memory_space<vmem>>, %arg3: memref<1x2xf32, #tpu.memory_space<vmem>>, %arg4: memref<1x2xf32, #tpu.memory_space<vmem>>, %arg5: memref<256x2xf32, #tpu.memory_space<vmem>>) attributes {dimension_semantics = [#tpu.dimension_semantics<parallel>], iteration_bounds = array<i64: 1>, scalar_prefetch = 0 : i64, scratch_operands = 0 : i64, tpu.core_type = #tpu.core_type<tc>, window_params = [{transform_indices = @transform_0, window_bounds = array<i64: 256, 2>}, {pipeline_mode = #tpu.pipeline_mode<synchronous>, transform_indices = @transform_1, window_bounds = array<i64: 8, 2>}, {pipeline_mode = #tpu.pipeline_mode<synchronous>, transform_indices = @transform_2, window_bounds = array<i64: 1, 2>}, {pipeline_mode = #tpu.pipeline_mode<synchronous>, transform_indices = @transform_3, window_bounds = array<i64: 1, 2>}, {transform_indices = @transform_4, window_bounds = array<i64: 256, 2>}]} {
    %c0 = arith.constant 0 : index
    %c0_0 = arith.constant 0 : index
    %0 = vector.load %arg2[%c0, %c0_0] : memref<8x2xf32, #tpu.memory_space<vmem>>, vector<1x2xf32>
    %cst = arith.constant 3.906250e-03 : f32
    %1 = vector.broadcast %cst : f32 to vector<1x2xf32>
    %2 = arith.mulf %0, %1 : vector<1x2xf32>
    %c1 = arith.constant 1 : index
    %c0_1 = arith.constant 0 : index
    %3 = vector.load %arg2[%c1, %c0_1] : memref<8x2xf32, #tpu.memory_space<vmem>>, vector<1x2xf32>
    %cst_2 = arith.constant 3.906250e-03 : f32
    %4 = vector.broadcast %cst_2 : f32 to vector<1x2xf32>
    %5 = arith.mulf %3, %4 : vector<1x2xf32>
    %6 = arith.mulf %2, %2 : vector<1x2xf32>
    %7 = arith.subf %5, %6 : vector<1x2xf32>
    %cst_3 = arith.constant 0.000000e+00 : f32
    %8 = vector.broadcast %cst_3 : f32 to vector<1x2xf32>
    %9 = arith.maximumf %7, %8 : vector<1x2xf32>
    %cst_4 = arith.constant 9.99999974E-6 : f32
    %10 = vector.broadcast %cst_4 : f32 to vector<1x2xf32>
    %11 = arith.addf %9, %10 : vector<1x2xf32>
    %12 = math.rsqrt %11 : vector<1x2xf32>
    %c0_5 = arith.constant 0 : index
    %c0_6 = arith.constant 0 : index
    %13 = vector.load %arg1[%c0_5, %c0_6] : memref<256x2xf32, #tpu.memory_space<vmem>>, vector<256x2xf32>
    %14 = vector.broadcast %2 : vector<1x2xf32> to vector<256x2xf32>
    %15 = arith.subf %13, %14 : vector<256x2xf32>
    %c0_7 = arith.constant 0 : index
    %c0_8 = arith.constant 0 : index
    %16 = vector.load %arg3[%c0_7, %c0_8] : memref<1x2xf32, #tpu.memory_space<vmem>>, vector<1x2xf32>
    %17 = arith.mulf %12, %16 : vector<1x2xf32>
    %18 = vector.broadcast %17 : vector<1x2xf32> to vector<256x2xf32>
    %19 = arith.mulf %15, %18 : vector<256x2xf32>
    %c0_9 = arith.constant 0 : index
    %c0_10 = arith.constant 0 : index
    %20 = vector.load %arg4[%c0_9, %c0_10] : memref<1x2xf32, #tpu.memory_space<vmem>>, vector<1x2xf32>
    %21 = vector.broadcast %20 : vector<1x2xf32> to vector<256x2xf32>
    %22 = arith.addf %19, %21 : vector<256x2xf32>
    %cst_11 = arith.constant 0.000000e+00 : f32
    %23 = vector.broadcast %cst_11 : f32 to vector<256x2xf32>
    %24 = arith.maximumf %22, %23 : vector<256x2xf32>
    %c0_12 = arith.constant 0 : index
    %c0_13 = arith.constant 0 : index
    %25 = vector.load %arg5[%c0_12, %c0_13] : memref<256x2xf32, #tpu.memory_space<vmem>>, vector<256x2xf32>
    tpu.vector_store %arg5[%c0_12, %c0_13], %24 {strides = array<i32>} : memref<256x2xf32, #tpu.memory_space<vmem>>, vector<256x2xf32>,
    return
  }
  func.func @transform_0(%arg0: i32) -> (i32, i32) {
    %c0_i32 = arith.constant 0 : i32
    %c0_i32_0 = arith.constant 0 : i32
    return %arg0, %c0_i32 : i32, i32
  }
  func.func @transform_1(%arg0: i32) -> (i32, i32) {
    %c0_i32 = arith.constant 0 : i32
    %c0_i32_0 = arith.constant 0 : i32
    %c0_i32_1 = arith.constant 0 : i32
    return %c0_i32, %c0_i32_0 : i32, i32
  }
  func.func @transform_2(%arg0: i32) -> (i32, i32) {
    %c0_i32 = arith.constant 0 : i32
    %c0_i32_0 = arith.constant 0 : i32
    %c0_i32_1 = arith.constant 0 : i32
    return %c0_i32, %c0_i32_0 : i32, i32
  }
  func.func @transform_3(%arg0: i32) -> (i32, i32) {
    %c0_i32 = arith.constant 0 : i32
    %c0_i32_0 = arith.constant 0 : i32
    %c0_i32_1 = arith.constant 0 : i32
    return %c0_i32, %c0_i32_0 : i32, i32
  }
  func.func @transform_4(%arg0: i32) -> (i32, i32) {
    %c0_i32 = arith.constant 0 : i32
    %c0_i32_0 = arith.constant 0 : i32
    return %arg0, %c0_i32 : i32, i32
  }
}

module attributes {stable_mosaic.version = 11 : i64} {
  func.func @_mm_kernel(%arg0: i32, %arg1: i32, %arg2: memref<16x288xbf16, #tpu.memory_space<vmem>>, %arg3: memref<288x16xbf16, #tpu.memory_space<vmem>>, %arg4: memref<1x16xf32, #tpu.memory_space<vmem>>, %arg5: memref<16x16xf32, #tpu.memory_space<vmem>>) attributes {dimension_semantics = [#tpu.dimension_semantics<parallel>, #tpu.dimension_semantics<parallel>], iteration_bounds = array<i64: 1, 1>, scalar_prefetch = 0 : i64, scratch_operands = 0 : i64, tpu.core_type = #tpu.core_type<tc>, window_params = [{transform_indices = @transform_0, window_bounds = array<i64: 16, 288>}, {transform_indices = @transform_1, window_bounds = array<i64: 288, 16>}, {transform_indices = @transform_2, window_bounds = array<i64: 1, 16>}, {transform_indices = @transform_3, window_bounds = array<i64: 16, 16>}]} {
    %c0 = arith.constant 0 : index
    %c0_0 = arith.constant 0 : index
    %0 = vector.load %arg2[%c0, %c0_0] : memref<16x288xbf16, #tpu.memory_space<vmem>>, vector<16x288xbf16>
    %c0_1 = arith.constant 0 : index
    %c0_2 = arith.constant 0 : index
    %1 = vector.load %arg3[%c0_1, %c0_2] : memref<288x16xbf16, #tpu.memory_space<vmem>>, vector<288x16xbf16>
    %cst = arith.constant dense<0.000000e+00> : vector<16x16xf32>
    %2 = tpu.matmul %0, %1, %cst {dimension_numbers = #tpu.dot_dimension_numbers<[1], [0], [0], [1], [0, 0, 1, 1], [], []>} : vector<16x288xbf16>, vector<288x16xbf16>, vector<16x16xf32> -> vector<16x16xf32>
    %c0_3 = arith.constant 0 : index
    %c0_4 = arith.constant 0 : index
    %3 = vector.load %arg4[%c0_3, %c0_4] : memref<1x16xf32, #tpu.memory_space<vmem>>, vector<1x16xf32>
    %4 = vector.broadcast %3 : vector<1x16xf32> to vector<16x16xf32>
    %5 = arith.addf %2, %4 : vector<16x16xf32>
    %c0_5 = arith.constant 0 : index
    %c0_6 = arith.constant 0 : index
    %6 = vector.load %arg5[%c0_5, %c0_6] : memref<16x16xf32, #tpu.memory_space<vmem>>, vector<16x16xf32>
    tpu.vector_store %arg5[%c0_5, %c0_6], %5 {strides = array<i32>} : memref<16x16xf32, #tpu.memory_space<vmem>>, vector<16x16xf32>,
    return
  }
  func.func @transform_0(%arg0: i32, %arg1: i32) -> (i32, i32) {
    %c0_i32 = arith.constant 0 : i32
    %c0_i32_0 = arith.constant 0 : i32
    return %arg0, %c0_i32 : i32, i32
  }
  func.func @transform_1(%arg0: i32, %arg1: i32) -> (i32, i32) {
    %c0_i32 = arith.constant 0 : i32
    %c0_i32_0 = arith.constant 0 : i32
    return %c0_i32, %arg1 : i32, i32
  }
  func.func @transform_2(%arg0: i32, %arg1: i32) -> (i32, i32) {
    %c0_i32 = arith.constant 0 : i32
    %c0_i32_0 = arith.constant 0 : i32
    return %c0_i32, %arg1 : i32, i32
  }
  func.func @transform_3(%arg0: i32, %arg1: i32) -> (i32, i32) {
    %c0_i32 = arith.constant 0 : i32
    return %arg0, %arg1 : i32, i32
  }
}

module attributes {stable_mosaic.version = 11 : i64} {
  func.func @_bn_apply_kernel(%arg0: i32, %arg1: memref<16x16xf32, #tpu.memory_space<vmem>>, %arg2: memref<8x16xf32, #tpu.memory_space<vmem>>, %arg3: memref<1x16xf32, #tpu.memory_space<vmem>>, %arg4: memref<1x16xf32, #tpu.memory_space<vmem>>, %arg5: memref<16x16xf32, #tpu.memory_space<vmem>>) attributes {dimension_semantics = [#tpu.dimension_semantics<parallel>], iteration_bounds = array<i64: 1>, scalar_prefetch = 0 : i64, scratch_operands = 0 : i64, tpu.core_type = #tpu.core_type<tc>, window_params = [{transform_indices = @transform_0, window_bounds = array<i64: 16, 16>}, {pipeline_mode = #tpu.pipeline_mode<synchronous>, transform_indices = @transform_1, window_bounds = array<i64: 8, 16>}, {pipeline_mode = #tpu.pipeline_mode<synchronous>, transform_indices = @transform_2, window_bounds = array<i64: 1, 16>}, {pipeline_mode = #tpu.pipeline_mode<synchronous>, transform_indices = @transform_3, window_bounds = array<i64: 1, 16>}, {transform_indices = @transform_4, window_bounds = array<i64: 16, 16>}]} {
    %c0 = arith.constant 0 : index
    %c0_0 = arith.constant 0 : index
    %0 = vector.load %arg2[%c0, %c0_0] : memref<8x16xf32, #tpu.memory_space<vmem>>, vector<1x16xf32>
    %cst = arith.constant 6.250000e-02 : f32
    %1 = vector.broadcast %cst : f32 to vector<1x16xf32>
    %2 = arith.mulf %0, %1 : vector<1x16xf32>
    %c1 = arith.constant 1 : index
    %c0_1 = arith.constant 0 : index
    %3 = vector.load %arg2[%c1, %c0_1] : memref<8x16xf32, #tpu.memory_space<vmem>>, vector<1x16xf32>
    %cst_2 = arith.constant 6.250000e-02 : f32
    %4 = vector.broadcast %cst_2 : f32 to vector<1x16xf32>
    %5 = arith.mulf %3, %4 : vector<1x16xf32>
    %6 = arith.mulf %2, %2 : vector<1x16xf32>
    %7 = arith.subf %5, %6 : vector<1x16xf32>
    %cst_3 = arith.constant 0.000000e+00 : f32
    %8 = vector.broadcast %cst_3 : f32 to vector<1x16xf32>
    %9 = arith.maximumf %7, %8 : vector<1x16xf32>
    %cst_4 = arith.constant 9.99999974E-6 : f32
    %10 = vector.broadcast %cst_4 : f32 to vector<1x16xf32>
    %11 = arith.addf %9, %10 : vector<1x16xf32>
    %12 = math.rsqrt %11 : vector<1x16xf32>
    %c0_5 = arith.constant 0 : index
    %c0_6 = arith.constant 0 : index
    %13 = vector.load %arg1[%c0_5, %c0_6] : memref<16x16xf32, #tpu.memory_space<vmem>>, vector<16x16xf32>
    %14 = vector.broadcast %2 : vector<1x16xf32> to vector<16x16xf32>
    %15 = arith.subf %13, %14 : vector<16x16xf32>
    %c0_7 = arith.constant 0 : index
    %c0_8 = arith.constant 0 : index
    %16 = vector.load %arg3[%c0_7, %c0_8] : memref<1x16xf32, #tpu.memory_space<vmem>>, vector<1x16xf32>
    %17 = arith.mulf %12, %16 : vector<1x16xf32>
    %18 = vector.broadcast %17 : vector<1x16xf32> to vector<16x16xf32>
    %19 = arith.mulf %15, %18 : vector<16x16xf32>
    %c0_9 = arith.constant 0 : index
    %c0_10 = arith.constant 0 : index
    %20 = vector.load %arg4[%c0_9, %c0_10] : memref<1x16xf32, #tpu.memory_space<vmem>>, vector<1x16xf32>
    %21 = vector.broadcast %20 : vector<1x16xf32> to vector<16x16xf32>
    %22 = arith.addf %19, %21 : vector<16x16xf32>
    %cst_11 = arith.constant 0.000000e+00 : f32
    %23 = vector.broadcast %cst_11 : f32 to vector<16x16xf32>
    %24 = arith.maximumf %22, %23 : vector<16x16xf32>
    %c0_12 = arith.constant 0 : index
    %c0_13 = arith.constant 0 : index
    %25 = vector.load %arg5[%c0_12, %c0_13] : memref<16x16xf32, #tpu.memory_space<vmem>>, vector<16x16xf32>
    tpu.vector_store %arg5[%c0_12, %c0_13], %24 {strides = array<i32>} : memref<16x16xf32, #tpu.memory_space<vmem>>, vector<16x16xf32>,
    return
  }
  func.func @transform_0(%arg0: i32) -> (i32, i32) {
    %c0_i32 = arith.constant 0 : i32
    %c0_i32_0 = arith.constant 0 : i32
    return %arg0, %c0_i32 : i32, i32
  }
  func.func @transform_1(%arg0: i32) -> (i32, i32) {
    %c0_i32 = arith.constant 0 : i32
    %c0_i32_0 = arith.constant 0 : i32
    %c0_i32_1 = arith.constant 0 : i32
    return %c0_i32, %c0_i32_0 : i32, i32
  }
  func.func @transform_2(%arg0: i32) -> (i32, i32) {
    %c0_i32 = arith.constant 0 : i32
    %c0_i32_0 = arith.constant 0 : i32
    %c0_i32_1 = arith.constant 0 : i32
    return %c0_i32, %c0_i32_0 : i32, i32
  }
  func.func @transform_3(%arg0: i32) -> (i32, i32) {
    %c0_i32 = arith.constant 0 : i32
    %c0_i32_0 = arith.constant 0 : i32
    %c0_i32_1 = arith.constant 0 : i32
    return %c0_i32, %c0_i32_0 : i32, i32
  }
  func.func @transform_4(%arg0: i32) -> (i32, i32) {
    %c0_i32 = arith.constant 0 : i32
    %c0_i32_0 = arith.constant 0 : i32
    return %arg0, %c0_i32 : i32, i32
  }
}

module attributes {stable_mosaic.version = 11 : i64} {
  func.func @_bn_stats_kernel(%arg0: i32, %arg1: memref<16x16xf32, #tpu.memory_space<vmem>>, %arg2: memref<8x16xf32, #tpu.memory_space<vmem>>, %arg3: memref<8x16xf32, #tpu.memory_space<vmem>>) attributes {dimension_semantics = [#tpu.dimension_semantics<arbitrary>], iteration_bounds = array<i64: 1>, scalar_prefetch = 0 : i64, scratch_operands = 1 : i64, tpu.core_type = #tpu.core_type<tc>, window_params = [{transform_indices = @transform_0, window_bounds = array<i64: 16, 16>}, {pipeline_mode = #tpu.pipeline_mode<synchronous>, transform_indices = @transform_1, window_bounds = array<i64: 8, 16>}]} {
    %c0_i32 = arith.constant 0 : i32
    %0 = arith.cmpi eq, %arg0, %c0_i32 : i32
    %1 = arith.extui %0 : i1 to i32
    %c0_i32_0 = arith.constant 0 : i32
    %2 = arith.cmpi ne, %1, %c0_i32_0 : i32
    scf.if %2 {
      %cst_14 = arith.constant 0.000000e+00 : f32
      %26 = vector.broadcast %cst_14 : f32 to vector<8x16xf32>
      %c0_15 = arith.constant 0 : index
      %c0_16 = arith.constant 0 : index
      %27 = vector.load %arg3[%c0_15, %c0_16] : memref<8x16xf32, #tpu.memory_space<vmem>>, vector<8x16xf32>
      tpu.vector_store %arg3[%c0_15, %c0_16], %26 {strides = array<i32>} : memref<8x16xf32, #tpu.memory_space<vmem>>, vector<8x16xf32>,
    } else {
    }
    %c0 = arith.constant 0 : index
    %c0_1 = arith.constant 0 : index
    %3 = vector.load %arg1[%c0, %c0_1] : memref<16x16xf32, #tpu.memory_space<vmem>>, vector<16x16xf32>
    %4 = tpu.iota {dimensions = array<i32: 0>} : vector<16x16xi32>
    %c16_i32 = arith.constant 16 : i32
    %5 = arith.muli %arg0, %c16_i32 : i32
    %6 = vector.broadcast %5 : i32 to vector<16x16xi32>
    %7 = arith.addi %4, %6 : vector<16x16xi32>
    %c16_i32_2 = arith.constant 16 : i32
    %8 = vector.broadcast %c16_i32_2 : i32 to vector<16x16xi32>
    %9 = arith.cmpi slt, %7, %8 : vector<16x16xi32>
    %cst = arith.constant 0.000000e+00 : f32
    %10 = vector.broadcast %cst : f32 to vector<16x16xf32>
    %11 = arith.select %9, %3, %10 : vector<16x16xi1>, vector<16x16xf32>
    %c0_3 = arith.constant 0 : index
    %c0_4 = arith.constant 0 : index
    %12 = vector.load %arg3[%c0_3, %c0_4] : memref<8x16xf32, #tpu.memory_space<vmem>>, vector<1x16xf32>
    %cst_5 = arith.constant dense<0.000000e+00> : vector<16xf32>
    %13 = vector.multi_reduction <add>, %11, %cst_5 [0] : vector<16x16xf32> to vector<16xf32>
    %14 = vector.shape_cast %13 : vector<16xf32> to vector<1x16xf32>
    %15 = arith.addf %12, %14 : vector<1x16xf32>
    %c0_6 = arith.constant 0 : index
    %c0_7 = arith.constant 0 : index
    %16 = vector.load %arg3[%c0_6, %c0_7] : memref<8x16xf32, #tpu.memory_space<vmem>>, vector<1x16xf32>
    tpu.vector_store %arg3[%c0_6, %c0_7], %15 {strides = array<i32>} : memref<8x16xf32, #tpu.memory_space<vmem>>, vector<1x16xf32>,
    %c1 = arith.constant 1 : index
    %c0_8 = arith.constant 0 : index
    %17 = vector.load %arg3[%c1, %c0_8] : memref<8x16xf32, #tpu.memory_space<vmem>>, vector<1x16xf32>
    %18 = arith.mulf %11, %11 : vector<16x16xf32>
    %cst_9 = arith.constant dense<0.000000e+00> : vector<16xf32>
    %19 = vector.multi_reduction <add>, %18, %cst_9 [0] : vector<16x16xf32> to vector<16xf32>
    %20 = vector.shape_cast %19 : vector<16xf32> to vector<1x16xf32>
    %21 = arith.addf %17, %20 : vector<1x16xf32>
    %c1_10 = arith.constant 1 : index
    %c0_11 = arith.constant 0 : index
    %22 = vector.load %arg3[%c1_10, %c0_11] : memref<8x16xf32, #tpu.memory_space<vmem>>, vector<1x16xf32>
    tpu.vector_store %arg3[%c1_10, %c0_11], %21 {strides = array<i32>} : memref<8x16xf32, #tpu.memory_space<vmem>>, vector<1x16xf32>,
    %c0_i32_12 = arith.constant 0 : i32
    %23 = arith.cmpi eq, %arg0, %c0_i32_12 : i32
    %24 = arith.extui %23 : i1 to i32
    %c0_i32_13 = arith.constant 0 : i32
    %25 = arith.cmpi ne, %24, %c0_i32_13 : i32
    scf.if %25 {
      %c0_14 = arith.constant 0 : index
      %c0_15 = arith.constant 0 : index
      %26 = vector.load %arg3[%c0_14, %c0_15] : memref<8x16xf32, #tpu.memory_space<vmem>>, vector<8x16xf32>
      %c0_16 = arith.constant 0 : index
      %c0_17 = arith.constant 0 : index
      %27 = vector.load %arg2[%c0_16, %c0_17] : memref<8x16xf32, #tpu.memory_space<vmem>>, vector<8x16xf32>
      tpu.vector_store %arg2[%c0_16, %c0_17], %26 {strides = array<i32>} : memref<8x16xf32, #tpu.memory_space<vmem>>, vector<8x16xf32>,
    } else {
    }
    return
  }
  func.func @transform_0(%arg0: i32) -> (i32, i32) {
    %c0_i32 = arith.constant 0 : i32
    %c0_i32_0 = arith.constant 0 : i32
    return %arg0, %c0_i32 : i32, i32
  }
  func.func @transform_1(%arg0: i32) -> (i32, i32) {
    %c0_i32 = arith.constant 0 : i32
    %c0_i32_0 = arith.constant 0 : i32
    %c0_i32_1 = arith.constant 0 : i32
    return %c0_i32, %c0_i32_0 : i32, i32
  }
}

module attributes {stable_mosaic.version = 11 : i64} {
  func.func @_mul_bcast_kernel(%arg0: i32, %arg1: memref<256x8xf32, #tpu.memory_space<vmem>>, %arg2: memref<256x1xf32, #tpu.memory_space<vmem>>, %arg3: memref<256x8xf32, #tpu.memory_space<vmem>>) attributes {dimension_semantics = [#tpu.dimension_semantics<parallel>], iteration_bounds = array<i64: 1>, scalar_prefetch = 0 : i64, scratch_operands = 0 : i64, tpu.core_type = #tpu.core_type<tc>, window_params = [{transform_indices = @transform_0, window_bounds = array<i64: 256, 8>}, {transform_indices = @transform_1, window_bounds = array<i64: 256, 1>}, {transform_indices = @transform_2, window_bounds = array<i64: 256, 8>}]} {
    %c0 = arith.constant 0 : index
    %c0_0 = arith.constant 0 : index
    %0 = vector.load %arg1[%c0, %c0_0] : memref<256x8xf32, #tpu.memory_space<vmem>>, vector<256x8xf32>
    %c0_1 = arith.constant 0 : index
    %c0_2 = arith.constant 0 : index
    %1 = vector.load %arg2[%c0_1, %c0_2] : memref<256x1xf32, #tpu.memory_space<vmem>>, vector<256x1xf32>
    %2 = vector.broadcast %1 : vector<256x1xf32> to vector<256x8xf32>
    %3 = arith.mulf %0, %2 : vector<256x8xf32>
    %c0_3 = arith.constant 0 : index
    %c0_4 = arith.constant 0 : index
    %4 = vector.load %arg3[%c0_3, %c0_4] : memref<256x8xf32, #tpu.memory_space<vmem>>, vector<256x8xf32>
    tpu.vector_store %arg3[%c0_3, %c0_4], %3 {strides = array<i32>} : memref<256x8xf32, #tpu.memory_space<vmem>>, vector<256x8xf32>,
    return
  }
  func.func @transform_0(%arg0: i32) -> (i32, i32) {
    %c0_i32 = arith.constant 0 : i32
    %c0_i32_0 = arith.constant 0 : i32
    return %arg0, %c0_i32 : i32, i32
  }
  func.func @transform_1(%arg0: i32) -> (i32, i32) {
    %c0_i32 = arith.constant 0 : i32
    %c0_i32_0 = arith.constant 0 : i32
    return %arg0, %c0_i32 : i32, i32
  }
  func.func @transform_2(%arg0: i32) -> (i32, i32) {
    %c0_i32 = arith.constant 0 : i32
    %c0_i32_0 = arith.constant 0 : i32
    return %arg0, %c0_i32 : i32, i32
  }
}

module attributes {stable_mosaic.version = 11 : i64} {
  func.func @_mm_kernel(%arg0: i32, %arg1: i32, %arg2: memref<128x16xf32, #tpu.memory_space<vmem>>, %arg3: memref<16x16xbf16, #tpu.memory_space<vmem>>, %arg4: memref<1x16xf32, #tpu.memory_space<vmem>>, %arg5: memref<128x16xf32, #tpu.memory_space<vmem>>) attributes {dimension_semantics = [#tpu.dimension_semantics<parallel>, #tpu.dimension_semantics<parallel>], iteration_bounds = array<i64: 1, 1>, scalar_prefetch = 0 : i64, scratch_operands = 0 : i64, tpu.core_type = #tpu.core_type<tc>, window_params = [{transform_indices = @transform_0, window_bounds = array<i64: 128, 16>}, {transform_indices = @transform_1, window_bounds = array<i64: 16, 16>}, {transform_indices = @transform_2, window_bounds = array<i64: 1, 16>}, {transform_indices = @transform_3, window_bounds = array<i64: 128, 16>}]} {
    %c0 = arith.constant 0 : index
    %c0_0 = arith.constant 0 : index
    %0 = vector.load %arg2[%c0, %c0_0] : memref<128x16xf32, #tpu.memory_space<vmem>>, vector<128x16xf32>
    %1 = arith.truncf %0 : vector<128x16xf32> to vector<128x16xbf16>
    %c0_1 = arith.constant 0 : index
    %c0_2 = arith.constant 0 : index
    %2 = vector.load %arg3[%c0_1, %c0_2] : memref<16x16xbf16, #tpu.memory_space<vmem>>, vector<16x16xbf16>
    %cst = arith.constant dense<0.000000e+00> : vector<128x16xf32>
    %3 = tpu.matmul %1, %2, %cst {dimension_numbers = #tpu.dot_dimension_numbers<[1], [0], [0], [1], [0, 0, 1, 1], [], []>} : vector<128x16xbf16>, vector<16x16xbf16>, vector<128x16xf32> -> vector<128x16xf32>
    %c0_3 = arith.constant 0 : index
    %c0_4 = arith.constant 0 : index
    %4 = vector.load %arg4[%c0_3, %c0_4] : memref<1x16xf32, #tpu.memory_space<vmem>>, vector<1x16xf32>
    %5 = vector.broadcast %4 : vector<1x16xf32> to vector<128x16xf32>
    %6 = arith.addf %3, %5 : vector<128x16xf32>
    %c0_5 = arith.constant 0 : index
    %c0_6 = arith.constant 0 : index
    %7 = vector.load %arg5[%c0_5, %c0_6] : memref<128x16xf32, #tpu.memory_space<vmem>>, vector<128x16xf32>
    tpu.vector_store %arg5[%c0_5, %c0_6], %6 {strides = array<i32>} : memref<128x16xf32, #tpu.memory_space<vmem>>, vector<128x16xf32>,
    return
  }
  func.func @transform_0(%arg0: i32, %arg1: i32) -> (i32, i32) {
    %c0_i32 = arith.constant 0 : i32
    %c0_i32_0 = arith.constant 0 : i32
    return %arg0, %c0_i32 : i32, i32
  }
  func.func @transform_1(%arg0: i32, %arg1: i32) -> (i32, i32) {
    %c0_i32 = arith.constant 0 : i32
    %c0_i32_0 = arith.constant 0 : i32
    return %c0_i32, %arg1 : i32, i32
  }
  func.func @transform_2(%arg0: i32, %arg1: i32) -> (i32, i32) {
    %c0_i32 = arith.constant 0 : i32
    %c0_i32_0 = arith.constant 0 : i32
    return %c0_i32, %arg1 : i32, i32
  }
  func.func @transform_3(%arg0: i32, %arg1: i32) -> (i32, i32) {
    %c0_i32 = arith.constant 0 : i32
    return %arg0, %arg1 : i32, i32
  }
}

module attributes {stable_mosaic.version = 11 : i64} {
  func.func @_mm_kernel(%arg0: i32, %arg1: i32, %arg2: memref<256x16xf32, #tpu.memory_space<vmem>>, %arg3: memref<16x8xbf16, #tpu.memory_space<vmem>>, %arg4: memref<1x8xf32, #tpu.memory_space<vmem>>, %arg5: memref<256x8xf32, #tpu.memory_space<vmem>>) attributes {dimension_semantics = [#tpu.dimension_semantics<parallel>, #tpu.dimension_semantics<parallel>], iteration_bounds = array<i64: 1, 1>, scalar_prefetch = 0 : i64, scratch_operands = 0 : i64, tpu.core_type = #tpu.core_type<tc>, window_params = [{transform_indices = @transform_0, window_bounds = array<i64: 256, 16>}, {transform_indices = @transform_1, window_bounds = array<i64: 16, 8>}, {transform_indices = @transform_2, window_bounds = array<i64: 1, 8>}, {transform_indices = @transform_3, window_bounds = array<i64: 256, 8>}]} {
    %c0 = arith.constant 0 : index
    %c0_0 = arith.constant 0 : index
    %0 = vector.load %arg2[%c0, %c0_0] : memref<256x16xf32, #tpu.memory_space<vmem>>, vector<256x16xf32>
    %1 = arith.truncf %0 : vector<256x16xf32> to vector<256x16xbf16>
    %c0_1 = arith.constant 0 : index
    %c0_2 = arith.constant 0 : index
    %2 = vector.load %arg3[%c0_1, %c0_2] : memref<16x8xbf16, #tpu.memory_space<vmem>>, vector<16x8xbf16>
    %cst = arith.constant dense<0.000000e+00> : vector<256x8xf32>
    %3 = tpu.matmul %1, %2, %cst {dimension_numbers = #tpu.dot_dimension_numbers<[1], [0], [0], [1], [0, 0, 1, 1], [], []>} : vector<256x16xbf16>, vector<16x8xbf16>, vector<256x8xf32> -> vector<256x8xf32>
    %c0_3 = arith.constant 0 : index
    %c0_4 = arith.constant 0 : index
    %4 = vector.load %arg4[%c0_3, %c0_4] : memref<1x8xf32, #tpu.memory_space<vmem>>, vector<1x8xf32>
    %5 = vector.broadcast %4 : vector<1x8xf32> to vector<256x8xf32>
    %6 = arith.addf %3, %5 : vector<256x8xf32>
    %c0_5 = arith.constant 0 : index
    %c0_6 = arith.constant 0 : index
    %7 = vector.load %arg5[%c0_5, %c0_6] : memref<256x8xf32, #tpu.memory_space<vmem>>, vector<256x8xf32>
    tpu.vector_store %arg5[%c0_5, %c0_6], %6 {strides = array<i32>} : memref<256x8xf32, #tpu.memory_space<vmem>>, vector<256x8xf32>,
    return
  }
  func.func @transform_0(%arg0: i32, %arg1: i32) -> (i32, i32) {
    %c0_i32 = arith.constant 0 : i32
    %c0_i32_0 = arith.constant 0 : i32
    return %arg0, %c0_i32 : i32, i32
  }
  func.func @transform_1(%arg0: i32, %arg1: i32) -> (i32, i32) {
    %c0_i32 = arith.constant 0 : i32
    %c0_i32_0 = arith.constant 0 : i32
    return %c0_i32, %arg1 : i32, i32
  }
  func.func @transform_2(%arg0: i32, %arg1: i32) -> (i32, i32) {
    %c0_i32 = arith.constant 0 : i32
    %c0_i32_0 = arith.constant 0 : i32
    return %c0_i32, %arg1 : i32, i32
  }
  func.func @transform_3(%arg0: i32, %arg1: i32) -> (i32, i32) {
    %c0_i32 = arith.constant 0 : i32
    return %arg0, %arg1 : i32, i32
  }
}

module attributes {stable_mosaic.version = 11 : i64} {
  func.func @_bn_stats_kernel(%arg0: i32, %arg1: memref<256x8xf32, #tpu.memory_space<vmem>>, %arg2: memref<8x8xf32, #tpu.memory_space<vmem>>, %arg3: memref<8x8xf32, #tpu.memory_space<vmem>>) attributes {dimension_semantics = [#tpu.dimension_semantics<arbitrary>], iteration_bounds = array<i64: 1>, scalar_prefetch = 0 : i64, scratch_operands = 1 : i64, tpu.core_type = #tpu.core_type<tc>, window_params = [{transform_indices = @transform_0, window_bounds = array<i64: 256, 8>}, {pipeline_mode = #tpu.pipeline_mode<synchronous>, transform_indices = @transform_1, window_bounds = array<i64: 8, 8>}]} {
    %c0_i32 = arith.constant 0 : i32
    %0 = arith.cmpi eq, %arg0, %c0_i32 : i32
    %1 = arith.extui %0 : i1 to i32
    %c0_i32_0 = arith.constant 0 : i32
    %2 = arith.cmpi ne, %1, %c0_i32_0 : i32
    scf.if %2 {
      %cst_14 = arith.constant 0.000000e+00 : f32
      %26 = vector.broadcast %cst_14 : f32 to vector<8x8xf32>
      %c0_15 = arith.constant 0 : index
      %c0_16 = arith.constant 0 : index
      %27 = vector.load %arg3[%c0_15, %c0_16] : memref<8x8xf32, #tpu.memory_space<vmem>>, vector<8x8xf32>
      tpu.vector_store %arg3[%c0_15, %c0_16], %26 {strides = array<i32>} : memref<8x8xf32, #tpu.memory_space<vmem>>, vector<8x8xf32>,
    } else {
    }
    %c0 = arith.constant 0 : index
    %c0_1 = arith.constant 0 : index
    %3 = vector.load %arg1[%c0, %c0_1] : memref<256x8xf32, #tpu.memory_space<vmem>>, vector<256x8xf32>
    %4 = tpu.iota {dimensions = array<i32: 0>} : vector<256x8xi32>
    %c256_i32 = arith.constant 256 : i32
    %5 = arith.muli %arg0, %c256_i32 : i32
    %6 = vector.broadcast %5 : i32 to vector<256x8xi32>
    %7 = arith.addi %4, %6 : vector<256x8xi32>
    %c256_i32_2 = arith.constant 256 : i32
    %8 = vector.broadcast %c256_i32_2 : i32 to vector<256x8xi32>
    %9 = arith.cmpi slt, %7, %8 : vector<256x8xi32>
    %cst = arith.constant 0.000000e+00 : f32
    %10 = vector.broadcast %cst : f32 to vector<256x8xf32>
    %11 = arith.select %9, %3, %10 : vector<256x8xi1>, vector<256x8xf32>
    %c0_3 = arith.constant 0 : index
    %c0_4 = arith.constant 0 : index
    %12 = vector.load %arg3[%c0_3, %c0_4] : memref<8x8xf32, #tpu.memory_space<vmem>>, vector<1x8xf32>
    %cst_5 = arith.constant dense<0.000000e+00> : vector<8xf32>
    %13 = vector.multi_reduction <add>, %11, %cst_5 [0] : vector<256x8xf32> to vector<8xf32>
    %14 = vector.shape_cast %13 : vector<8xf32> to vector<1x8xf32>
    %15 = arith.addf %12, %14 : vector<1x8xf32>
    %c0_6 = arith.constant 0 : index
    %c0_7 = arith.constant 0 : index
    %16 = vector.load %arg3[%c0_6, %c0_7] : memref<8x8xf32, #tpu.memory_space<vmem>>, vector<1x8xf32>
    tpu.vector_store %arg3[%c0_6, %c0_7], %15 {strides = array<i32>} : memref<8x8xf32, #tpu.memory_space<vmem>>, vector<1x8xf32>,
    %c1 = arith.constant 1 : index
    %c0_8 = arith.constant 0 : index
    %17 = vector.load %arg3[%c1, %c0_8] : memref<8x8xf32, #tpu.memory_space<vmem>>, vector<1x8xf32>
    %18 = arith.mulf %11, %11 : vector<256x8xf32>
    %cst_9 = arith.constant dense<0.000000e+00> : vector<8xf32>
    %19 = vector.multi_reduction <add>, %18, %cst_9 [0] : vector<256x8xf32> to vector<8xf32>
    %20 = vector.shape_cast %19 : vector<8xf32> to vector<1x8xf32>
    %21 = arith.addf %17, %20 : vector<1x8xf32>
    %c1_10 = arith.constant 1 : index
    %c0_11 = arith.constant 0 : index
    %22 = vector.load %arg3[%c1_10, %c0_11] : memref<8x8xf32, #tpu.memory_space<vmem>>, vector<1x8xf32>
    tpu.vector_store %arg3[%c1_10, %c0_11], %21 {strides = array<i32>} : memref<8x8xf32, #tpu.memory_space<vmem>>, vector<1x8xf32>,
    %c0_i32_12 = arith.constant 0 : i32
    %23 = arith.cmpi eq, %arg0, %c0_i32_12 : i32
    %24 = arith.extui %23 : i1 to i32
    %c0_i32_13 = arith.constant 0 : i32
    %25 = arith.cmpi ne, %24, %c0_i32_13 : i32
    scf.if %25 {
      %c0_14 = arith.constant 0 : index
      %c0_15 = arith.constant 0 : index
      %26 = vector.load %arg3[%c0_14, %c0_15] : memref<8x8xf32, #tpu.memory_space<vmem>>, vector<8x8xf32>
      %c0_16 = arith.constant 0 : index
      %c0_17 = arith.constant 0 : index
      %27 = vector.load %arg2[%c0_16, %c0_17] : memref<8x8xf32, #tpu.memory_space<vmem>>, vector<8x8xf32>
      tpu.vector_store %arg2[%c0_16, %c0_17], %26 {strides = array<i32>} : memref<8x8xf32, #tpu.memory_space<vmem>>, vector<8x8xf32>,
    } else {
    }
    return
  }
  func.func @transform_0(%arg0: i32) -> (i32, i32) {
    %c0_i32 = arith.constant 0 : i32
    %c0_i32_0 = arith.constant 0 : i32
    return %arg0, %c0_i32 : i32, i32
  }
  func.func @transform_1(%arg0: i32) -> (i32, i32) {
    %c0_i32 = arith.constant 0 : i32
    %c0_i32_0 = arith.constant 0 : i32
    %c0_i32_1 = arith.constant 0 : i32
    return %c0_i32, %c0_i32_0 : i32, i32
  }
}

module attributes {stable_mosaic.version = 11 : i64} {
  func.func @_bn_apply_kernel(%arg0: i32, %arg1: memref<256x8xf32, #tpu.memory_space<vmem>>, %arg2: memref<8x8xf32, #tpu.memory_space<vmem>>, %arg3: memref<1x8xf32, #tpu.memory_space<vmem>>, %arg4: memref<1x8xf32, #tpu.memory_space<vmem>>, %arg5: memref<256x8xf32, #tpu.memory_space<vmem>>) attributes {dimension_semantics = [#tpu.dimension_semantics<parallel>], iteration_bounds = array<i64: 1>, scalar_prefetch = 0 : i64, scratch_operands = 0 : i64, tpu.core_type = #tpu.core_type<tc>, window_params = [{transform_indices = @transform_0, window_bounds = array<i64: 256, 8>}, {pipeline_mode = #tpu.pipeline_mode<synchronous>, transform_indices = @transform_1, window_bounds = array<i64: 8, 8>}, {pipeline_mode = #tpu.pipeline_mode<synchronous>, transform_indices = @transform_2, window_bounds = array<i64: 1, 8>}, {pipeline_mode = #tpu.pipeline_mode<synchronous>, transform_indices = @transform_3, window_bounds = array<i64: 1, 8>}, {transform_indices = @transform_4, window_bounds = array<i64: 256, 8>}]} {
    %c0 = arith.constant 0 : index
    %c0_0 = arith.constant 0 : index
    %0 = vector.load %arg2[%c0, %c0_0] : memref<8x8xf32, #tpu.memory_space<vmem>>, vector<1x8xf32>
    %cst = arith.constant 3.906250e-03 : f32
    %1 = vector.broadcast %cst : f32 to vector<1x8xf32>
    %2 = arith.mulf %0, %1 : vector<1x8xf32>
    %c1 = arith.constant 1 : index
    %c0_1 = arith.constant 0 : index
    %3 = vector.load %arg2[%c1, %c0_1] : memref<8x8xf32, #tpu.memory_space<vmem>>, vector<1x8xf32>
    %cst_2 = arith.constant 3.906250e-03 : f32
    %4 = vector.broadcast %cst_2 : f32 to vector<1x8xf32>
    %5 = arith.mulf %3, %4 : vector<1x8xf32>
    %6 = arith.mulf %2, %2 : vector<1x8xf32>
    %7 = arith.subf %5, %6 : vector<1x8xf32>
    %cst_3 = arith.constant 0.000000e+00 : f32
    %8 = vector.broadcast %cst_3 : f32 to vector<1x8xf32>
    %9 = arith.maximumf %7, %8 : vector<1x8xf32>
    %cst_4 = arith.constant 9.99999974E-6 : f32
    %10 = vector.broadcast %cst_4 : f32 to vector<1x8xf32>
    %11 = arith.addf %9, %10 : vector<1x8xf32>
    %12 = math.rsqrt %11 : vector<1x8xf32>
    %c0_5 = arith.constant 0 : index
    %c0_6 = arith.constant 0 : index
    %13 = vector.load %arg1[%c0_5, %c0_6] : memref<256x8xf32, #tpu.memory_space<vmem>>, vector<256x8xf32>
    %14 = vector.broadcast %2 : vector<1x8xf32> to vector<256x8xf32>
    %15 = arith.subf %13, %14 : vector<256x8xf32>
    %c0_7 = arith.constant 0 : index
    %c0_8 = arith.constant 0 : index
    %16 = vector.load %arg3[%c0_7, %c0_8] : memref<1x8xf32, #tpu.memory_space<vmem>>, vector<1x8xf32>
    %17 = arith.mulf %12, %16 : vector<1x8xf32>
    %18 = vector.broadcast %17 : vector<1x8xf32> to vector<256x8xf32>
    %19 = arith.mulf %15, %18 : vector<256x8xf32>
    %c0_9 = arith.constant 0 : index
    %c0_10 = arith.constant 0 : index
    %20 = vector.load %arg4[%c0_9, %c0_10] : memref<1x8xf32, #tpu.memory_space<vmem>>, vector<1x8xf32>
    %21 = vector.broadcast %20 : vector<1x8xf32> to vector<256x8xf32>
    %22 = arith.addf %19, %21 : vector<256x8xf32>
    %cst_11 = arith.constant 0.000000e+00 : f32
    %23 = vector.broadcast %cst_11 : f32 to vector<256x8xf32>
    %24 = arith.maximumf %22, %23 : vector<256x8xf32>
    %c0_12 = arith.constant 0 : index
    %c0_13 = arith.constant 0 : index
    %25 = vector.load %arg5[%c0_12, %c0_13] : memref<256x8xf32, #tpu.memory_space<vmem>>, vector<256x8xf32>
    tpu.vector_store %arg5[%c0_12, %c0_13], %24 {strides = array<i32>} : memref<256x8xf32, #tpu.memory_space<vmem>>, vector<256x8xf32>,
    return
  }
  func.func @transform_0(%arg0: i32) -> (i32, i32) {
    %c0_i32 = arith.constant 0 : i32
    %c0_i32_0 = arith.constant 0 : i32
    return %arg0, %c0_i32 : i32, i32
  }
  func.func @transform_1(%arg0: i32) -> (i32, i32) {
    %c0_i32 = arith.constant 0 : i32
    %c0_i32_0 = arith.constant 0 : i32
    %c0_i32_1 = arith.constant 0 : i32
    return %c0_i32, %c0_i32_0 : i32, i32
  }
  func.func @transform_2(%arg0: i32) -> (i32, i32) {
    %c0_i32 = arith.constant 0 : i32
    %c0_i32_0 = arith.constant 0 : i32
    %c0_i32_1 = arith.constant 0 : i32
    return %c0_i32, %c0_i32_0 : i32, i32
  }
  func.func @transform_3(%arg0: i32) -> (i32, i32) {
    %c0_i32 = arith.constant 0 : i32
    %c0_i32_0 = arith.constant 0 : i32
    %c0_i32_1 = arith.constant 0 : i32
    return %c0_i32, %c0_i32_0 : i32, i32
  }
  func.func @transform_4(%arg0: i32) -> (i32, i32) {
    %c0_i32 = arith.constant 0 : i32
    %c0_i32_0 = arith.constant 0 : i32
    return %arg0, %c0_i32 : i32, i32
  }
}

module attributes {stable_mosaic.version = 11 : i64} {
  func.func @_mm_kernel(%arg0: i32, %arg1: i32, %arg2: memref<256x200xbf16, #tpu.memory_space<vmem>>, %arg3: memref<200x8xbf16, #tpu.memory_space<vmem>>, %arg4: memref<1x8xf32, #tpu.memory_space<vmem>>, %arg5: memref<256x8xf32, #tpu.memory_space<vmem>>) attributes {dimension_semantics = [#tpu.dimension_semantics<parallel>, #tpu.dimension_semantics<parallel>], iteration_bounds = array<i64: 1, 1>, scalar_prefetch = 0 : i64, scratch_operands = 0 : i64, tpu.core_type = #tpu.core_type<tc>, window_params = [{transform_indices = @transform_0, window_bounds = array<i64: 256, 200>}, {transform_indices = @transform_1, window_bounds = array<i64: 200, 8>}, {transform_indices = @transform_2, window_bounds = array<i64: 1, 8>}, {transform_indices = @transform_3, window_bounds = array<i64: 256, 8>}]} {
    %c0 = arith.constant 0 : index
    %c0_0 = arith.constant 0 : index
    %0 = vector.load %arg2[%c0, %c0_0] : memref<256x200xbf16, #tpu.memory_space<vmem>>, vector<256x200xbf16>
    %c0_1 = arith.constant 0 : index
    %c0_2 = arith.constant 0 : index
    %1 = vector.load %arg3[%c0_1, %c0_2] : memref<200x8xbf16, #tpu.memory_space<vmem>>, vector<200x8xbf16>
    %cst = arith.constant dense<0.000000e+00> : vector<256x8xf32>
    %2 = tpu.matmul %0, %1, %cst {dimension_numbers = #tpu.dot_dimension_numbers<[1], [0], [0], [1], [0, 0, 1, 1], [], []>} : vector<256x200xbf16>, vector<200x8xbf16>, vector<256x8xf32> -> vector<256x8xf32>
    %c0_3 = arith.constant 0 : index
    %c0_4 = arith.constant 0 : index
    %3 = vector.load %arg4[%c0_3, %c0_4] : memref<1x8xf32, #tpu.memory_space<vmem>>, vector<1x8xf32>
    %4 = vector.broadcast %3 : vector<1x8xf32> to vector<256x8xf32>
    %5 = arith.addf %2, %4 : vector<256x8xf32>
    %c0_5 = arith.constant 0 : index
    %c0_6 = arith.constant 0 : index
    %6 = vector.load %arg5[%c0_5, %c0_6] : memref<256x8xf32, #tpu.memory_space<vmem>>, vector<256x8xf32>
    tpu.vector_store %arg5[%c0_5, %c0_6], %5 {strides = array<i32>} : memref<256x8xf32, #tpu.memory_space<vmem>>, vector<256x8xf32>,
    return
  }
  func.func @transform_0(%arg0: i32, %arg1: i32) -> (i32, i32) {
    %c0_i32 = arith.constant 0 : i32
    %c0_i32_0 = arith.constant 0 : i32
    return %arg0, %c0_i32 : i32, i32
  }
  func.func @transform_1(%arg0: i32, %arg1: i32) -> (i32, i32) {
    %c0_i32 = arith.constant 0 : i32
    %c0_i32_0 = arith.constant 0 : i32
    return %c0_i32, %arg1 : i32, i32
  }
  func.func @transform_2(%arg0: i32, %arg1: i32) -> (i32, i32) {
    %c0_i32 = arith.constant 0 : i32
    %c0_i32_0 = arith.constant 0 : i32
    return %c0_i32, %arg1 : i32, i32
  }
  func.func @transform_3(%arg0: i32, %arg1: i32) -> (i32, i32) {
    %c0_i32 = arith.constant 0 : i32
    return %arg0, %arg1 : i32, i32
  }
}

module attributes {stable_mosaic.version = 11 : i64} {
  func.func @_mm_kernel(%arg0: i32, %arg1: i32, %arg2: memref<256x8xf32, #tpu.memory_space<vmem>>, %arg3: memref<8x4xbf16, #tpu.memory_space<vmem>>, %arg4: memref<1x4xf32, #tpu.memory_space<vmem>>, %arg5: memref<256x4xf32, #tpu.memory_space<vmem>>) attributes {dimension_semantics = [#tpu.dimension_semantics<parallel>, #tpu.dimension_semantics<parallel>], iteration_bounds = array<i64: 1, 1>, scalar_prefetch = 0 : i64, scratch_operands = 0 : i64, tpu.core_type = #tpu.core_type<tc>, window_params = [{transform_indices = @transform_0, window_bounds = array<i64: 256, 8>}, {transform_indices = @transform_1, window_bounds = array<i64: 8, 4>}, {transform_indices = @transform_2, window_bounds = array<i64: 1, 4>}, {transform_indices = @transform_3, window_bounds = array<i64: 256, 4>}]} {
    %c0 = arith.constant 0 : index
    %c0_0 = arith.constant 0 : index
    %0 = vector.load %arg2[%c0, %c0_0] : memref<256x8xf32, #tpu.memory_space<vmem>>, vector<256x8xf32>
    %1 = arith.truncf %0 : vector<256x8xf32> to vector<256x8xbf16>
    %c0_1 = arith.constant 0 : index
    %c0_2 = arith.constant 0 : index
    %2 = vector.load %arg3[%c0_1, %c0_2] : memref<8x4xbf16, #tpu.memory_space<vmem>>, vector<8x4xbf16>
    %cst = arith.constant dense<0.000000e+00> : vector<256x4xf32>
    %3 = tpu.matmul %1, %2, %cst {dimension_numbers = #tpu.dot_dimension_numbers<[1], [0], [0], [1], [0, 0, 1, 1], [], []>} : vector<256x8xbf16>, vector<8x4xbf16>, vector<256x4xf32> -> vector<256x4xf32>
    %c0_3 = arith.constant 0 : index
    %c0_4 = arith.constant 0 : index
    %4 = vector.load %arg4[%c0_3, %c0_4] : memref<1x4xf32, #tpu.memory_space<vmem>>, vector<1x4xf32>
    %5 = vector.broadcast %4 : vector<1x4xf32> to vector<256x4xf32>
    %6 = arith.addf %3, %5 : vector<256x4xf32>
    %c0_5 = arith.constant 0 : index
    %c0_6 = arith.constant 0 : index
    %7 = vector.load %arg5[%c0_5, %c0_6] : memref<256x4xf32, #tpu.memory_space<vmem>>, vector<256x4xf32>
    tpu.vector_store %arg5[%c0_5, %c0_6], %6 {strides = array<i32>} : memref<256x4xf32, #tpu.memory_space<vmem>>, vector<256x4xf32>,
    return
  }
  func.func @transform_0(%arg0: i32, %arg1: i32) -> (i32, i32) {
    %c0_i32 = arith.constant 0 : i32
    %c0_i32_0 = arith.constant 0 : i32
    return %arg0, %c0_i32 : i32, i32
  }
  func.func @transform_1(%arg0: i32, %arg1: i32) -> (i32, i32) {
    %c0_i32 = arith.constant 0 : i32
    %c0_i32_0 = arith.constant 0 : i32
    return %c0_i32, %arg1 : i32, i32
  }
  func.func @transform_2(%arg0: i32, %arg1: i32) -> (i32, i32) {
    %c0_i32 = arith.constant 0 : i32
    %c0_i32_0 = arith.constant 0 : i32
    return %c0_i32, %arg1 : i32, i32
  }
  func.func @transform_3(%arg0: i32, %arg1: i32) -> (i32, i32) {
    %c0_i32 = arith.constant 0 : i32
    return %arg0, %arg1 : i32, i32
  }
}

module attributes {stable_mosaic.version = 11 : i64} {
  func.func @_mm_kernel(%arg0: i32, %arg1: i32, %arg2: memref<16x64xf32, #tpu.memory_space<vmem>>, %arg3: memref<64x64xbf16, #tpu.memory_space<vmem>>, %arg4: memref<1x64xf32, #tpu.memory_space<vmem>>, %arg5: memref<16x64xf32, #tpu.memory_space<vmem>>) attributes {dimension_semantics = [#tpu.dimension_semantics<parallel>, #tpu.dimension_semantics<parallel>], iteration_bounds = array<i64: 1, 1>, scalar_prefetch = 0 : i64, scratch_operands = 0 : i64, tpu.core_type = #tpu.core_type<tc>, window_params = [{transform_indices = @transform_0, window_bounds = array<i64: 16, 64>}, {transform_indices = @transform_1, window_bounds = array<i64: 64, 64>}, {transform_indices = @transform_2, window_bounds = array<i64: 1, 64>}, {transform_indices = @transform_3, window_bounds = array<i64: 16, 64>}]} {
    %c0 = arith.constant 0 : index
    %c0_0 = arith.constant 0 : index
    %0 = vector.load %arg2[%c0, %c0_0] : memref<16x64xf32, #tpu.memory_space<vmem>>, vector<16x64xf32>
    %1 = arith.truncf %0 : vector<16x64xf32> to vector<16x64xbf16>
    %c0_1 = arith.constant 0 : index
    %c0_2 = arith.constant 0 : index
    %2 = vector.load %arg3[%c0_1, %c0_2] : memref<64x64xbf16, #tpu.memory_space<vmem>>, vector<64x64xbf16>
    %cst = arith.constant dense<0.000000e+00> : vector<16x64xf32>
    %3 = tpu.matmul %1, %2, %cst {dimension_numbers = #tpu.dot_dimension_numbers<[1], [0], [0], [1], [0, 0, 1, 1], [], []>} : vector<16x64xbf16>, vector<64x64xbf16>, vector<16x64xf32> -> vector<16x64xf32>
    %c0_3 = arith.constant 0 : index
    %c0_4 = arith.constant 0 : index
    %4 = vector.load %arg4[%c0_3, %c0_4] : memref<1x64xf32, #tpu.memory_space<vmem>>, vector<1x64xf32>
    %5 = vector.broadcast %4 : vector<1x64xf32> to vector<16x64xf32>
    %6 = arith.addf %3, %5 : vector<16x64xf32>
    %c0_5 = arith.constant 0 : index
    %c0_6 = arith.constant 0 : index
    %7 = vector.load %arg5[%c0_5, %c0_6] : memref<16x64xf32, #tpu.memory_space<vmem>>, vector<16x64xf32>
    tpu.vector_store %arg5[%c0_5, %c0_6], %6 {strides = array<i32>} : memref<16x64xf32, #tpu.memory_space<vmem>>, vector<16x64xf32>,
    return
  }
  func.func @transform_0(%arg0: i32, %arg1: i32) -> (i32, i32) {
    %c0_i32 = arith.constant 0 : i32
    %c0_i32_0 = arith.constant 0 : i32
    return %arg0, %c0_i32 : i32, i32
  }
  func.func @transform_1(%arg0: i32, %arg1: i32) -> (i32, i32) {
    %c0_i32 = arith.constant 0 : i32
    %c0_i32_0 = arith.constant 0 : i32
    return %c0_i32, %arg1 : i32, i32
  }
  func.func @transform_2(%arg0: i32, %arg1: i32) -> (i32, i32) {
    %c0_i32 = arith.constant 0 : i32
    %c0_i32_0 = arith.constant 0 : i32
    return %c0_i32, %arg1 : i32, i32
  }
  func.func @transform_3(%arg0: i32, %arg1: i32) -> (i32, i32) {
    %c0_i32 = arith.constant 0 : i32
    return %arg0, %arg1 : i32, i32
  }
}

module attributes {stable_mosaic.version = 11 : i64} {
  func.func @_lstm_kernel(%arg0: i32, %arg1: memref<8x2x64xf32, #tpu.memory_space<vmem>>, %arg2: memref<16x64xbf16, #tpu.memory_space<vmem>>, %arg3: memref<8x2x16xf32, #tpu.memory_space<vmem>>, %arg4: memref<2x16xf32, #tpu.memory_space<vmem>>, %arg5: memref<2x16xf32, #tpu.memory_space<vmem>>) attributes {dimension_semantics = [#tpu.dimension_semantics<arbitrary>], iteration_bounds = array<i64: 1>, scalar_prefetch = 0 : i64, scratch_operands = 2 : i64, tpu.core_type = #tpu.core_type<tc>, window_params = [{pipeline_mode = #tpu.pipeline_mode<synchronous>, transform_indices = @transform_0, window_bounds = array<i64: 8, 2, 64>}, {pipeline_mode = #tpu.pipeline_mode<synchronous>, transform_indices = @transform_1, window_bounds = array<i64: 16, 64>}, {pipeline_mode = #tpu.pipeline_mode<synchronous>, transform_indices = @transform_2, window_bounds = array<i64: 8, 2, 16>}]} {
    %cst = arith.constant 0.000000e+00 : f32
    %0 = vector.broadcast %cst : f32 to vector<2x16xf32>
    %c0 = arith.constant 0 : index
    %c0_0 = arith.constant 0 : index
    %1 = vector.load %arg4[%c0, %c0_0] : memref<2x16xf32, #tpu.memory_space<vmem>>, vector<2x16xf32>
    tpu.vector_store %arg4[%c0, %c0_0], %0 {strides = array<i32>} : memref<2x16xf32, #tpu.memory_space<vmem>>, vector<2x16xf32>,
    %cst_1 = arith.constant 0.000000e+00 : f32
    %2 = vector.broadcast %cst_1 : f32 to vector<2x16xf32>
    %c0_2 = arith.constant 0 : index
    %c0_3 = arith.constant 0 : index
    %3 = vector.load %arg5[%c0_2, %c0_3] : memref<2x16xf32, #tpu.memory_space<vmem>>, vector<2x16xf32>
    tpu.vector_store %arg5[%c0_2, %c0_3], %2 {strides = array<i32>} : memref<2x16xf32, #tpu.memory_space<vmem>>, vector<2x16xf32>,
    %c0_i32 = arith.constant 0 : i32
    %c8_i32 = arith.constant 8 : i32
    %4 = arith.addi %c0_i32, %c8_i32 : i32
    %c1_i32 = arith.constant 1 : i32
    scf.for %arg6 = %c0_i32 to %4 step %c1_i32  : i32 {
      %5 = arith.index_cast %arg6 : i32 to index
      %c0_5 = arith.constant 0 : index
      %c0_6 = arith.constant 0 : index
      %6 = vector.load %arg1[%5, %c0_5, %c0_6] : memref<8x2x64xf32, #tpu.memory_space<vmem>>, vector<1x2x64xf32>
      %7 = vector.shape_cast %6 : vector<1x2x64xf32> to vector<2x64xf32>
      %c0_7 = arith.constant 0 : index
      %c0_8 = arith.constant 0 : index
      %8 = vector.load %arg4[%c0_7, %c0_8] : memref<2x16xf32, #tpu.memory_space<vmem>>, vector<2x16xf32>
      %9 = arith.truncf %8 : vector<2x16xf32> to vector<2x16xbf16>
      %c0_9 = arith.constant 0 : index
      %c0_10 = arith.constant 0 : index
      %10 = vector.load %arg2[%c0_9, %c0_10] : memref<16x64xbf16, #tpu.memory_space<vmem>>, vector<16x64xbf16>
      %cst_11 = arith.constant dense<0.000000e+00> : vector<2x64xf32>
      %11 = tpu.matmul %9, %10, %cst_11 {dimension_numbers = #tpu.dot_dimension_numbers<[1], [0], [0], [1], [0, 0, 1, 1], [], []>} : vector<2x16xbf16>, vector<16x64xbf16>, vector<2x64xf32> -> vector<2x64xf32>
      %12 = arith.addf %7, %11 : vector<2x64xf32>
      %13 = vector.extract_strided_slice %12 {offsets = [0, 0], sizes = [2, 16], strides = [1, 1]} : vector<2x64xf32> to vector<2x16xf32>
      %14 = arith.negf %13 : vector<2x16xf32>
      %15 = math.exp %14 : vector<2x16xf32>
      %cst_12 = arith.constant 1.000000e+00 : f32
      %16 = vector.broadcast %cst_12 : f32 to vector<2x16xf32>
      %17 = arith.addf %16, %15 : vector<2x16xf32>
      %18 = arith.divf %16, %17 : vector<2x16xf32>
      %19 = vector.extract_strided_slice %12 {offsets = [0, 16], sizes = [2, 16], strides = [1, 1]} : vector<2x64xf32> to vector<2x16xf32>
      %20 = arith.negf %19 : vector<2x16xf32>
      %21 = math.exp %20 : vector<2x16xf32>
      %cst_13 = arith.constant 1.000000e+00 : f32
      %22 = vector.broadcast %cst_13 : f32 to vector<2x16xf32>
      %23 = arith.addf %22, %21 : vector<2x16xf32>
      %24 = arith.divf %22, %23 : vector<2x16xf32>
      %25 = vector.extract_strided_slice %12 {offsets = [0, 32], sizes = [2, 16], strides = [1, 1]} : vector<2x64xf32> to vector<2x16xf32>
      %26 = math.tanh %25 : vector<2x16xf32>
      %27 = vector.extract_strided_slice %12 {offsets = [0, 48], sizes = [2, 16], strides = [1, 1]} : vector<2x64xf32> to vector<2x16xf32>
      %28 = arith.negf %27 : vector<2x16xf32>
      %29 = math.exp %28 : vector<2x16xf32>
      %cst_14 = arith.constant 1.000000e+00 : f32
      %30 = vector.broadcast %cst_14 : f32 to vector<2x16xf32>
      %31 = arith.addf %30, %29 : vector<2x16xf32>
      %32 = arith.divf %30, %31 : vector<2x16xf32>
      %c0_15 = arith.constant 0 : index
      %c0_16 = arith.constant 0 : index
      %33 = vector.load %arg5[%c0_15, %c0_16] : memref<2x16xf32, #tpu.memory_space<vmem>>, vector<2x16xf32>
      %34 = arith.mulf %24, %33 : vector<2x16xf32>
      %35 = arith.mulf %18, %26 : vector<2x16xf32>
      %36 = arith.addf %34, %35 : vector<2x16xf32>
      %37 = math.tanh %36 : vector<2x16xf32>
      %38 = arith.mulf %32, %37 : vector<2x16xf32>
      %c0_17 = arith.constant 0 : index
      %c0_18 = arith.constant 0 : index
      %39 = vector.load %arg5[%c0_17, %c0_18] : memref<2x16xf32, #tpu.memory_space<vmem>>, vector<2x16xf32>
      tpu.vector_store %arg5[%c0_17, %c0_18], %36 {strides = array<i32>} : memref<2x16xf32, #tpu.memory_space<vmem>>, vector<2x16xf32>,
      %c0_19 = arith.constant 0 : index
      %c0_20 = arith.constant 0 : index
      %40 = vector.load %arg4[%c0_19, %c0_20] : memref<2x16xf32, #tpu.memory_space<vmem>>, vector<2x16xf32>
      tpu.vector_store %arg4[%c0_19, %c0_20], %38 {strides = array<i32>} : memref<2x16xf32, #tpu.memory_space<vmem>>, vector<2x16xf32>,
      %41 = arith.index_cast %arg6 : i32 to index
      %c0_21 = arith.constant 0 : index
      %c0_22 = arith.constant 0 : index
      %42 = vector.load %arg3[%41, %c0_21, %c0_22] : memref<8x2x16xf32, #tpu.memory_space<vmem>>, vector<1x2x16xf32>
      %43 = vector.shape_cast %42 : vector<1x2x16xf32> to vector<2x16xf32>
      %44 = vector.shape_cast %38 : vector<2x16xf32> to vector<1x2x16xf32>
      tpu.vector_store %arg3[%41, %c0_21, %c0_22], %44 {strides = array<i32>} : memref<8x2x16xf32, #tpu.memory_space<vmem>>, vector<1x2x16xf32>,
    }
    %c8_i32_4 = arith.constant 8 : i32
    return
  }
  func.func @transform_0(%arg0: i32) -> (i32, i32, i32) {
    %c0_i32 = arith.constant 0 : i32
    %c0_i32_0 = arith.constant 0 : i32
    %c0_i32_1 = arith.constant 0 : i32
    %c0_i32_2 = arith.constant 0 : i32
    return %c0_i32, %c0_i32_0, %c0_i32_1 : i32, i32, i32
  }
  func.func @transform_1(%arg0: i32) -> (i32, i32) {
    %c0_i32 = arith.constant 0 : i32
    %c0_i32_0 = arith.constant 0 : i32
    %c0_i32_1 = arith.constant 0 : i32
    return %c0_i32, %c0_i32_0 : i32, i32
  }
  func.func @transform_2(%arg0: i32) -> (i32, i32, i32) {
    %c0_i32 = arith.constant 0 : i32
    %c0_i32_0 = arith.constant 0 : i32
    %c0_i32_1 = arith.constant 0 : i32
    %c0_i32_2 = arith.constant 0 : i32
    return %c0_i32, %c0_i32_0, %c0_i32_1 : i32, i32, i32
  }
}

module attributes {stable_mosaic.version = 11 : i64} {
  func.func @_mm_kernel(%arg0: i32, %arg1: i32, %arg2: memref<16x32xf32, #tpu.memory_space<vmem>>, %arg3: memref<32x16xbf16, #tpu.memory_space<vmem>>, %arg4: memref<1x16xf32, #tpu.memory_space<vmem>>, %arg5: memref<16x16xf32, #tpu.memory_space<vmem>>) attributes {dimension_semantics = [#tpu.dimension_semantics<parallel>, #tpu.dimension_semantics<parallel>], iteration_bounds = array<i64: 1, 1>, scalar_prefetch = 0 : i64, scratch_operands = 0 : i64, tpu.core_type = #tpu.core_type<tc>, window_params = [{transform_indices = @transform_0, window_bounds = array<i64: 16, 32>}, {transform_indices = @transform_1, window_bounds = array<i64: 32, 16>}, {transform_indices = @transform_2, window_bounds = array<i64: 1, 16>}, {transform_indices = @transform_3, window_bounds = array<i64: 16, 16>}]} {
    %c0 = arith.constant 0 : index
    %c0_0 = arith.constant 0 : index
    %0 = vector.load %arg2[%c0, %c0_0] : memref<16x32xf32, #tpu.memory_space<vmem>>, vector<16x32xf32>
    %1 = arith.truncf %0 : vector<16x32xf32> to vector<16x32xbf16>
    %c0_1 = arith.constant 0 : index
    %c0_2 = arith.constant 0 : index
    %2 = vector.load %arg3[%c0_1, %c0_2] : memref<32x16xbf16, #tpu.memory_space<vmem>>, vector<32x16xbf16>
    %cst = arith.constant dense<0.000000e+00> : vector<16x16xf32>
    %3 = tpu.matmul %1, %2, %cst {dimension_numbers = #tpu.dot_dimension_numbers<[1], [0], [0], [1], [0, 0, 1, 1], [], []>} : vector<16x32xbf16>, vector<32x16xbf16>, vector<16x16xf32> -> vector<16x16xf32>
    %c0_3 = arith.constant 0 : index
    %c0_4 = arith.constant 0 : index
    %4 = vector.load %arg4[%c0_3, %c0_4] : memref<1x16xf32, #tpu.memory_space<vmem>>, vector<1x16xf32>
    %5 = vector.broadcast %4 : vector<1x16xf32> to vector<16x16xf32>
    %6 = arith.addf %3, %5 : vector<16x16xf32>
    %cst_5 = arith.constant 0.000000e+00 : f32
    %7 = vector.broadcast %cst_5 : f32 to vector<16x16xf32>
    %8 = arith.maximumf %6, %7 : vector<16x16xf32>
    %c0_6 = arith.constant 0 : index
    %c0_7 = arith.constant 0 : index
    %9 = vector.load %arg5[%c0_6, %c0_7] : memref<16x16xf32, #tpu.memory_space<vmem>>, vector<16x16xf32>
    tpu.vector_store %arg5[%c0_6, %c0_7], %8 {strides = array<i32>} : memref<16x16xf32, #tpu.memory_space<vmem>>, vector<16x16xf32>,
    return
  }
  func.func @transform_0(%arg0: i32, %arg1: i32) -> (i32, i32) {
    %c0_i32 = arith.constant 0 : i32
    %c0_i32_0 = arith.constant 0 : i32
    return %arg0, %c0_i32 : i32, i32
  }
  func.func @transform_1(%arg0: i32, %arg1: i32) -> (i32, i32) {
    %c0_i32 = arith.constant 0 : i32
    %c0_i32_0 = arith.constant 0 : i32
    return %c0_i32, %arg1 : i32, i32
  }
  func.func @transform_2(%arg0: i32, %arg1: i32) -> (i32, i32) {
    %c0_i32 = arith.constant 0 : i32
    %c0_i32_0 = arith.constant 0 : i32
    return %c0_i32, %arg1 : i32, i32
  }
  func.func @transform_3(%arg0: i32, %arg1: i32) -> (i32, i32) {
    %c0_i32 = arith.constant 0 : i32
    return %arg0, %arg1 : i32, i32
  }
}

module attributes {stable_mosaic.version = 11 : i64} {
  func.func @_mm_kernel(%arg0: i32, %arg1: i32, %arg2: memref<16x16xf32, #tpu.memory_space<vmem>>, %arg3: memref<16x16xbf16, #tpu.memory_space<vmem>>, %arg4: memref<1x16xf32, #tpu.memory_space<vmem>>, %arg5: memref<16x16xf32, #tpu.memory_space<vmem>>) attributes {dimension_semantics = [#tpu.dimension_semantics<parallel>, #tpu.dimension_semantics<parallel>], iteration_bounds = array<i64: 1, 1>, scalar_prefetch = 0 : i64, scratch_operands = 0 : i64, tpu.core_type = #tpu.core_type<tc>, window_params = [{transform_indices = @transform_0, window_bounds = array<i64: 16, 16>}, {transform_indices = @transform_1, window_bounds = array<i64: 16, 16>}, {transform_indices = @transform_2, window_bounds = array<i64: 1, 16>}, {transform_indices = @transform_3, window_bounds = array<i64: 16, 16>}]} {
    %c0 = arith.constant 0 : index
    %c0_0 = arith.constant 0 : index
    %0 = vector.load %arg2[%c0, %c0_0] : memref<16x16xf32, #tpu.memory_space<vmem>>, vector<16x16xf32>
    %1 = arith.truncf %0 : vector<16x16xf32> to vector<16x16xbf16>
    %c0_1 = arith.constant 0 : index
    %c0_2 = arith.constant 0 : index
    %2 = vector.load %arg3[%c0_1, %c0_2] : memref<16x16xbf16, #tpu.memory_space<vmem>>, vector<16x16xbf16>
    %cst = arith.constant dense<0.000000e+00> : vector<16x16xf32>
    %3 = tpu.matmul %1, %2, %cst {dimension_numbers = #tpu.dot_dimension_numbers<[1], [0], [0], [1], [0, 0, 1, 1], [], []>} : vector<16x16xbf16>, vector<16x16xbf16>, vector<16x16xf32> -> vector<16x16xf32>
    %c0_3 = arith.constant 0 : index
    %c0_4 = arith.constant 0 : index
    %4 = vector.load %arg4[%c0_3, %c0_4] : memref<1x16xf32, #tpu.memory_space<vmem>>, vector<1x16xf32>
    %5 = vector.broadcast %4 : vector<1x16xf32> to vector<16x16xf32>
    %6 = arith.addf %3, %5 : vector<16x16xf32>
    %cst_5 = arith.constant 0.000000e+00 : f32
    %7 = vector.broadcast %cst_5 : f32 to vector<16x16xf32>
    %8 = arith.maximumf %6, %7 : vector<16x16xf32>
    %c0_6 = arith.constant 0 : index
    %c0_7 = arith.constant 0 : index
    %9 = vector.load %arg5[%c0_6, %c0_7] : memref<16x16xf32, #tpu.memory_space<vmem>>, vector<16x16xf32>
    tpu.vector_store %arg5[%c0_6, %c0_7], %8 {strides = array<i32>} : memref<16x16xf32, #tpu.memory_space<vmem>>, vector<16x16xf32>,
    return
  }
  func.func @transform_0(%arg0: i32, %arg1: i32) -> (i32, i32) {
    %c0_i32 = arith.constant 0 : i32
    %c0_i32_0 = arith.constant 0 : i32
    return %arg0, %c0_i32 : i32, i32
  }
  func.func @transform_1(%arg0: i32, %arg1: i32) -> (i32, i32) {
    %c0_i32 = arith.constant 0 : i32
    %c0_i32_0 = arith.constant 0 : i32
    return %c0_i32, %arg1 : i32, i32
  }
  func.func @transform_2(%arg0: i32, %arg1: i32) -> (i32, i32) {
    %c0_i32 = arith.constant 0 : i32
    %c0_i32_0 = arith.constant 0 : i32
    return %c0_i32, %arg1 : i32, i32
  }
  func.func @transform_3(%arg0: i32, %arg1: i32) -> (i32, i32) {
    %c0_i32 = arith.constant 0 : i32
    return %arg0, %arg1 : i32, i32
  }
}

module attributes {stable_mosaic.version = 11 : i64} {
  func.func @_mm_kernel(%arg0: i32, %arg1: i32, %arg2: memref<16x16xf32, #tpu.memory_space<vmem>>, %arg3: memref<16x32xbf16, #tpu.memory_space<vmem>>, %arg4: memref<1x32xf32, #tpu.memory_space<vmem>>, %arg5: memref<16x32xf32, #tpu.memory_space<vmem>>) attributes {dimension_semantics = [#tpu.dimension_semantics<parallel>, #tpu.dimension_semantics<parallel>], iteration_bounds = array<i64: 1, 1>, scalar_prefetch = 0 : i64, scratch_operands = 0 : i64, tpu.core_type = #tpu.core_type<tc>, window_params = [{transform_indices = @transform_0, window_bounds = array<i64: 16, 16>}, {transform_indices = @transform_1, window_bounds = array<i64: 16, 32>}, {transform_indices = @transform_2, window_bounds = array<i64: 1, 32>}, {transform_indices = @transform_3, window_bounds = array<i64: 16, 32>}]} {
    %c0 = arith.constant 0 : index
    %c0_0 = arith.constant 0 : index
    %0 = vector.load %arg2[%c0, %c0_0] : memref<16x16xf32, #tpu.memory_space<vmem>>, vector<16x16xf32>
    %1 = arith.truncf %0 : vector<16x16xf32> to vector<16x16xbf16>
    %c0_1 = arith.constant 0 : index
    %c0_2 = arith.constant 0 : index
    %2 = vector.load %arg3[%c0_1, %c0_2] : memref<16x32xbf16, #tpu.memory_space<vmem>>, vector<16x32xbf16>
    %cst = arith.constant dense<0.000000e+00> : vector<16x32xf32>
    %3 = tpu.matmul %1, %2, %cst {dimension_numbers = #tpu.dot_dimension_numbers<[1], [0], [0], [1], [0, 0, 1, 1], [], []>} : vector<16x16xbf16>, vector<16x32xbf16>, vector<16x32xf32> -> vector<16x32xf32>
    %c0_3 = arith.constant 0 : index
    %c0_4 = arith.constant 0 : index
    %4 = vector.load %arg4[%c0_3, %c0_4] : memref<1x32xf32, #tpu.memory_space<vmem>>, vector<1x32xf32>
    %5 = vector.broadcast %4 : vector<1x32xf32> to vector<16x32xf32>
    %6 = arith.addf %3, %5 : vector<16x32xf32>
    %7 = arith.negf %6 : vector<16x32xf32>
    %8 = math.exp %7 : vector<16x32xf32>
    %cst_5 = arith.constant 1.000000e+00 : f32
    %9 = vector.broadcast %cst_5 : f32 to vector<16x32xf32>
    %10 = arith.addf %9, %8 : vector<16x32xf32>
    %11 = arith.divf %9, %10 : vector<16x32xf32>
    %c0_6 = arith.constant 0 : index
    %c0_7 = arith.constant 0 : index
    %12 = vector.load %arg5[%c0_6, %c0_7] : memref<16x32xf32, #tpu.memory_space<vmem>>, vector<16x32xf32>
    tpu.vector_store %arg5[%c0_6, %c0_7], %11 {strides = array<i32>} : memref<16x32xf32, #tpu.memory_space<vmem>>, vector<16x32xf32>,
    return
  }
  func.func @transform_0(%arg0: i32, %arg1: i32) -> (i32, i32) {
    %c0_i32 = arith.constant 0 : i32
    %c0_i32_0 = arith.constant 0 : i32
    return %arg0, %c0_i32 : i32, i32
  }
  func.func @transform_1(%arg0: i32, %arg1: i32) -> (i32, i32) {
    %c0_i32 = arith.constant 0 : i32
    %c0_i32_0 = arith.constant 0 : i32
    return %c0_i32, %arg1 : i32, i32
  }
  func.func @transform_2(%arg0: i32, %arg1: i32) -> (i32, i32) {
    %c0_i32 = arith.constant 0 : i32
    %c0_i32_0 = arith.constant 0 : i32
    return %c0_i32, %arg1 : i32, i32
  }
  func.func @transform_3(%arg0: i32, %arg1: i32) -> (i32, i32) {
    %c0_i32 = arith.constant 0 : i32
    return %arg0, %arg1 : i32, i32
  }
}

</mosaic_0001>

<bundles_post_ra>
// kernel: phasen_fwd.103
= control target key start
LH: loop header
LB: loop body
LE: loop exit
PB: predicated region body
PF: predicated region fallthrough
CT: control target
= control target key end

     0   :  { %vm190_vm0 = vcmask 1046528   ;;  %vm141_vm1 = vcmask 113664   ;;  %vm355_vm2 = vcmask 64512   ;;  %s750_s1 = inlined_call_operand.vmem [shape: bf16[14,8], index: 1, kind: input, shape index: {}]   ;;  %s751_s0 = inlined_call_operand.vmem [shape: bf16[256,14], index: 0, kind: input, shape index: {}]   ;;  %s752_s2 = inlined_call_operand.vmem [shape: f32[1,8], index: 2, kind: input, shape index: {}]   ;;  %s753_s3 = inlined_call_operand.vmem [shape: f32[256,8], index: 3, kind: output, shape index: {}]  }
   0x1   :  { %v481_v0 = vld [vmem:[%s750_s1] sm:$0x7f]   ;;  %v484_v4 = vld [vmem:[%s751_s0 + $0x8] sm:$0xff]   ;;  %v486_v6 = vld [vmem:[%s751_s0 + $0x10] sm:$0xff]  }
   0x2   :  { %v482_v1 = vld [vmem:[%s751_s0] sm:$0xff]   ;;  %479 = vmatprep.subr.msk.bf16.mxu0 %vm190_vm0, %v481_v0  ;;  %480 = vmatprep.subr.msk.bf16.mxu1 %vm190_vm0, %v481_v0  ;;  %v192_v2 = vsel %vm190_vm0, %v481_v0, 0  ;;  %v485_v5 = vld [vmem:[%s751_s0 + $0x48] sm:$0xff]   ;;  %v487_v7 = vld [vmem:[%s751_s0 + $0x50] sm:$0xff]  }
   0x3   :  { %v483_v3 = vld [vmem:[%s751_s0 + $0x40] sm:$0xff]   ;;  %444 = vmatpush3.bf16.msra.mxu0 %v192_v2  ;;  %478 = vmatpush3.bf16.msra.mxu1 %v192_v2  ;;  %v488_v8 = vld [vmem:[%s751_s0 + $0x18] sm:$0xff]   ;;  %v492_v12 = vld [vmem:[%s751_s0 + $0x28] sm:$0xff]  }
   0x4   :  { %445 = vmatprep.mubr.msk.bf16.mxu0 %vm141_vm1, %v482_v1  ;;  %461 = vmatprep.mubr.msk.bf16.mxu1 %vm141_vm1, %v483_v3  ;;  %v489_v9 = vld [vmem:[%s751_s0 + $0x58] sm:$0xff]   ;;  %v490_v10 = vld [vmem:[%s751_s0 + $0x20] sm:$0xff]   ;;  %v493_v13 = vld [vmem:[%s751_s0 + $0x68] sm:$0xff]  }
   0x5   :  { %v491_v11 = vld [vmem:[%s751_s0 + $0x60] sm:$0xff]   ;;  %v494_v14 = vld [vmem:[%s751_s0 + $0x30] sm:$0xff]   ;;  %v496_v16 = vld [vmem:[%s751_s0 + $0x38] sm:$0xff]  }
   0x6   :  { %446 = vmatmul.mubr.msk.bf16.vlgmr.msra.gmra.mrb[0].mxu0 %vm141_vm1, %v484_v4  ;;  %462 = vmatmul.mubr.msk.bf16.vlgmr.msra.gmra.mrb[0].mxu1 %vm141_vm1, %v485_v5  ;;  %v495_v15 = vld [vmem:[%s751_s0 + $0x70] sm:$0xff]   ;;  %v497_v17 = vld [vmem:[%s751_s0 + $0x78] sm:$0xff]   ;;  %v588_v18 = vld [vmem:[%s752_s2] ss:$0 sm:$0xff] }
   0x7   :  { %449 = vmatprep.mubr.msk.bf16.mxu0 %vm141_vm1, %v486_v6  ;;  %465 = vmatprep.mubr.msk.bf16.mxu1 %vm141_vm1, %v487_v7 }
   0xe   :  { %450 = vmatmul.mubr.msk.bf16.gmra.mrb[4].mxu0 %vm141_vm1, %v488_v8  ;;  %466 = vmatmul.mubr.msk.bf16.gmra.mrb[4].mxu1 %vm141_vm1, %v489_v9 }
   0xf   :  { %453 = vmatprep.mubr.msk.bf16.mxu0 %vm141_vm1, %v490_v10  ;;  %469 = vmatprep.mubr.msk.bf16.mxu1 %vm141_vm1, %v491_v11 }
  0x16   :  { %454 = vmatmul.mubr.msk.bf16.gmra.mrb[8].mxu0 %vm141_vm1, %v492_v12  ;;  %470 = vmatmul.mubr.msk.bf16.gmra.mrb[8].mxu1 %vm141_vm1, %v493_v13 }
  0x17   :  { %457 = vmatprep.mubr.msk.bf16.mxu0 %vm141_vm1, %v494_v14  ;;  %473 = vmatprep.mubr.msk.bf16.mxu1 %vm141_vm1, %v495_v15 }
  0x1e   :  { %458 = vmatmul.mubr.msk.bf16.gmra.mrb[12].mxu0 %vm141_vm1, %v496_v16  ;;  %474 = vmatmul.mubr.msk.bf16.gmra.mrb[12].mxu1 %vm141_vm1, %v497_v17 }
  0xd9   :  { %v447_v19 = vpop.f32.mrb[0].mxu0  ;;  %v463_v20 = vpop.f32.mrb[0].mxu1 }
  0xda   :  { %v237_v21 = vadd.f32 %v447_v19, %v588_v18  ;;  %v301_v22 = vadd.f32 %v463_v20, %v588_v18  ;;  %v228_v23 = vpop.f32.mrb[1].mxu0  ;;  %v292_v24 = vpop.f32.mrb[1].mxu1 }
  0xdb   :  { %v229_v25 = vadd.f32 %v588_v18, %v228_v23  ;;  %v293_v26 = vadd.f32 %v588_v18, %v292_v24  ;;  %v448_v27 = vpop.f32.mrb[2].mxu0  ;;  %v464_v28 = vpop.f32.mrb[2].mxu1 }
  0xdc   :  { %358 = vst.msk [vmem:[%s753_s3 + $0x10] sm:$0xff] %vm355_vm2, %v237_v21  ;;  %374 = vst.msk [vmem:[%s753_s3 + $0x90] sm:$0xff] %vm355_vm2, %v301_v22  ;;  %v240_v29 = vadd.f32 %v448_v27, %v588_v18  ;;  %v304_v30 = vadd.f32 %v464_v28, %v588_v18  ;;  %v231_v31 = vpop.f32.mrb[3].mxu0  ;;  %v295_v32 = vpop.f32.mrb[3].mxu1 }
  0xdd   :  { %356 = vst.msk [vmem:[%s753_s3] sm:$0xff] %vm355_vm2, %v229_v25  ;;  %372 = vst.msk [vmem:[%s753_s3 + $0x80] sm:$0xff] %vm355_vm2, %v293_v26  ;;  %v232_v33 = vadd.f32 %v588_v18, %v231_v31  ;;  %v296_v34 = vadd.f32 %v588_v18, %v295_v32 }
  0xde   :  { %359 = vst.msk [vmem:[%s753_s3 + $0x18] sm:$0xff] %vm355_vm2, %v240_v29  ;;  %375 = vst.msk [vmem:[%s753_s3 + $0x98] sm:$0xff] %vm355_vm2, %v304_v30 }
  0xdf   :  { %357 = vst.msk [vmem:[%s753_s3 + $0x8] sm:$0xff] %vm355_vm2, %v232_v33  ;;  %373 = vst.msk [vmem:[%s753_s3 + $0x88] sm:$0xff] %vm355_vm2, %v296_v34 }
  0xe1   :  { %v451_v35 = vpop.f32.mrb[4].mxu0  ;;  %v467_v36 = vpop.f32.mrb[4].mxu1 }
  0xe2   :  { %v253_v37 = vadd.f32 %v451_v35, %v588_v18  ;;  %v317_v38 = vadd.f32 %v467_v36, %v588_v18  ;;  %v244_v39 = vpop.f32.mrb[5].mxu0  ;;  %v308_v40 = vpop.f32.mrb[5].mxu1 }
  0xe3   :  { %v245_v41 = vadd.f32 %v588_v18, %v244_v39  ;;  %v309_v42 = vadd.f32 %v588_v18, %v308_v40  ;;  %v452_v43 = vpop.f32.mrb[6].mxu0  ;;  %v468_v44 = vpop.f32.mrb[6].mxu1 }
  0xe4   :  { %362 = vst.msk [vmem:[%s753_s3 + $0x30] sm:$0xff] %vm355_vm2, %v253_v37  ;;  %378 = vst.msk [vmem:[%s753_s3 + $0xb0] sm:$0xff] %vm355_vm2, %v317_v38  ;;  %v256_v45 = vadd.f32 %v452_v43, %v588_v18  ;;  %v320_v46 = vadd.f32 %v468_v44, %v588_v18  ;;  %v247_v47 = vpop.f32.mrb[7].mxu0  ;;  %v311_v48 = vpop.f32.mrb[7].mxu1 }
  0xe5   :  { %360 = vst.msk [vmem:[%s753_s3 + $0x20] sm:$0xff] %vm355_vm2, %v245_v41  ;;  %376 = vst.msk [vmem:[%s753_s3 + $0xa0] sm:$0xff] %vm355_vm2, %v309_v42  ;;  %v248_v49 = vadd.f32 %v588_v18, %v247_v47  ;;  %v312_v50 = vadd.f32 %v588_v18, %v311_v48 }
  0xe6   :  { %363 = vst.msk [vmem:[%s753_s3 + $0x38] sm:$0xff] %vm355_vm2, %v256_v45  ;;  %379 = vst.msk [vmem:[%s753_s3 + $0xb8] sm:$0xff] %vm355_vm2, %v320_v46 }
  0xe7   :  { %361 = vst.msk [vmem:[%s753_s3 + $0x28] sm:$0xff] %vm355_vm2, %v248_v49  ;;  %377 = vst.msk [vmem:[%s753_s3 + $0xa8] sm:$0xff] %vm355_vm2, %v312_v50 }
  0xe9   :  { %v455_v51 = vpop.f32.mrb[8].mxu0  ;;  %v471_v52 = vpop.f32.mrb[8].mxu1 }
  0xea   :  { %v269_v53 = vadd.f32 %v455_v51, %v588_v18  ;;  %v333_v54 = vadd.f32 %v471_v52, %v588_v18  ;;  %v260_v55 = vpop.f32.mrb[9].mxu0  ;;  %v324_v56 = vpop.f32.mrb[9].mxu1 }
  0xeb   :  { %v261_v57 = vadd.f32 %v588_v18, %v260_v55  ;;  %v325_v58 = vadd.f32 %v588_v18, %v324_v56  ;;  %v456_v59 = vpop.f32.mrb[10].mxu0  ;;  %v472_v60 = vpop.f32.mrb[10].mxu1 }
  0xec   :  { %366 = vst.msk [vmem:[%s753_s3 + $0x50] sm:$0xff] %vm355_vm2, %v269_v53  ;;  %382 = vst.msk [vmem:[%s753_s3 + $0xd0] sm:$0xff] %vm355_vm2, %v333_v54  ;;  %v272_v61 = vadd.f32 %v456_v59, %v588_v18  ;;  %v336_v62 = vadd.f32 %v472_v60, %v588_v18  ;;  %v263_v63 = vpop.f32.mrb[11].mxu0  ;;  %v327_v0 = vpop.f32.mrb[11].mxu1 }
  0xed   :  { %364 = vst.msk [vmem:[%s753_s3 + $0x40] sm:$0xff] %vm355_vm2, %v261_v57  ;;  %380 = vst.msk [vmem:[%s753_s3 + $0xc0] sm:$0xff] %vm355_vm2, %v325_v58  ;;  %v264_v1 = vadd.f32 %v588_v18, %v263_v63  ;;  %v328_v2 = vadd.f32 %v588_v18, %v327_v0 }
  0xee   :  { %367 = vst.msk [vmem:[%s753_s3 + $0x58] sm:$0xff] %vm355_vm2, %v272_v61  ;;  %383 = vst.msk [vmem:[%s753_s3 + $0xd8] sm:$0xff] %vm355_vm2, %v336_v62 }
  0xef   :  { %365 = vst.msk [vmem:[%s753_s3 + $0x48] sm:$0xff] %vm355_vm2, %v264_v1  ;;  %381 = vst.msk [vmem:[%s753_s3 + $0xc8] sm:$0xff] %vm355_vm2, %v328_v2 }
  0xf1   :  { %v459_v3 = vpop.f32.mrb[12].mxu0  ;;  %v475_v4 = vpop.f32.mrb[12].mxu1 }
  0xf2   :  { %v285_v5 = vadd.f32 %v459_v3, %v588_v18  ;;  %v349_v6 = vadd.f32 %v475_v4, %v588_v18  ;;  %v276_v7 = vpop.f32.mrb[13].mxu0  ;;  %v340_v8 = vpop.f32.mrb[13].mxu1 }
  0xf3   :  { %v277_v9 = vadd.f32 %v588_v18, %v276_v7  ;;  %v341_v10 = vadd.f32 %v588_v18, %v340_v8  ;;  %v460_v11 = vpop.f32.mrb[14].mxu0  ;;  %v476_v12 = vpop.f32.mrb[14].mxu1 }
  0xf4   :  { %370 = vst.msk [vmem:[%s753_s3 + $0x70] sm:$0xff] %vm355_vm2, %v285_v5  ;;  %386 = vst.msk [vmem:[%s753_s3 + $0xf0] sm:$0xff] %vm355_vm2, %v349_v6  ;;  %v288_v13 = vadd.f32 %v460_v11, %v588_v18  ;;  %v352_v14 = vadd.f32 %v476_v12, %v588_v18  ;;  %v279_v15 = vpop.f32.mrb[15].mxu0  ;;  %v343_v16 = vpop.f32.mrb[15].mxu1 }
  0xf5   :  { %368 = vst.msk [vmem:[%s753_s3 + $0x60] sm:$0xff] %vm355_vm2, %v277_v9  ;;  %384 = vst.msk [vmem:[%s753_s3 + $0xe0] sm:$0xff] %vm355_vm2, %v341_v10  ;;  %v280_v17 = vadd.f32 %v588_v18, %v279_v15  ;;  %v344_v19 = vadd.f32 %v588_v18, %v343_v16 }
  0xf6   :  { %371 = vst.msk [vmem:[%s753_s3 + $0x78] sm:$0xff] %vm355_vm2, %v288_v13  ;;  %387 = vst.msk [vmem:[%s753_s3 + $0xf8] sm:$0xff] %vm355_vm2, %v352_v14 }
  0xf7   :  { %369 = vst.msk [vmem:[%s753_s3 + $0x68] sm:$0xff] %vm355_vm2, %v280_v17  ;;  %385 = vst.msk [vmem:[%s753_s3 + $0xe8] sm:$0xff] %vm355_vm2, %v344_v19 }

// kernel: phasen_fwd.104
= control target key start
LH: loop header
LB: loop body
LE: loop exit
PB: predicated region body
PF: predicated region fallthrough
CT: control target
= control target key end

     0   :  { %vm162_vm0 = vcmask 457728   ;;  %vm211_vm1 = vcmask 1043456   ;;  %vm376_vm2 = vcmask 64512   ;;  %s801_s1 = inlined_call_operand.vmem [shape: bf16[56,8], index: 1, kind: input, shape index: {}]   ;;  %s802_s0 = inlined_call_operand.vmem [shape: bf16[256,56], index: 0, kind: input, shape index: {}]   ;;  %s803_s2 = inlined_call_operand.vmem [shape: f32[1,8], index: 2, kind: input, shape index: {}]   ;;  %s804_s3 = inlined_call_operand.vmem [shape: f32[256,8], index: 3, kind: output, shape index: {}]  }
   0x1   :  { %v520_v0 = vld [vmem:[%s801_s1] sm:$0xff]   ;;  %v521_v1 = vld [vmem:[%s801_s1 + $0x8] sm:$0xff]   ;;  %v522_v2 = vld [vmem:[%s801_s1 + $0x10] sm:$0xff]  }
   0x2   :  { %470 = vmatprep.subr.bf16.mxu0 %v520_v0  ;;  %510 = vmatprep.subr.bf16.mxu1 %v520_v0  ;;  %v524_v3 = vld [vmem:[%s802_s0] sm:$0xff]   ;;  %v523_v5 = vld [vmem:[%s801_s1 + $0x18] ss:$0 sps:$4 sm:$0xff]   ;;  %v526_v7 = vld [vmem:[%s802_s0 + $0x8] sm:$0xff]  }
   0x3   :  { %471 = vmatpush3.bf16.msra.mxu0 %v520_v0  ;;  %514 = vmatpush3.bf16.msra.mxu1 %v520_v0  ;;  %v525_v4 = vld [vmem:[%s802_s0 + $0x40] sm:$0xff]   ;;  %v213_v6 = vsel %vm211_vm1, %v523_v5, 0  ;;  %v527_v8 = vld [vmem:[%s802_s0 + $0x48] sm:$0xff]   ;;  %v528_v9 = vld [vmem:[%s802_s0 + $0x10] sm:$0xff]  }
   0x4   :  { %472 = vmatprep.subr.bf16.mxu0 %v521_v1  ;;  %511 = vmatprep.subr.bf16.mxu1 %v521_v1  ;;  %v529_v10 = vld [vmem:[%s802_s0 + $0x50] sm:$0xff]   ;;  %v530_v11 = vld [vmem:[%s802_s0 + $0x18] sm:$0xff]   ;;  %v532_v13 = vld [vmem:[%s802_s0 + $0x20] sm:$0xff]  }
   0x5   :  { %478 = vmatprep.mubr.msk.bf16.mxu0 %vm162_vm0, %v524_v3  ;;  %494 = vmatprep.mubr.msk.bf16.mxu1 %vm162_vm0, %v525_v4  ;;  %v531_v12 = vld [vmem:[%s802_s0 + $0x58] sm:$0xff]   ;;  %v533_v14 = vld [vmem:[%s802_s0 + $0x60] sm:$0xff]   ;;  %v534_v15 = vld [vmem:[%s802_s0 + $0x28] sm:$0xff]  }
   0x6   :  { %v535_v16 = vld [vmem:[%s802_s0 + $0x68] sm:$0xff]   ;;  %v536_v17 = vld [vmem:[%s802_s0 + $0x30] sm:$0xff]   ;;  %v538_v19 = vld [vmem:[%s802_s0 + $0x38] sm:$0xff]  }
   0x7   :  { %473 = vmatpush3.bf16.msra.mxu0 %v521_v1  ;;  %515 = vmatpush3.bf16.msra.mxu1 %v521_v1  ;;  %v537_v18 = vld [vmem:[%s802_s0 + $0x70] sm:$0xff]   ;;  %v539_v20 = vld [vmem:[%s802_s0 + $0x78] sm:$0xff]   ;;  %v639_v21 = vld [vmem:[%s803_s2] ss:$0 sm:$0xff] }
   0x8   :  { %474 = vmatprep.subr.bf16.mxu0 %v522_v2  ;;  %512 = vmatprep.subr.bf16.mxu1 %v522_v2 }
   0xb   :  { %475 = vmatpush3.bf16.msra.mxu0 %v522_v2  ;;  %516 = vmatpush3.bf16.msra.mxu1 %v522_v2 }
   0xc   :  { %518 = vmatprep.subr.msk.bf16.mxu0 %vm211_vm1, %v523_v5  ;;  %519 = vmatprep.subr.msk.bf16.mxu1 %vm211_vm1, %v523_v5 }
   0xf   :  { %477 = vmatpush3.bf16.msra.mxu0 %v213_v6  ;;  %517 = vmatpush3.bf16.msra.mxu1 %v213_v6 }
  0x12   :  { %479 = vmatmul.mubr.msk.bf16.vlgmr.msra.gmra.mrb[0].mxu0 %vm162_vm0, %v526_v7  ;;  %495 = vmatmul.mubr.msk.bf16.vlgmr.msra.gmra.mrb[0].mxu1 %vm162_vm0, %v527_v8 }
  0x13   :  { %482 = vmatprep.mubr.msk.bf16.mxu0 %vm162_vm0, %v528_v9  ;;  %498 = vmatprep.mubr.msk.bf16.mxu1 %vm162_vm0, %v529_v10 }
  0x1a   :  { %483 = vmatmul.mubr.msk.bf16.gmra.mrb[4].mxu0 %vm162_vm0, %v530_v11  ;;  %499 = vmatmul.mubr.msk.bf16.gmra.mrb[4].mxu1 %vm162_vm0, %v531_v12 }
  0x1b   :  { %486 = vmatprep.mubr.msk.bf16.mxu0 %vm162_vm0, %v532_v13  ;;  %502 = vmatprep.mubr.msk.bf16.mxu1 %vm162_vm0, %v533_v14 }
  0x22   :  { %487 = vmatmul.mubr.msk.bf16.gmra.mrb[8].mxu0 %vm162_vm0, %v534_v15  ;;  %503 = vmatmul.mubr.msk.bf16.gmra.mrb[8].mxu1 %vm162_vm0, %v535_v16 }
  0x23   :  { %490 = vmatprep.mubr.msk.bf16.mxu0 %vm162_vm0, %v536_v17  ;;  %506 = vmatprep.mubr.msk.bf16.mxu1 %vm162_vm0, %v537_v18 }
  0x2a   :  { %491 = vmatmul.mubr.msk.bf16.gmra.mrb[12].mxu0 %vm162_vm0, %v538_v19  ;;  %507 = vmatmul.mubr.msk.bf16.gmra.mrb[12].mxu1 %vm162_vm0, %v539_v20 }
  0xe5   :  { %v480_v22 = vpop.f32.mrb[0].mxu0  ;;  %v496_v23 = vpop.f32.mrb[0].mxu1 }
  0xe6   :  { %v258_v24 = vadd.f32 %v480_v22, %v639_v21  ;;  %v322_v25 = vadd.f32 %v496_v23, %v639_v21  ;;  %v249_v26 = vpop.f32.mrb[1].mxu0  ;;  %v313_v27 = vpop.f32.mrb[1].mxu1 }
  0xe7   :  { %v250_v28 = vadd.f32 %v639_v21, %v249_v26  ;;  %v314_v29 = vadd.f32 %v639_v21, %v313_v27  ;;  %v481_v30 = vpop.f32.mrb[2].mxu0  ;;  %v497_v31 = vpop.f32.mrb[2].mxu1 }
  0xe8   :  { %379 = vst.msk [vmem:[%s804_s3 + $0x10] sm:$0xff] %vm376_vm2, %v258_v24  ;;  %395 = vst.msk [vmem:[%s804_s3 + $0x90] sm:$0xff] %vm376_vm2, %v322_v25  ;;  %v261_v32 = vadd.f32 %v481_v30, %v639_v21  ;;  %v325_v33 = vadd.f32 %v497_v31, %v639_v21  ;;  %v252_v34 = vpop.f32.mrb[3].mxu0  ;;  %v316_v35 = vpop.f32.mrb[3].mxu1 }
  0xe9   :  { %377 = vst.msk [vmem:[%s804_s3] sm:$0xff] %vm376_vm2, %v250_v28  ;;  %393 = vst.msk [vmem:[%s804_s3 + $0x80] sm:$0xff] %vm376_vm2, %v314_v29  ;;  %v253_v36 = vadd.f32 %v639_v21, %v252_v34  ;;  %v317_v37 = vadd.f32 %v639_v21, %v316_v35 }
  0xea   :  { %380 = vst.msk [vmem:[%s804_s3 + $0x18] sm:$0xff] %vm376_vm2, %v261_v32  ;;  %396 = vst.msk [vmem:[%s804_s3 + $0x98] sm:$0xff] %vm376_vm2, %v325_v33 }
  0xeb   :  { %378 = vst.msk [vmem:[%s804_s3 + $0x8] sm:$0xff] %vm376_vm2, %v253_v36  ;;  %394 = vst.msk [vmem:[%s804_s3 + $0x88] sm:$0xff] %vm376_vm2, %v317_v37 }
  0xed   :  { %v484_v38 = vpop.f32.mrb[4].mxu0  ;;  %v500_v39 = vpop.f32.mrb[4].mxu1 }
  0xee   :  { %v274_v40 = vadd.f32 %v484_v38, %v639_v21  ;;  %v338_v41 = vadd.f32 %v500_v39, %v639_v21  ;;  %v265_v42 = vpop.f32.mrb[5].mxu0  ;;  %v329_v43 = vpop.f32.mrb[5].mxu1 }
  0xef   :  { %v266_v44 = vadd.f32 %v639_v21, %v265_v42  ;;  %v330_v45 = vadd.f32 %v639_v21, %v329_v43  ;;  %v485_v46 = vpop.f32.mrb[6].mxu0  ;;  %v501_v47 = vpop.f32.mrb[6].mxu1 }
  0xf0   :  { %383 = vst.msk [vmem:[%s804_s3 + $0x30] sm:$0xff] %vm376_vm2, %v274_v40  ;;  %399 = vst.msk [vmem:[%s804_s3 + $0xb0] sm:$0xff] %vm376_vm2, %v338_v41  ;;  %v277_v48 = vadd.f32 %v485_v46, %v639_v21  ;;  %v341_v49 = vadd.f32 %v501_v47, %v639_v21  ;;  %v268_v50 = vpop.f32.mrb[7].mxu0  ;;  %v332_v51 = vpop.f32.mrb[7].mxu1 }
  0xf1   :  { %381 = vst.msk [vmem:[%s804_s3 + $0x20] sm:$0xff] %vm376_vm2, %v266_v44  ;;  %397 = vst.msk [vmem:[%s804_s3 + $0xa0] sm:$0xff] %vm376_vm2, %v330_v45  ;;  %v269_v52 = vadd.f32 %v639_v21, %v268_v50  ;;  %v333_v53 = vadd.f32 %v639_v21, %v332_v51 }
  0xf2   :  { %384 = vst.msk [vmem:[%s804_s3 + $0x38] sm:$0xff] %vm376_vm2, %v277_v48  ;;  %400 = vst.msk [vmem:[%s804_s3 + $0xb8] sm:$0xff] %vm376_vm2, %v341_v49 }
  0xf3   :  { %382 = vst.msk [vmem:[%s804_s3 + $0x28] sm:$0xff] %vm376_vm2, %v269_v52  ;;  %398 = vst.msk [vmem:[%s804_s3 + $0xa8] sm:$0xff] %vm376_vm2, %v333_v53 }
  0xf5   :  { %v488_v54 = vpop.f32.mrb[8].mxu0  ;;  %v504_v55 = vpop.f32.mrb[8].mxu1 }
  0xf6   :  { %v290_v56 = vadd.f32 %v488_v54, %v639_v21  ;;  %v354_v57 = vadd.f32 %v504_v55, %v639_v21  ;;  %v281_v58 = vpop.f32.mrb[9].mxu0  ;;  %v345_v59 = vpop.f32.mrb[9].mxu1 }
  0xf7   :  { %v282_v60 = vadd.f32 %v639_v21, %v281_v58  ;;  %v346_v61 = vadd.f32 %v639_v21, %v345_v59  ;;  %v489_v62 = vpop.f32.mrb[10].mxu0  ;;  %v505_v63 = vpop.f32.mrb[10].mxu1 }
  0xf8   :  { %387 = vst.msk [vmem:[%s804_s3 + $0x50] sm:$0xff] %vm376_vm2, %v290_v56  ;;  %403 = vst.msk [vmem:[%s804_s3 + $0xd0] sm:$0xff] %vm376_vm2, %v354_v57  ;;  %v293_v0 = vadd.f32 %v489_v62, %v639_v21  ;;  %v357_v1 = vadd.f32 %v505_v63, %v639_v21  ;;  %v284_v2 = vpop.f32.mrb[11].mxu0  ;;  %v348_v3 = vpop.f32.mrb[11].mxu1 }
  0xf9   :  { %385 = vst.msk [vmem:[%s804_s3 + $0x40] sm:$0xff] %vm376_vm2, %v282_v60  ;;  %401 = vst.msk [vmem:[%s804_s3 + $0xc0] sm:$0xff] %vm376_vm2, %v346_v61  ;;  %v285_v4 = vadd.f32 %v639_v21, %v284_v2  ;;  %v349_v5 = vadd.f32 %v639_v21, %v348_v3 }
  0xfa   :  { %388 = vst.msk [vmem:[%s804_s3 + $0x58] sm:$0xff] %vm376_vm2, %v293_v0  ;;  %404 = vst.msk [vmem:[%s804_s3 + $0xd8] sm:$0xff] %vm376_vm2, %v357_v1 }
  0xfb   :  { %386 = vst.msk [vmem:[%s804_s3 + $0x48] sm:$0xff] %vm376_vm2, %v285_v4  ;;  %402 = vst.msk [vmem:[%s804_s3 + $0xc8] sm:$0xff] %vm376_vm2, %v349_v5 }
  0xfd   :  { %v492_v6 = vpop.f32.mrb[12].mxu0  ;;  %v508_v7 = vpop.f32.mrb[12].mxu1 }
  0xfe   :  { %v306_v8 = vadd.f32 %v492_v6, %v639_v21  ;;  %v370_v9 = vadd.f32 %v508_v7, %v639_v21  ;;  %v297_v10 = vpop.f32.mrb[13].mxu0  ;;  %v361_v11 = vpop.f32.mrb[13].mxu1 }
  0xff   :  { %v298_v12 = vadd.f32 %v639_v21, %v297_v10  ;;  %v362_v13 = vadd.f32 %v639_v21, %v361_v11  ;;  %v493_v14 = vpop.f32.mrb[14].mxu0  ;;  %v509_v15 = vpop.f32.mrb[14].mxu1 }
 0x100   :  { %391 = vst.msk [vmem:[%s804_s3 + $0x70] sm:$0xff] %vm376_vm2, %v306_v8  ;;  %407 = vst.msk [vmem:[%s804_s3 + $0xf0] sm:$0xff] %vm376_vm2, %v370_v9  ;;  %v309_v16 = vadd.f32 %v493_v14, %v639_v21  ;;  %v373_v17 = vadd.f32 %v509_v15, %v639_v21  ;;  %v300_v18 = vpop.f32.mrb[15].mxu0  ;;  %v364_v19 = vpop.f32.mrb[15].mxu1 }
 0x101   :  { %389 = vst.msk [vmem:[%s804_s3 + $0x60] sm:$0xff] %vm376_vm2, %v298_v12  ;;  %405 = vst.msk [vmem:[%s804_s3 + $0xe0] sm:$0xff] %vm376_vm2, %v362_v13  ;;  %v301_v20 = vadd.f32 %v639_v21, %v300_v18  ;;  %v365_v22 = vadd.f32 %v639_v21, %v364_v19 }
 0x102   :  { %392 = vst.msk [vmem:[%s804_s3 + $0x78] sm:$0xff] %vm376_vm2, %v309_v16  ;;  %408 = vst.msk [vmem:[%s804_s3 + $0xf8] sm:$0xff] %vm376_vm2, %v373_v17 }
 0x103   :  { %390 = vst.msk [vmem:[%s804_s3 + $0x68] sm:$0xff] %vm376_vm2, %v301_v20  ;;  %406 = vst.msk [vmem:[%s804_s3 + $0xe8] sm:$0xff] %vm376_vm2, %v365_v22 }

// kernel: phasen_fwd.105
= control target key start
LH: loop header
LB: loop body
LE: loop exit
PB: predicated region body
PF: predicated region fallthrough
CT: control target
= control target key end

     0   :  { %vm120_vm0 = vcmask 1043456   ;;  %vm71_vm1 = vcmask 64512   ;;  %vm285_vm2 = vcmask 15360   ;;  %s694_s1 = inlined_call_operand.vmem [shape: bf16[8,2], index: 1, kind: input, shape index: {}]   ;;  %s695_s0 = inlined_call_operand.vmem [shape: f32[256,8], index: 0, kind: input, shape index: {}]   ;;  %s696_s2 = inlined_call_operand.vmem [shape: f32[1,2], index: 2, kind: input, shape index: {}]   ;;  %s697_s3 = inlined_call_operand.vmem [shape: f32[256,2], index: 3, kind: output, shape index: {}]  }
   0x1   :  { %v63_v0 = vld [vmem:[%s694_s1] sm:$0xf]  ;;  %v16_v2 = vld [vmem:[%s695_s0 + $0x8] sm:$0xff]  ;;  %v17_v7 = vld [vmem:[%s695_s0 + $0x10] sm:$0xff] }
   0x2   :  { %v15_v1 = vld [vmem:[%s695_s0] sm:$0xff]  ;;  %392 = vmatprep.subr.msk.bf16.mxu0 %vm120_vm0, %v63_v0  ;;  %393 = vmatprep.subr.msk.bf16.mxu1 %vm120_vm0, %v63_v0  ;;  %v122_v3 = vsel %vm120_vm0, %v63_v0, 0  ;;  %v32_v6 = vld [vmem:[%s695_s0 + $0x88] sm:$0xff]  ;;  %v18_v9 = vld [vmem:[%s695_s0 + $0x18] sm:$0xff] }
   0x3   :  { %v47_v4 = vpack.c.bf16 %v16_v2, %v15_v1  ;;  %v31_v5 = vld [vmem:[%s695_s0 + $0x80] sm:$0xff]  ;;  %357 = vmatpush3.bf16.msra.mxu0 %v122_v3  ;;  %391 = vmatpush3.bf16.msra.mxu1 %v122_v3  ;;  %v33_v10 = vld [vmem:[%s695_s0 + $0x90] sm:$0xff]  ;;  %v34_v11 = vld [vmem:[%s695_s0 + $0x98] sm:$0xff]  ;;  %v48_v12 = vpack.c.bf16 %v18_v9, %v17_v7 }
   0x4   :  { %v55_v8 = vpack.c.bf16 %v32_v6, %v31_v5  ;;  %v56_v13 = vpack.c.bf16 %v34_v11, %v33_v10  ;;  %v19_v14 = vld [vmem:[%s695_s0 + $0x20] sm:$0xff]  ;;  %v20_v15 = vld [vmem:[%s695_s0 + $0x28] sm:$0xff]  ;;  %v21_v20 = vld [vmem:[%s695_s0 + $0x30] sm:$0xff] }
   0x5   :  { %358 = vmatprep.mubr.msk.bf16.mxu0 %vm71_vm1, %v47_v4  ;;  %v35_v16 = vld [vmem:[%s695_s0 + $0xa0] sm:$0xff]  ;;  %v49_v17 = vpack.c.bf16 %v20_v15, %v19_v14  ;;  %v36_v18 = vld [vmem:[%s695_s0 + $0xa8] sm:$0xff]  ;;  %v22_v21 = vld [vmem:[%s695_s0 + $0x38] sm:$0xff] }
   0x6   :  { %374 = vmatprep.mubr.msk.bf16.mxu1 %vm71_vm1, %v55_v8  ;;  %359 = vmatmul.mubr.msk.bf16.vlgmr.msra.gmra.mrb[0].mxu0 %vm71_vm1, %v48_v12  ;;  %v57_v19 = vpack.c.bf16 %v36_v18, %v35_v16  ;;  %v37_v22 = vld [vmem:[%s695_s0 + $0xb0] sm:$0xff]  ;;  %v38_v23 = vld [vmem:[%s695_s0 + $0xb8] sm:$0xff]  ;;  %v23_v24 = vld [vmem:[%s695_s0 + $0x40] sm:$0xff]  ;;  %v50_v28 = vpack.c.bf16 %v22_v21, %v21_v20 }
   0x7   :  { %375 = vmatmul.mubr.msk.bf16.vlgmr.msra.gmra.mrb[0].mxu1 %vm71_vm1, %v56_v13  ;;  %362 = vmatprep.mubr.msk.bf16.mxu0 %vm71_vm1, %v49_v17  ;;  %v24_v25 = vld [vmem:[%s695_s0 + $0x48] sm:$0xff]  ;;  %v39_v26 = vld [vmem:[%s695_s0 + $0xc0] sm:$0xff]  ;;  %v58_v29 = vpack.c.bf16 %v38_v23, %v37_v22  ;;  %v25_v32 = vld [vmem:[%s695_s0 + $0x50] sm:$0xff] }
   0x8   :  { %378 = vmatprep.mubr.msk.bf16.mxu1 %vm71_vm1, %v57_v19  ;;  %v40_v27 = vld [vmem:[%s695_s0 + $0xc8] sm:$0xff]  ;;  %v51_v30 = vpack.c.bf16 %v24_v25, %v23_v24  ;;  %v26_v33 = vld [vmem:[%s695_s0 + $0x58] sm:$0xff]  ;;  %v41_v34 = vld [vmem:[%s695_s0 + $0xd0] sm:$0xff] }
   0x9   :  { %v59_v31 = vpack.c.bf16 %v40_v27, %v39_v26  ;;  %v42_v35 = vld [vmem:[%s695_s0 + $0xd8] sm:$0xff]  ;;  %v27_v36 = vld [vmem:[%s695_s0 + $0x60] sm:$0xff]  ;;  %v28_v37 = vld [vmem:[%s695_s0 + $0x68] sm:$0xff]  ;;  %v52_v40 = vpack.c.bf16 %v26_v33, %v25_v32 }
   0xa   :  { %v43_v38 = vld [vmem:[%s695_s0 + $0xe0] sm:$0xff]  ;;  %v44_v39 = vld [vmem:[%s695_s0 + $0xe8] sm:$0xff]  ;;  %v60_v41 = vpack.c.bf16 %v42_v35, %v41_v34  ;;  %v53_v42 = vpack.c.bf16 %v28_v37, %v27_v36  ;;  %v29_v44 = vld [vmem:[%s695_s0 + $0x70] sm:$0xff] }
   0xb   :  { %v61_v43 = vpack.c.bf16 %v44_v39, %v43_v38  ;;  %v30_v45 = vld [vmem:[%s695_s0 + $0x78] sm:$0xff]  ;;  %v45_v46 = vld [vmem:[%s695_s0 + $0xf0] sm:$0xff]  ;;  %v532_v50 = vld [vmem:[%s696_s2] ss:$0 sm:$0xff] }
   0xc   :  { %v46_v47 = vld [vmem:[%s695_s0 + $0xf8] sm:$0xff]  ;;  %v54_v48 = vpack.c.bf16 %v30_v45, %v29_v44 }
   0xd   :  { %v62_v49 = vpack.c.bf16 %v46_v47, %v45_v46 }
   0xe   :  { %363 = vmatmul.mubr.msk.bf16.gmra.mrb[4].mxu0 %vm71_vm1, %v50_v28 }
   0xf   :  { %379 = vmatmul.mubr.msk.bf16.gmra.mrb[4].mxu1 %vm71_vm1, %v58_v29  ;;  %366 = vmatprep.mubr.msk.bf16.mxu0 %vm71_vm1, %v51_v30 }
  0x10   :  { %382 = vmatprep.mubr.msk.bf16.mxu1 %vm71_vm1, %v59_v31 }
  0x16   :  { %367 = vmatmul.mubr.msk.bf16.gmra.mrb[8].mxu0 %vm71_vm1, %v52_v40 }
  0x17   :  { %383 = vmatmul.mubr.msk.bf16.gmra.mrb[8].mxu1 %vm71_vm1, %v60_v41  ;;  %370 = vmatprep.mubr.msk.bf16.mxu0 %vm71_vm1, %v53_v42 }
  0x18   :  { %386 = vmatprep.mubr.msk.bf16.mxu1 %vm71_vm1, %v61_v43 }
  0x1e   :  { %371 = vmatmul.mubr.msk.bf16.gmra.mrb[12].mxu0 %vm71_vm1, %v54_v48 }
  0x1f   :  { %387 = vmatmul.mubr.msk.bf16.gmra.mrb[12].mxu1 %vm71_vm1, %v62_v49 }
  0xd9   :  { %v360_v51 = vpop.f32.mrb[0].mxu0 }
  0xda   :  { %v376_v52 = vpop.f32.mrb[0].mxu1  ;;  %v167_v53 = vadd.f32 %v360_v51, %v532_v50  ;;  %v158_v55 = vpop.f32.mrb[1].mxu0 }
  0xdb   :  { %v231_v54 = vadd.f32 %v376_v52, %v532_v50  ;;  %v222_v56 = vpop.f32.mrb[1].mxu1  ;;  %v159_v57 = vadd.f32 %v532_v50, %v158_v55  ;;  %v361_v59 = vpop.f32.mrb[2].mxu0 }
  0xdc   :  { %v223_v58 = vadd.f32 %v532_v50, %v222_v56  ;;  %v377_v60 = vpop.f32.mrb[2].mxu1  ;;  %288 = vst.msk [vmem:[%s697_s3 + $0x10] sm:$0xff] %vm285_vm2, %v167_v53  ;;  %v170_v61 = vadd.f32 %v361_v59, %v532_v50  ;;  %v161_v63 = vpop.f32.mrb[3].mxu0 }
  0xdd   :  { %304 = vst.msk [vmem:[%s697_s3 + $0x90] sm:$0xff] %vm285_vm2, %v231_v54  ;;  %v234_v62 = vadd.f32 %v377_v60, %v532_v50  ;;  %v225_v0 = vpop.f32.mrb[3].mxu1  ;;  %286 = vst.msk [vmem:[%s697_s3] sm:$0xff] %vm285_vm2, %v159_v57  ;;  %v162_v1 = vadd.f32 %v532_v50, %v161_v63 }
  0xde   :  { %302 = vst.msk [vmem:[%s697_s3 + $0x80] sm:$0xff] %vm285_vm2, %v223_v58  ;;  %v226_v2 = vadd.f32 %v532_v50, %v225_v0  ;;  %289 = vst.msk [vmem:[%s697_s3 + $0x18] sm:$0xff] %vm285_vm2, %v170_v61 }
  0xdf   :  { %305 = vst.msk [vmem:[%s697_s3 + $0x98] sm:$0xff] %vm285_vm2, %v234_v62  ;;  %287 = vst.msk [vmem:[%s697_s3 + $0x8] sm:$0xff] %vm285_vm2, %v162_v1 }
  0xe0   :  { %303 = vst.msk [vmem:[%s697_s3 + $0x88] sm:$0xff] %vm285_vm2, %v226_v2 }
  0xe1   :  { %v364_v3 = vpop.f32.mrb[4].mxu0 }
  0xe2   :  { %v380_v4 = vpop.f32.mrb[4].mxu1  ;;  %v183_v5 = vadd.f32 %v364_v3, %v532_v50  ;;  %v174_v7 = vpop.f32.mrb[5].mxu0 }
  0xe3   :  { %v247_v6 = vadd.f32 %v380_v4, %v532_v50  ;;  %v238_v8 = vpop.f32.mrb[5].mxu1  ;;  %v175_v9 = vadd.f32 %v532_v50, %v174_v7  ;;  %v365_v11 = vpop.f32.mrb[6].mxu0 }
  0xe4   :  { %v239_v10 = vadd.f32 %v532_v50, %v238_v8  ;;  %v381_v12 = vpop.f32.mrb[6].mxu1  ;;  %292 = vst.msk [vmem:[%s697_s3 + $0x30] sm:$0xff] %vm285_vm2, %v183_v5  ;;  %v186_v13 = vadd.f32 %v365_v11, %v532_v50  ;;  %v177_v15 = vpop.f32.mrb[7].mxu0 }
  0xe5   :  { %308 = vst.msk [vmem:[%s697_s3 + $0xb0] sm:$0xff] %vm285_vm2, %v247_v6  ;;  %v250_v14 = vadd.f32 %v381_v12, %v532_v50  ;;  %v241_v16 = vpop.f32.mrb[7].mxu1  ;;  %290 = vst.msk [vmem:[%s697_s3 + $0x20] sm:$0xff] %vm285_vm2, %v175_v9  ;;  %v178_v17 = vadd.f32 %v532_v50, %v177_v15 }
  0xe6   :  { %306 = vst.msk [vmem:[%s697_s3 + $0xa0] sm:$0xff] %vm285_vm2, %v239_v10  ;;  %v242_v18 = vadd.f32 %v532_v50, %v241_v16  ;;  %293 = vst.msk [vmem:[%s697_s3 + $0x38] sm:$0xff] %vm285_vm2, %v186_v13 }
  0xe7   :  { %309 = vst.msk [vmem:[%s697_s3 + $0xb8] sm:$0xff] %vm285_vm2, %v250_v14  ;;  %291 = vst.msk [vmem:[%s697_s3 + $0x28] sm:$0xff] %vm285_vm2, %v178_v17 }
  0xe8   :  { %307 = vst.msk [vmem:[%s697_s3 + $0xa8] sm:$0xff] %vm285_vm2, %v242_v18 }
  0xe9   :  { %v368_v19 = vpop.f32.mrb[8].mxu0 }
  0xea   :  { %v384_v20 = vpop.f32.mrb[8].mxu1  ;;  %v199_v21 = vadd.f32 %v368_v19, %v532_v50  ;;  %v190_v23 = vpop.f32.mrb[9].mxu0 }
  0xeb   :  { %v263_v22 = vadd.f32 %v384_v20, %v532_v50  ;;  %v254_v24 = vpop.f32.mrb[9].mxu1  ;;  %v191_v25 = vadd.f32 %v532_v50, %v190_v23  ;;  %v369_v27 = vpop.f32.mrb[10].mxu0 }
  0xec   :  { %v255_v26 = vadd.f32 %v532_v50, %v254_v24  ;;  %v385_v28 = vpop.f32.mrb[10].mxu1  ;;  %296 = vst.msk [vmem:[%s697_s3 + $0x50] sm:$0xff] %vm285_vm2, %v199_v21  ;;  %v202_v29 = vadd.f32 %v369_v27, %v532_v50  ;;  %v193_v31 = vpop.f32.mrb[11].mxu0 }
  0xed   :  { %312 = vst.msk [vmem:[%s697_s3 + $0xd0] sm:$0xff] %vm285_vm2, %v263_v22  ;;  %v266_v30 = vadd.f32 %v385_v28, %v532_v50  ;;  %v257_v32 = vpop.f32.mrb[11].mxu1  ;;  %294 = vst.msk [vmem:[%s697_s3 + $0x40] sm:$0xff] %vm285_vm2, %v191_v25  ;;  %v194_v33 = vadd.f32 %v532_v50, %v193_v31 }
  0xee   :  { %310 = vst.msk [vmem:[%s697_s3 + $0xc0] sm:$0xff] %vm285_vm2, %v255_v26  ;;  %v258_v34 = vadd.f32 %v532_v50, %v257_v32  ;;  %297 = vst.msk [vmem:[%s697_s3 + $0x58] sm:$0xff] %vm285_vm2, %v202_v29 }
  0xef   :  { %313 = vst.msk [vmem:[%s697_s3 + $0xd8] sm:$0xff] %vm285_vm2, %v266_v30  ;;  %295 = vst.msk [vmem:[%s697_s3 + $0x48] sm:$0xff] %vm285_vm2, %v194_v33 }
  0xf0   :  { %311 = vst.msk [vmem:[%s697_s3 + $0xc8] sm:$0xff] %vm285_vm2, %v258_v34 }
  0xf1   :  { %v372_v35 = vpop.f32.mrb[12].mxu0 }
  0xf2   :  { %v388_v36 = vpop.f32.mrb[12].mxu1  ;;  %v215_v37 = vadd.f32 %v372_v35, %v532_v50  ;;  %v206_v39 = vpop.f32.mrb[13].mxu0 }
  0xf3   :  { %v279_v38 = vadd.f32 %v388_v36, %v532_v50  ;;  %v270_v40 = vpop.f32.mrb[13].mxu1  ;;  %v207_v41 = vadd.f32 %v532_v50, %v206_v39  ;;  %v373_v43 = vpop.f32.mrb[14].mxu0 }
  0xf4   :  { %v271_v42 = vadd.f32 %v532_v50, %v270_v40  ;;  %v389_v44 = vpop.f32.mrb[14].mxu1  ;;  %300 = vst.msk [vmem:[%s697_s3 + $0x70] sm:$0xff] %vm285_vm2, %v215_v37  ;;  %v218_v45 = vadd.f32 %v373_v43, %v532_v50  ;;  %v209_v47 = vpop.f32.mrb[15].mxu0 }
  0xf5   :  { %316 = vst.msk [vmem:[%s697_s3 + $0xf0] sm:$0xff] %vm285_vm2, %v279_v38  ;;  %v282_v46 = vadd.f32 %v389_v44, %v532_v50  ;;  %v273_v48 = vpop.f32.mrb[15].mxu1  ;;  %298 = vst.msk [vmem:[%s697_s3 + $0x60] sm:$0xff] %vm285_vm2, %v207_v41  ;;  %v210_v49 = vadd.f32 %v532_v50, %v209_v47 }
  0xf6   :  { %314 = vst.msk [vmem:[%s697_s3 + $0xe0] sm:$0xff] %vm285_vm2, %v271_v42  ;;  %v274_v51 = vadd.f32 %v532_v50, %v273_v48  ;;  %301 = vst.msk [vmem:[%s697_s3 + $0x78] sm:$0xff] %vm285_vm2, %v218_v45 }
  0xf7   :  { %317 = vst.msk [vmem:[%s697_s3 + $0xf8] sm:$0xff] %vm285_vm2, %v282_v46  ;;  %299 = vst.msk [vmem:[%s697_s3 + $0x68] sm:$0xff] %vm285_vm2, %v210_v49 }
  0xf8   :  { %315 = vst.msk [vmem:[%s697_s3 + $0xe8] sm:$0xff] %vm285_vm2, %v274_v51 }

// kernel: phasen_fwd.106
= control target key start
LH: loop header
LB: loop body
LE: loop exit
PB: predicated region body
PF: predicated region fallthrough
CT: control target
= control target key end

     0   :  { %vm12_vm0 = vcmask 15360   ;;  %v365_v0 = vmov 0.0   ;;  %vm249_vm1 = vcmask 8192   ;;  %s543_s0 = inlined_call_operand.vmem [shape: f32[256,2], index: 0, kind: input, shape index: {}]   ;;  %s544_s1 = inlined_call_operand.vmem [shape: f32[8,2], index: 1, kind: output, shape index: {}]  }
   0x1   :  { %13 = vst.msk [vmem:[#allocation2] sm:$0xff] %vm12_vm0, %v365_v0  ;;  %v14_v1 = vld [vmem:[%s543_s0] sm:$0xff]  ;;  %v15_v2 = vld [vmem:[%s543_s0 + $0x8] sm:$0xff]  ;;  %v16_v3 = vld [vmem:[%s543_s0 + $0x10] sm:$0xff] }
   0x2   :  { %v179_v4 = vsel %vm12_vm0, %v14_v1, 0.0  ;;  %v180_v5 = vsel %vm12_vm0, %v15_v2, 0.0  ;;  %v182_v6 = vsel %vm12_vm0, %v16_v3, 0.0  ;;  %v17_v7 = vld [vmem:[%s543_s0 + $0x18] sm:$0xff]  ;;  %v18_v10 = vld [vmem:[%s543_s0 + $0x20] sm:$0xff]  ;;  %v19_v13 = vld [vmem:[%s543_s0 + $0x28] sm:$0xff]  ;;  %v252_v28 = vmul.f32 %v14_v1, %v14_v1 }
   0x3   :  { %v181_v8 = vadd.f32 %v180_v5, %v179_v4  ;;  %v184_v9 = vsel %vm12_vm0, %v17_v7, 0.0  ;;  %v186_v12 = vsel %vm12_vm0, %v18_v10, 0.0  ;;  %v188_v15 = vsel %vm12_vm0, %v19_v13, 0.0  ;;  %v20_v16 = vld [vmem:[%s543_s0 + $0x30] sm:$0xff]  ;;  %v21_v19 = vld [vmem:[%s543_s0 + $0x38] sm:$0xff]  ;;  %v22_v22 = vld [vmem:[%s543_s0 + $0x40] sm:$0xff] }
   0x4   :  { %v190_v18 = vsel %vm12_vm0, %v20_v16, 0.0  ;;  %v192_v21 = vsel %vm12_vm0, %v21_v19, 0.0  ;;  %v194_v24 = vsel %vm12_vm0, %v22_v22, 0.0  ;;  %v23_v25 = vld [vmem:[%s543_s0 + $0x48] sm:$0xff]  ;;  %v253_v29 = vmul.f32 %v15_v2, %v15_v2  ;;  %v24_v31 = vld [vmem:[%s543_s0 + $0x50] sm:$0xff]  ;;  %v25_v33 = vld [vmem:[%s543_s0 + $0x58] sm:$0xff] }
   0x5   :  { %v183_v11 = vadd.f32 %v182_v6, %v181_v8  ;;  %v196_v27 = vsel %vm12_vm0, %v23_v25, 0.0  ;;  %v254_v30 = vmul.f32 %v16_v3, %v16_v3  ;;  %v198_v34 = vsel %vm12_vm0, %v24_v31, 0.0  ;;  %v26_v42 = vld [vmem:[%s543_s0 + $0x60] sm:$0xff]  ;;  %v27_v48 = vld [vmem:[%s543_s0 + $0x68] sm:$0xff]  ;;  %v28_v54 = vld [vmem:[%s543_s0 + $0x70] sm:$0xff] }
   0x6   :  { %v255_v35 = vmul.f32 %v17_v7, %v17_v7  ;;  %v200_v37 = vsel %vm12_vm0, %v25_v33, 0.0  ;;  %v256_v38 = vmul.f32 %v18_v10, %v18_v10  ;;  %v284_v39 = vsel %vm12_vm0, %v252_v28, 0.0  ;;  %v29_v60 = vld [vmem:[%s543_s0 + $0x78] sm:$0xff]  ;;  %v30_v2 = vld [vmem:[%s543_s0 + $0x80] sm:$0xff]  ;;  %v31_v8 = vld [vmem:[%s543_s0 + $0x88] sm:$0xff] }
   0x7   :  { %v185_v14 = vadd.f32 %v184_v9, %v183_v11  ;;  %v285_v40 = vsel %vm12_vm0, %v253_v29, 0.0  ;;  %v287_v41 = vsel %vm12_vm0, %v254_v30, 0.0  ;;  %v202_v45 = vsel %vm12_vm0, %v26_v42, 0.0 }
   0x8   :  { %v286_v44 = vadd.f32 %v285_v40, %v284_v39  ;;  %v257_v46 = vmul.f32 %v19_v13, %v19_v13  ;;  %v289_v47 = vsel %vm12_vm0, %v255_v35, 0.0  ;;  %v204_v51 = vsel %vm12_vm0, %v27_v48, 0.0 }
   0x9   :  { %v187_v17 = vadd.f32 %v186_v12, %v185_v14  ;;  %v258_v52 = vmul.f32 %v20_v16, %v20_v16  ;;  %v291_v53 = vsel %vm12_vm0, %v256_v38, 0.0  ;;  %v206_v57 = vsel %vm12_vm0, %v28_v54, 0.0  ;;  %v32_v14 = vld [vmem:[%s543_s0 + $0x90] sm:$0xff] }
   0xa   :  { %v288_v50 = vadd.f32 %v287_v41, %v286_v44  ;;  %v259_v58 = vmul.f32 %v21_v19, %v21_v19  ;;  %v293_v59 = vsel %vm12_vm0, %v257_v46, 0.0  ;;  %v208_v63 = vsel %vm12_vm0, %v29_v60, 0.0  ;;  %v36_v38 = vld [vmem:[%s543_s0 + $0xb0] sm:$0xff]  ;;  %v37_v44 = vld [vmem:[%s543_s0 + $0xb8] sm:$0xff] }
   0xb   :  { %v189_v20 = vadd.f32 %v188_v15, %v187_v17  ;;  %v260_v0 = vmul.f32 %v22_v22, %v22_v22  ;;  %v295_v1 = vsel %vm12_vm0, %v258_v52, 0.0  ;;  %v210_v5 = vsel %vm12_vm0, %v30_v2, 0.0 }
   0xc   :  { %v290_v56 = vadd.f32 %v289_v47, %v288_v50  ;;  %v261_v6 = vmul.f32 %v23_v25, %v23_v25  ;;  %v297_v7 = vsel %vm12_vm0, %v259_v58, 0.0  ;;  %v212_v11 = vsel %vm12_vm0, %v31_v8, 0.0  ;;  %v38_v50 = vld [vmem:[%s543_s0 + $0xc0] sm:$0xff] }
   0xd   :  { %v191_v23 = vadd.f32 %v190_v18, %v189_v20  ;;  %v262_v12 = vmul.f32 %v24_v31, %v24_v31  ;;  %v299_v13 = vsel %vm12_vm0, %v260_v0, 0.0  ;;  %v214_v17 = vsel %vm12_vm0, %v32_v14, 0.0  ;;  %v33_v20 = vld [vmem:[%s543_s0 + $0x98] sm:$0xff] }
   0xe   :  { %v292_v62 = vadd.f32 %v291_v53, %v290_v56  ;;  %v263_v18 = vmul.f32 %v25_v33, %v25_v33  ;;  %v301_v19 = vsel %vm12_vm0, %v261_v6, 0.0  ;;  %v265_v30 = vmul.f32 %v27_v48, %v27_v48  ;;  %v39_v56 = vld [vmem:[%s543_s0 + $0xc8] sm:$0xff] }
   0xf   :  { %v193_v26 = vadd.f32 %v192_v21, %v191_v23  ;;  %v216_v23 = vsel %vm12_vm0, %v33_v20, 0.0  ;;  %v303_v25 = vsel %vm12_vm0, %v262_v12, 0.0  ;;  %v222_v41 = vsel %vm12_vm0, %v36_v38, 0.0 }
  0x10   :  { %v294_v4 = vadd.f32 %v293_v59, %v292_v62  ;;  %v305_v31 = vsel %vm12_vm0, %v263_v18, 0.0  ;;  %v224_v47 = vsel %vm12_vm0, %v37_v44, 0.0  ;;  %v268_v48 = vmul.f32 %v30_v2, %v30_v2  ;;  %v40_v62 = vld [vmem:[%s543_s0 + $0xd0] sm:$0xff] }
  0x11   :  { %v195_v32 = vadd.f32 %v194_v24, %v193_v26  ;;  %v264_v24 = vmul.f32 %v26_v42, %v26_v42  ;;  %v34_v26 = vld [vmem:[%s543_s0 + $0xa0] sm:$0xff]  ;;  %v267_v42 = vmul.f32 %v29_v60, %v29_v60  ;;  %v226_v53 = vsel %vm12_vm0, %v38_v50, 0.0 }
  0x12   :  { %v296_v10 = vadd.f32 %v295_v1, %v294_v4  ;;  %v218_v29 = vsel %vm12_vm0, %v34_v26, 0.0  ;;  %v228_v59 = vsel %vm12_vm0, %v39_v56, 0.0  ;;  %v270_v60 = vmul.f32 %v32_v14, %v32_v14  ;;  %v41_v4 = vld [vmem:[%s543_s0 + $0xd8] sm:$0xff] }
  0x13   :  { %v197_v36 = vadd.f32 %v196_v27, %v195_v32  ;;  %v35_v32 = vld [vmem:[%s543_s0 + $0xa8] sm:$0xff]  ;;  %v230_v1 = vsel %vm12_vm0, %v40_v62, 0.0  ;;  %v271_v2 = vmul.f32 %v33_v20, %v33_v20  ;;  %v274_v20 = vmul.f32 %v36_v38, %v36_v38 }
  0x14   :  { %v298_v16 = vadd.f32 %v297_v7, %v296_v10  ;;  %v220_v35 = vsel %vm12_vm0, %v35_v32, 0.0  ;;  %v232_v7 = vsel %vm12_vm0, %v41_v4, 0.0  ;;  %v42_v10 = vld [vmem:[%s543_s0 + $0xe0] sm:$0xff]  ;;  %v273_v14 = vmul.f32 %v35_v32, %v35_v32 }
  0x15   :  { %v199_v43 = vadd.f32 %v198_v34, %v197_v36  ;;  %v266_v36 = vmul.f32 %v28_v54, %v28_v54  ;;  %v269_v54 = vmul.f32 %v31_v8, %v31_v8  ;;  %v272_v8 = vmul.f32 %v34_v26, %v34_v26 }
  0x16   :  { %v300_v22 = vadd.f32 %v299_v13, %v298_v16  ;;  %v234_v13 = vsel %vm12_vm0, %v42_v10, 0.0  ;;  %v43_v16 = vld [vmem:[%s543_s0 + $0xe8] sm:$0xff]  ;;  %v275_v26 = vmul.f32 %v37_v44, %v37_v44  ;;  %v276_v32 = vmul.f32 %v38_v50, %v38_v50 }
  0x17   :  { %v201_v49 = vadd.f32 %v200_v37, %v199_v43  ;;  %v307_v37 = vsel %vm12_vm0, %v264_v24, 0.0  ;;  %v309_v43 = vsel %vm12_vm0, %v265_v30, 0.0  ;;  %v279_v44 = vmul.f32 %v41_v4, %v41_v4 }
  0x18   :  { %v302_v28 = vadd.f32 %v301_v19, %v300_v22  ;;  %v236_v19 = vsel %vm12_vm0, %v43_v16, 0.0  ;;  %v44_v22 = vld [vmem:[%s543_s0 + $0xf0] sm:$0xff] }
  0x19   :  { %v203_v55 = vadd.f32 %v202_v45, %v201_v49  ;;  %v311_v49 = vsel %vm12_vm0, %v266_v36, 0.0  ;;  %v277_v36 = vmul.f32 %v39_v56, %v39_v56  ;;  %v282_v56 = vmul.f32 %v44_v22, %v44_v22 }
  0x1a   :  { %v304_v34 = vadd.f32 %v303_v25, %v302_v28  ;;  %v238_v25 = vsel %vm12_vm0, %v44_v22, 0.0  ;;  %v45_v28 = vld [vmem:[%s543_s0 + $0xf8] sm:$0xff] }
  0x1b   :  { %v205_v61 = vadd.f32 %v204_v51, %v203_v55  ;;  %v313_v55 = vsel %vm12_vm0, %v267_v42, 0.0 }
  0x1c   :  { %v306_v40 = vadd.f32 %v305_v31, %v304_v34  ;;  %v240_v31 = vsel %vm12_vm0, %v45_v28, 0.0 }
  0x1d   :  { %v207_v3 = vadd.f32 %v206_v57, %v205_v61  ;;  %v315_v61 = vsel %vm12_vm0, %v268_v48, 0.0  ;;  %v280_v48 = vmul.f32 %v42_v10, %v42_v10 }
  0x1e   :  { %v308_v46 = vadd.f32 %v307_v37, %v306_v40  ;;  %v329_v37 = vsel %vm12_vm0, %v275_v26, 0.0  ;;  %v278_v40 = vmul.f32 %v40_v62, %v40_v62 }
  0x1f   :  { %v209_v9 = vadd.f32 %v208_v63, %v207_v3  ;;  %v317_v3 = vsel %vm12_vm0, %v269_v54, 0.0 }
  0x20   :  { %v310_v52 = vadd.f32 %v309_v43, %v308_v46 }
  0x21   :  { %v211_v15 = vadd.f32 %v210_v5, %v209_v9  ;;  %v319_v9 = vsel %vm12_vm0, %v270_v60, 0.0  ;;  %v177_v60 = vld [vmem:[#allocation2] sm:$0x1] }
  0x22   :  { %v312_v58 = vadd.f32 %v311_v49, %v310_v52  ;;  %v335_v49 = vsel %vm12_vm0, %v278_v40, 0.0  ;;  %v281_v52 = vmul.f32 %v43_v16, %v43_v16 }
  0x23   :  { %v213_v21 = vadd.f32 %v212_v11, %v211_v15  ;;  %v321_v15 = vsel %vm12_vm0, %v271_v2, 0.0 }
  0x24   :  { %v314_v0 = vadd.f32 %v313_v55, %v312_v58  ;;  %v341_v62 = vsel %vm12_vm0, %v281_v52, 0.0 }
  0x25   :  { %v215_v27 = vadd.f32 %v214_v17, %v213_v21  ;;  %v323_v21 = vsel %vm12_vm0, %v272_v8, 0.0 }
  0x26   :  { %v316_v6 = vadd.f32 %v315_v61, %v314_v0  ;;  %v283_v61 = vmul.f32 %v45_v28, %v45_v28 }
  0x27   :  { %v217_v33 = vadd.f32 %v216_v23, %v215_v27  ;;  %v325_v27 = vsel %vm12_vm0, %v273_v14, 0.0 }
  0x28   :  { %v318_v12 = vadd.f32 %v317_v3, %v316_v6  ;;  %v345_v4 = vsel %vm12_vm0, %v283_v61, 0.0 }
  0x29   :  { %v219_v39 = vadd.f32 %v218_v29, %v217_v33  ;;  %v327_v33 = vsel %vm12_vm0, %v274_v20, 0.0 }
  0x2a   :  { %v320_v18 = vadd.f32 %v319_v9, %v318_v12  ;;  %v251_v12 = vld [vmem:[#allocation2 + $0x1] sm:$0x1] }
  0x2b   :  { %v221_v45 = vadd.f32 %v220_v35, %v219_v39 }
  0x2c   :  { %v322_v24 = vadd.f32 %v321_v15, %v320_v18 }
  0x2d   :  { %v223_v51 = vadd.f32 %v222_v41, %v221_v45  ;;  %v331_v41 = vsel %vm12_vm0, %v276_v32, 0.0  ;;  %v333_v45 = vsel %vm12_vm0, %v277_v36, 0.0 }
  0x2e   :  { %v324_v30 = vadd.f32 %v323_v21, %v322_v24 }
  0x2f   :  { %v225_v57 = vadd.f32 %v224_v47, %v223_v51 }
  0x30   :  { %v326_v35 = vadd.f32 %v325_v27, %v324_v30 }
  0x31   :  { %v227_v63 = vadd.f32 %v226_v53, %v225_v57  ;;  %v337_v53 = vsel %vm12_vm0, %v279_v44, 0.0  ;;  %v339_v57 = vsel %vm12_vm0, %v280_v48, 0.0 }
  0x32   :  { %v328_v39 = vadd.f32 %v327_v33, %v326_v35 }
  0x33   :  { %v229_v5 = vadd.f32 %v228_v59, %v227_v63 }
  0x34   :  { %v330_v43 = vadd.f32 %v329_v37, %v328_v39 }
  0x35   :  { %v231_v11 = vadd.f32 %v230_v1, %v229_v5  ;;  %v343_v1 = vsel %vm12_vm0, %v282_v56, 0.0 }
  0x36   :  { %v332_v47 = vadd.f32 %v331_v41, %v330_v43 }
  0x37   :  { %v233_v17 = vadd.f32 %v232_v7, %v231_v11 }
  0x38   :  { %v334_v51 = vadd.f32 %v333_v45, %v332_v47 }
  0x39   :  { %v235_v23 = vadd.f32 %v234_v13, %v233_v17 }
  0x3a   :  { %v336_v55 = vadd.f32 %v335_v49, %v334_v51 }
  0x3b   :  { %v237_v29 = vadd.f32 %v236_v19, %v235_v23 }
  0x3c   :  { %v338_v59 = vadd.f32 %v337_v53, %v336_v55 }
  0x3d   :  { %v239_v34 = vadd.f32 %v238_v25, %v237_v29 }
  0x3e   :  { %v340_v0 = vadd.f32 %v339_v57, %v338_v59 }
  0x3f   :  { %v241_v38 = vadd.f32 %v240_v31, %v239_v34 }
  0x40   :  { %v342_v3 = vadd.f32 %v341_v62, %v340_v0 }
  0x41   :  { %v242_v42 = vrot.slane %v241_v38, 4 }
  0x42   :  { %v344_v5 = vadd.f32 %v343_v1, %v342_v3 }
  0x43   :  { %v243_v46 = vadd.f32 %v242_v42, %v241_v38 }
  0x44   :  { %v346_v6 = vadd.f32 %v345_v4, %v344_v5 }
  0x45   :  { %v244_v50 = vrot.slane %v243_v46, 2 }
  0x46   :  { %v347_v7 = vrot.slane %v346_v6, 4 }
  0x47   :  { %v245_v54 = vadd.f32 %v244_v50, %v243_v46 }
  0x48   :  { %v348_v8 = vadd.f32 %v347_v7, %v346_v6 }
  0x49   :  { %v246_v58 = vrot.slane %v245_v54, 1 }
  0x4a   :  { %v349_v9 = vrot.slane %v348_v8, 2 }
  0x4b   :  { %v247_v63 = vadd.f32 %v246_v58, %v245_v54 }
  0x4c   :  { %v350_v10 = vadd.f32 %v349_v9, %v348_v8 }
  0x4d   :  { %v248_v2 = vadd.f32 %v247_v63, %v177_v60 }
  0x4e   :  { %v351_v11 = vrot.slane %v350_v10, 1 }
  0x4f   :  { %250 = vst.msk [vmem:[#allocation2] sm:$0x1] %vm249_vm1, %v248_v2 }
  0x50   :  { %v352_v13 = vadd.f32 %v351_v11, %v350_v10 }
  0x52   :  { %v353_v14 = vadd.f32 %v352_v13, %v251_v12 }
  0x54   :  { %354 = vst.msk [vmem:[#allocation2 + $0x1] sm:$0x1] %vm249_vm1, %v353_v14 }
  0x5b   :  { %v358_v15 = vld [vmem:[#allocation2] sm:$0xff] }
  0x5c   :  { %359 = vst.msk [vmem:[%s544_s1] sm:$0xff] %vm12_vm0, %v358_v15 }

// kernel: phasen_fwd.107
= control target key start
LH: loop header
LB: loop body
LE: loop exit
PB: predicated region body
PF: predicated region fallthrough
CT: control target
= control target key end

     0   :  { %v58_v4 = vlaneseq  ;;  %vm203_vm0 = vcmask 15360   ;;  %s781_s1 = inlined_call_operand.vmem [shape: f32[8,2], index: 1, kind: input, shape index: {}]   ;;  %s782_s0 = inlined_call_operand.vmem [shape: f32[256,2], index: 0, kind: input, shape index: {}]   ;;  %s783_s2 = inlined_call_operand.vmem [shape: f32[1,2], index: 2, kind: input, shape index: {}]   ;;  %s784_s3 = inlined_call_operand.vmem [shape: f32[1,2], index: 3, kind: input, shape index: {}]   ;;  %s785_s4 = inlined_call_operand.vmem [shape: f32[256,2], index: 4, kind: output, shape index: {}]  }
   0x1   :  { %v17_v0 = vld [vmem:[%s781_s1] sm:$0x1]  ;;  %v19_v1 = vld [vmem:[%s781_s1 + $0x1] sm:$0x1]  ;;  %v285_v12 = vld [vmem:[%s782_s0 + $0x8] sm:$0xff] }
   0x2   :  { %v18_v2 = vmul.f32 0.00390625, %v17_v0  ;;  %v20_v3 = vmul.f32 0.00390625, %v19_v1  ;;  %v274_v7 = vshrl.u32 %v58_v4, 7  ;;  %v280_v11 = vld [vmem:[%s782_s0] sm:$0xff]  ;;  %v294_v14 = vld [vmem:[%s782_s0 + $0x10] sm:$0xff]  ;;  %v299_v15 = vld [vmem:[%s782_s0 + $0x18] sm:$0xff] }
   0x3   :  { %v304_v16 = vld [vmem:[%s782_s0 + $0x20] sm:$0xff]  ;;  %v309_v17 = vld [vmem:[%s782_s0 + $0x28] sm:$0xff]  ;;  %v314_v18 = vld [vmem:[%s782_s0 + $0x30] sm:$0xff] }
   0x4   :  { %v21_v5 = vmul.f32 %v18_v2, %v18_v2  ;;  %v60_v10 = vsub.s32 0, %v274_v7  ;;  %v319_v19 = vld [vmem:[%s782_s0 + $0x38] sm:$0xff]  ;;  %v324_v20 = vld [vmem:[%s782_s0 + $0x40] sm:$0xff]  ;;  %v329_v21 = vld [vmem:[%s782_s0 + $0x48] sm:$0xff] }
   0x5   :  { %v334_v22 = vld [vmem:[%s782_s0 + $0x50] sm:$0xff]  ;;  %v339_v23 = vld [vmem:[%s782_s0 + $0x58] sm:$0xff]  ;;  %v344_v24 = vld [vmem:[%s782_s0 + $0x60] sm:$0xff] }
   0x6   :  { %v22_v6 = vsub.f32 %v20_v3, %v21_v5  ;;  %v289_v13 = vrot.slane %v18_v2, %v60_v10  ;;  %v349_v25 = vld [vmem:[%s782_s0 + $0x68] sm:$0xff]  ;;  %v94_v27 = vld [vmem:[%s783_s2] sm:$0x1]  ;;  %v361_v29 = vld [vmem:[%s782_s0 + $0x70] sm:$0xff] }
   0x7   :  { %v366_v30 = vld [vmem:[%s782_s0 + $0x78] sm:$0xff]  ;;  %v371_v31 = vld [vmem:[%s782_s0 + $0x80] sm:$0xff]  ;;  %v384_v36 = vld [vmem:[%s782_s0 + $0x88] sm:$0xff] }
   0x8   :  { %v23_v8 = vmax.f32 %v22_v6, 0.0  ;;  %v62_v26 = vsub.f32 %v280_v11, %v289_v13  ;;  %v63_v28 = vsub.f32 %v285_v12, %v289_v13  ;;  %v64_v32 = vsub.f32 %v294_v14, %v289_v13  ;;  %v389_v37 = vld [vmem:[%s782_s0 + $0x90] sm:$0xff]  ;;  %v394_v38 = vld [vmem:[%s782_s0 + $0x98] sm:$0xff]  ;;  %v407_v43 = vld [vmem:[%s782_s0 + $0xa0] sm:$0xff] }
   0x9   :  { %v65_v33 = vsub.f32 %v299_v15, %v289_v13  ;;  %v66_v34 = vsub.f32 %v304_v16, %v289_v13  ;;  %v67_v35 = vsub.f32 %v309_v17, %v289_v13  ;;  %v68_v39 = vsub.f32 %v314_v18, %v289_v13  ;;  %v412_v44 = vld [vmem:[%s782_s0 + $0xa8] sm:$0xff]  ;;  %v417_v45 = vld [vmem:[%s782_s0 + $0xb0] sm:$0xff]  ;;  %v430_v50 = vld [vmem:[%s782_s0 + $0xb8] sm:$0xff] }
   0xa   :  { %v24_v9 = vadd.f32 1e-05, %v23_v8  ;;  %v69_v40 = vsub.f32 %v319_v19, %v289_v13  ;;  %v70_v41 = vsub.f32 %v324_v20, %v289_v13  ;;  %v71_v42 = vsub.f32 %v329_v21, %v289_v13  ;;  %v435_v51 = vld [vmem:[%s782_s0 + $0xc0] sm:$0xff]  ;;  %v440_v52 = vld [vmem:[%s782_s0 + $0xc8] sm:$0xff]  ;;  %v453_v58 = vld [vmem:[%s782_s0 + $0xd0] sm:$0xff] }
   0xb   :  { %v72_v46 = vsub.f32 %v334_v22, %v289_v13  ;;  %v73_v47 = vsub.f32 %v339_v23, %v289_v13  ;;  %v74_v48 = vsub.f32 %v344_v24, %v289_v13  ;;  %v75_v49 = vsub.f32 %v349_v25, %v289_v13  ;;  %v458_v59 = vld [vmem:[%s782_s0 + $0xd8] sm:$0xff]  ;;  %v463_v60 = vld [vmem:[%s782_s0 + $0xe0] sm:$0xff]  ;;  %v474_v1 = vld [vmem:[%s782_s0 + $0xe8] sm:$0xff] }
   0xc   :  { %241 = vrsqrt.f32 %v24_v9  ;;  %v76_v54 = vsub.f32 %v361_v29, %v289_v13  ;;  %v77_v55 = vsub.f32 %v366_v30, %v289_v13  ;;  %v78_v56 = vsub.f32 %v371_v31, %v289_v13  ;;  %v479_v2 = vld [vmem:[%s782_s0 + $0xf0] sm:$0xff]  ;;  %v484_v3 = vld [vmem:[%s782_s0 + $0xf8] sm:$0xff]  ;;  %v507_v15 = vld [vmem:[%s784_s3] ss:$0 sm:$0xff] }
   0xd   :  { %v79_v57 = vsub.f32 %v384_v36, %v289_v13  ;;  %v80_v62 = vsub.f32 %v389_v37, %v289_v13  ;;  %v81_v63 = vsub.f32 %v394_v38, %v289_v13  ;;  %v82_v0 = vsub.f32 %v407_v43, %v289_v13 }
   0xe   :  { %v83_v4 = vsub.f32 %v412_v44, %v289_v13  ;;  %v84_v5 = vsub.f32 %v417_v45, %v289_v13  ;;  %v786_v38 = vsub.f32 %v430_v50, %v289_v13 }
  0x16   :  { %v242_v53 = vpop.eup %241 }
  0x17   :  { %v95_v61 = vmul.f32 %v242_v53, %v94_v27 }
  0x19   :  { %v496_v9 = vrot.slane %v95_v61, %v60_v10 }
  0x1b   :  { %v100_v18 = vmul.f32 %v496_v9, %v62_v26  ;;  %v101_v19 = vmul.f32 %v496_v9, %v63_v28  ;;  %v102_v27 = vmul.f32 %v496_v9, %v64_v32  ;;  %v103_v53 = vmul.f32 %v496_v9, %v65_v33 }
  0x1c   :  { %v104_v61 = vmul.f32 %v496_v9, %v66_v34  ;;  %v105_v16 = vmul.f32 %v496_v9, %v67_v35  ;;  %v106_v7 = vmul.f32 %v496_v9, %v68_v39  ;;  %v107_v14 = vmul.f32 %v496_v9, %v69_v40 }
  0x1d   :  { %v139_v10 = vadd.f32 %v507_v15, %v100_v18  ;;  %v140_v17 = vadd.f32 %v507_v15, %v101_v19  ;;  %v141_v26 = vadd.f32 %v507_v15, %v102_v27  ;;  %v142_v28 = vadd.f32 %v507_v15, %v103_v53 }
  0x1e   :  { %v143_v32 = vadd.f32 %v507_v15, %v104_v61  ;;  %v144_v33 = vadd.f32 %v507_v15, %v105_v16  ;;  %v145_v34 = vadd.f32 %v507_v15, %v106_v7  ;;  %v146_v35 = vadd.f32 %v507_v15, %v107_v14 }
  0x1f   :  { %v171_v12 = vmax.f32 %v139_v10, 0.0  ;;  %v172_v39 = vmax.f32 %v140_v17, 0.0  ;;  %v173_v11 = vmax.f32 %v141_v26, 0.0  ;;  %v174_v40 = vmax.f32 %v142_v28, 0.0 }
  0x20   :  { %v175_v8 = vmax.f32 %v143_v32, 0.0  ;;  %v176_v18 = vmax.f32 %v144_v33, 0.0  ;;  %v177_v6 = vmax.f32 %v145_v34, 0.0  ;;  %v178_v19 = vmax.f32 %v146_v35, 0.0 }
  0x21   :  { %204 = vst.msk [vmem:[%s785_s4] sm:$0xff] %vm203_vm0, %v171_v12  ;;  %205 = vst.msk [vmem:[%s785_s4 + $0x8] sm:$0xff] %vm203_vm0, %v172_v39  ;;  %v108_v12 = vmul.f32 %v496_v9, %v70_v41  ;;  %v109_v14 = vmul.f32 %v496_v9, %v71_v42  ;;  %v111_v16 = vmul.f32 %v496_v9, %v73_v47 }
  0x22   :  { %206 = vst.msk [vmem:[%s785_s4 + $0x10] sm:$0xff] %vm203_vm0, %v173_v11  ;;  %207 = vst.msk [vmem:[%s785_s4 + $0x18] sm:$0xff] %vm203_vm0, %v174_v40  ;;  %v110_v11 = vmul.f32 %v496_v9, %v72_v46  ;;  %v112_v20 = vmul.f32 %v496_v9, %v74_v48  ;;  %v113_v21 = vmul.f32 %v496_v9, %v75_v49 }
  0x23   :  { %208 = vst.msk [vmem:[%s785_s4 + $0x20] sm:$0xff] %vm203_vm0, %v175_v8  ;;  %209 = vst.msk [vmem:[%s785_s4 + $0x28] sm:$0xff] %vm203_vm0, %v176_v18  ;;  %v114_v22 = vmul.f32 %v496_v9, %v76_v54  ;;  %v115_v23 = vmul.f32 %v496_v9, %v77_v55  ;;  %v147_v41 = vadd.f32 %v507_v15, %v108_v12 }
  0x24   :  { %210 = vst.msk [vmem:[%s785_s4 + $0x30] sm:$0xff] %vm203_vm0, %v177_v6  ;;  %211 = vst.msk [vmem:[%s785_s4 + $0x38] sm:$0xff] %vm203_vm0, %v178_v19  ;;  %v148_v24 = vadd.f32 %v507_v15, %v109_v14  ;;  %v149_v42 = vadd.f32 %v507_v15, %v110_v11  ;;  %v150_v25 = vadd.f32 %v507_v15, %v111_v16 }
  0x25   :  { %v151_v46 = vadd.f32 %v507_v15, %v112_v20  ;;  %v152_v47 = vadd.f32 %v507_v15, %v113_v21  ;;  %v153_v29 = vadd.f32 %v507_v15, %v114_v22  ;;  %v154_v48 = vadd.f32 %v507_v15, %v115_v23 }
  0x26   :  { %v179_v49 = vmax.f32 %v147_v41, 0.0  ;;  %v180_v30 = vmax.f32 %v148_v24, 0.0  ;;  %v181_v54 = vmax.f32 %v149_v42, 0.0  ;;  %v182_v55 = vmax.f32 %v150_v25, 0.0 }
  0x27   :  { %v183_v6 = vmax.f32 %v151_v46, 0.0  ;;  %v184_v8 = vmax.f32 %v152_v47, 0.0  ;;  %v185_v7 = vmax.f32 %v153_v29, 0.0  ;;  %v186_v10 = vmax.f32 %v154_v48, 0.0 }
  0x28   :  { %212 = vst.msk [vmem:[%s785_s4 + $0x40] sm:$0xff] %vm203_vm0, %v179_v49  ;;  %213 = vst.msk [vmem:[%s785_s4 + $0x48] sm:$0xff] %vm203_vm0, %v180_v30  ;;  %v116_v17 = vmul.f32 %v496_v9, %v78_v56  ;;  %v117_v27 = vmul.f32 %v496_v9, %v79_v57  ;;  %v118_v53 = vmul.f32 %v496_v9, %v80_v62 }
  0x29   :  { %214 = vst.msk [vmem:[%s785_s4 + $0x50] sm:$0xff] %vm203_vm0, %v181_v54  ;;  %215 = vst.msk [vmem:[%s785_s4 + $0x58] sm:$0xff] %vm203_vm0, %v182_v55  ;;  %v119_v61 = vmul.f32 %v496_v9, %v81_v63  ;;  %v120_v31 = vmul.f32 %v496_v9, %v82_v0  ;;  %v121_v36 = vmul.f32 %v496_v9, %v83_v4 }
  0x2a   :  { %216 = vst.msk [vmem:[%s785_s4 + $0x60] sm:$0xff] %vm203_vm0, %v183_v6  ;;  %217 = vst.msk [vmem:[%s785_s4 + $0x68] sm:$0xff] %vm203_vm0, %v184_v8  ;;  %v122_v37 = vmul.f32 %v496_v9, %v84_v5  ;;  %v123_v56 = vmul.f32 %v496_v9, %v786_v38  ;;  %v155_v57 = vadd.f32 %v507_v15, %v116_v17 }
  0x2b   :  { %218 = vst.msk [vmem:[%s785_s4 + $0x70] sm:$0xff] %vm203_vm0, %v185_v7  ;;  %219 = vst.msk [vmem:[%s785_s4 + $0x78] sm:$0xff] %vm203_vm0, %v186_v10  ;;  %v156_v43 = vadd.f32 %v507_v15, %v117_v27  ;;  %v157_v62 = vadd.f32 %v507_v15, %v118_v53  ;;  %v158_v44 = vadd.f32 %v507_v15, %v119_v61 }
  0x2c   :  { %v159_v63 = vadd.f32 %v507_v15, %v120_v31  ;;  %v160_v0 = vadd.f32 %v507_v15, %v121_v36  ;;  %v161_v45 = vadd.f32 %v507_v15, %v122_v37  ;;  %v162_v4 = vadd.f32 %v507_v15, %v123_v56 }
  0x2d   :  { %v187_v5 = vmax.f32 %v155_v57, 0.0  ;;  %v188_v50 = vmax.f32 %v156_v43, 0.0  ;;  %v189_v26 = vmax.f32 %v157_v62, 0.0  ;;  %v190_v28 = vmax.f32 %v158_v44, 0.0 }
  0x2e   :  { %v191_v32 = vmax.f32 %v159_v63, 0.0  ;;  %v192_v33 = vmax.f32 %v160_v0, 0.0  ;;  %v193_v34 = vmax.f32 %v161_v45, 0.0  ;;  %v194_v35 = vmax.f32 %v162_v4, 0.0 }
  0x2f   :  { %220 = vst.msk [vmem:[%s785_s4 + $0x80] sm:$0xff] %vm203_vm0, %v187_v5  ;;  %221 = vst.msk [vmem:[%s785_s4 + $0x88] sm:$0xff] %vm203_vm0, %v188_v50  ;;  %v787_v39 = vsub.f32 %v435_v51, %v289_v13  ;;  %v788_v18 = vsub.f32 %v440_v52, %v289_v13  ;;  %v789_v12 = vsub.f32 %v453_v58, %v289_v13 }
  0x30   :  { %222 = vst.msk [vmem:[%s785_s4 + $0x90] sm:$0xff] %vm203_vm0, %v189_v26  ;;  %223 = vst.msk [vmem:[%s785_s4 + $0x98] sm:$0xff] %vm203_vm0, %v190_v28  ;;  %v790_v11 = vsub.f32 %v458_v59, %v289_v13  ;;  %v791_v51 = vsub.f32 %v463_v60, %v289_v13  ;;  %v792_v58 = vsub.f32 %v474_v1, %v289_v13 }
  0x31   :  { %v124_v40 = vmul.f32 %v496_v9, %v787_v39  ;;  %v125_v19 = vmul.f32 %v496_v9, %v788_v18  ;;  %v126_v14 = vmul.f32 %v496_v9, %v789_v12  ;;  %224 = vst.msk [vmem:[%s785_s4 + $0xa0] sm:$0xff] %vm203_vm0, %v191_v32  ;;  %225 = vst.msk [vmem:[%s785_s4 + $0xa8] sm:$0xff] %vm203_vm0, %v192_v33 }
  0x32   :  { %v127_v16 = vmul.f32 %v496_v9, %v790_v11  ;;  %226 = vst.msk [vmem:[%s785_s4 + $0xb0] sm:$0xff] %vm203_vm0, %v193_v34  ;;  %227 = vst.msk [vmem:[%s785_s4 + $0xb8] sm:$0xff] %vm203_vm0, %v194_v35  ;;  %v128_v52 = vmul.f32 %v496_v9, %v791_v51  ;;  %v129_v59 = vmul.f32 %v496_v9, %v792_v58 }
  0x33   :  { %v793_v20 = vsub.f32 %v479_v2, %v289_v13  ;;  %v794_v22 = vsub.f32 %v484_v3, %v289_v13  ;;  %v163_v41 = vadd.f32 %v507_v15, %v124_v40  ;;  %v164_v60 = vadd.f32 %v507_v15, %v125_v19 }
  0x34   :  { %v165_v24 = vadd.f32 %v507_v15, %v126_v14  ;;  %v166_v1 = vadd.f32 %v507_v15, %v127_v16  ;;  %v167_v42 = vadd.f32 %v507_v15, %v128_v52  ;;  %v168_v25 = vadd.f32 %v507_v15, %v129_v59 }
  0x35   :  { %v130_v21 = vmul.f32 %v496_v9, %v793_v20  ;;  %v131_v23 = vmul.f32 %v496_v9, %v794_v22  ;;  %v195_v47 = vmax.f32 %v163_v41, 0.0  ;;  %v196_v13 = vmax.f32 %v164_v60, 0.0 }
  0x36   :  { %v197_v3 = vmax.f32 %v165_v24, 0.0  ;;  %v198_v9 = vmax.f32 %v166_v1, 0.0  ;;  %v199_v29 = vmax.f32 %v167_v42, 0.0  ;;  %v200_v48 = vmax.f32 %v168_v25, 0.0 }
  0x37   :  { %v169_v2 = vadd.f32 %v507_v15, %v130_v21  ;;  %v170_v46 = vadd.f32 %v507_v15, %v131_v23  ;;  %228 = vst.msk [vmem:[%s785_s4 + $0xc0] sm:$0xff] %vm203_vm0, %v195_v47  ;;  %229 = vst.msk [vmem:[%s785_s4 + $0xc8] sm:$0xff] %vm203_vm0, %v196_v13 }
  0x38   :  { %230 = vst.msk [vmem:[%s785_s4 + $0xd0] sm:$0xff] %vm203_vm0, %v197_v3  ;;  %231 = vst.msk [vmem:[%s785_s4 + $0xd8] sm:$0xff] %vm203_vm0, %v198_v9 }
  0x39   :  { %v201_v49 = vmax.f32 %v169_v2, 0.0  ;;  %v202_v30 = vmax.f32 %v170_v46, 0.0  ;;  %232 = vst.msk [vmem:[%s785_s4 + $0xe0] sm:$0xff] %vm203_vm0, %v199_v29  ;;  %233 = vst.msk [vmem:[%s785_s4 + $0xe8] sm:$0xff] %vm203_vm0, %v200_v48 }
  0x3b   :  { %234 = vst.msk [vmem:[%s785_s4 + $0xf0] sm:$0xff] %vm203_vm0, %v201_v49  ;;  %235 = vst.msk [vmem:[%s785_s4 + $0xf8] sm:$0xff] %vm203_vm0, %v202_v30 }

// kernel: phasen_fwd.108
= control target key start
LH: loop header
LB: loop body
LE: loop exit
PB: predicated region body
PF: predicated region fallthrough
CT: control target
= control target key end

     0   :  { %v358_v1 = vmov 0.0   ;;  %vm359_vm0 = vmmov 0   ;;  %vm185_vm1 = vcmask 261120   ;;  %vm271_vm2 = vcmask 130048   ;;  %s452_s1 = inlined_call_operand.vmem [shape: bf16[288,16], index: 1, kind: input, shape index: {}]   ;;  %s453_s0 = inlined_call_operand.vmem [shape: bf16[16,288], index: 0, kind: input, shape index: {}]   ;;  %s454_s2 = inlined_call_operand.vmem [shape: f32[1,16], index: 2, kind: input, shape index: {}]   ;;  %s455_s3 = inlined_call_operand.vmem [shape: f32[16,16], index: 3, kind: output, shape index: {}]  }
   0x1   :  { %v336_v0 = vld [vmem:[%s452_s1 + $0x40] sm:$0xff]   ;;  %326 = vmatprep.subr.bf16.mxu1 %v358_v1  ;;  %330 = vmatprep.mubr.msk.bf16.mxu1 %vm359_vm0, %v358_v1  ;;  %v338_v3 = vld [vmem:[%s452_s1 + $0x48] sm:$0xff]   ;;  %v340_v5 = vld [vmem:[%s452_s1 + $0x50] sm:$0xff]  }
   0x2   :  { %v337_v2 = vld [vmem:[%s452_s1] sm:$0xff]   ;;  %301 = vmatprep.subr.bf16.mxu0 %v336_v0  ;;  %v339_v4 = vld [vmem:[%s452_s1 + $0x8] sm:$0xff]   ;;  %v341_v6 = vld [vmem:[%s452_s1 + $0x10] sm:$0xff]  }
   0x3   :  { %302 = vmatpush3.bf16.msra.mxu0 %v337_v2  ;;  %v342_v7 = vld [vmem:[%s452_s1 + $0x58] sm:$0xff]   ;;  %v344_v9 = vld [vmem:[%s452_s1 + $0x60] sm:$0xff]   ;;  %v346_v12 = vld [vmem:[%s452_s1 + $0x68] sm:$0xff]  }
   0x4   :  { %303 = vmatprep.subr.bf16.mxu0 %v338_v3  ;;  %v343_v8 = vld [vmem:[%s452_s1 + $0x18] sm:$0xff]   ;;  %v350_v10 = vld [vmem:[%s452_s1 + $0x80] sm:$0xff]   ;;  %v347_v13 = vld [vmem:[%s452_s1 + $0x28] sm:$0xff]  }
   0x5   :  { %v345_v11 = vld [vmem:[%s452_s1 + $0x20] sm:$0xff]   ;;  %327 = vmatpush3.bf16.msra.mxu1 %v350_v10  ;;  %v356_v15 = vld [vmem:[%s452_s1 + $0x88] sm:$0xff]   ;;  %v348_v16 = vld [vmem:[%s452_s1 + $0x70] sm:$0xff]  }
   0x6   :  { %328 = vmatprep.subr.bf16.mxu1 %v358_v1  ;;  %v355_v14 = vld [vmem:[%s453_s0 + $0x4] ss:$12 sps:$4 sm:$0xff]   ;;  %v357_v17 = vld [vmem:[%s453_s0 + $0x8] ss:$12 sps:$4 sm:$0xff]   ;;  %v351_v19 = vld [vmem:[%s452_s1 + $0x78] sm:$0xff]  }
   0x7   :  { %304 = vmatpush3.bf16.msra.mxu0 %v339_v4  ;;  %221 = vmatprep.mubr.bf16.mxu0 %v355_v14  ;;  %v349_v18 = vld [vmem:[%s452_s1 + $0x30] sm:$0xff]   ;;  %v352_v20 = vld [vmem:[%s452_s1 + $0x38] sm:$0xff]   ;;  %v353_v21 = vld [vmem:[%s453_s0] ss:$12 sps:$4 sm:$0xff]  }
   0x8   :  { %305 = vmatprep.subr.bf16.mxu0 %v340_v5  ;;  %v278_v28 = vld [vmem:[%s454_s2] ss:$0 sm:$0xff] }
   0x9   :  { %329 = vmatpush3.bf16.msra.mxu1 %v356_v15 }
   0xb   :  { %306 = vmatpush3.bf16.msra.mxu0 %v341_v6 }
   0xc   :  { %307 = vmatprep.subr.bf16.mxu0 %v342_v7  ;;  %331 = vmatmul.mubr.msk.bf16.vlgmr.msra.gmra.mrb[0].mxu1 %vm185_vm1, %v357_v17 }
   0xf   :  { %308 = vmatpush3.bf16.msra.mxu0 %v343_v8 }
  0x10   :  { %309 = vmatprep.subr.bf16.mxu0 %v344_v9 }
  0x13   :  { %310 = vmatpush3.bf16.msra.mxu0 %v345_v11 }
  0x14   :  { %311 = vmatprep.subr.bf16.mxu0 %v346_v12 }
  0x17   :  { %312 = vmatpush3.bf16.msra.mxu0 %v347_v13 }
  0x18   :  { %313 = vmatprep.subr.bf16.mxu0 %v348_v16 }
  0x1b   :  { %314 = vmatpush3.bf16.msra.mxu0 %v349_v18 }
  0x1c   :  { %315 = vmatprep.subr.bf16.mxu0 %v351_v19 }
  0x1f   :  { %316 = vmatpush3.bf16.msra.mxu0 %v352_v20 }
  0x22   :  { %222 = vmatmul.mubr.bf16.vlgmr.msra.gmra.mrb[0].mxu0 %v353_v21 }
  0xdf   :  { %v264_v22 = vpop.f32.mrb[0].mxu1 }
  0xe0   :  { %v332_v23 = vpop.f32.mrb[1].mxu1 }
  0xe1   :  { %v267_v24 = vpop.f32.mrb[2].mxu1 }
  0xe2   :  { %v333_v25 = vpop.f32.mrb[3].mxu1 }
  0xf5   :  { %v317_v26 = vpop.f32.mrb[0].mxu0 }
  0xf6   :  { %v318_v27 = vpop.f32.mrb[1].mxu0 }
  0xf7   :  { %v319_v29 = vadd.f32 %v318_v27, %v317_v26  ;;  %v320_v30 = vpop.f32.mrb[2].mxu0 }
  0xf8   :  { %v321_v31 = vpop.f32.mrb[3].mxu0 }
  0xf9   :  { %v224_v32 = vadd.f32 %v319_v29, %v278_v28  ;;  %v322_v33 = vadd.f32 %v321_v31, %v320_v30 }
  0xfb   :  { %v265_v34 = vadd.f32 %v264_v22, %v224_v32  ;;  %v227_v35 = vadd.f32 %v322_v33, %v278_v28 }
  0xfd   :  { %272 = vst.msk [vmem:[%s455_s3] sm:$0xff] %vm271_vm2, %v265_v34  ;;  %v268_v36 = vadd.f32 %v267_v24, %v227_v35 }
  0xff   :  { %273 = vst.msk [vmem:[%s455_s3 + $0x8] sm:$0xff] %vm271_vm2, %v268_v36 }

// kernel: phasen_fwd.110
= control target key start
LH: loop header
LB: loop body
LE: loop exit
PB: predicated region body
PF: predicated region fallthrough
CT: control target
= control target key end

     0   :  { %v28_v6 = vlaneseq  ;;  %vm53_vm0 = vcmask 130048   ;;  %s112_s1 = inlined_call_operand.vmem [shape: f32[8,16], index: 1, kind: input, shape index: {}]   ;;  %s113_s0 = inlined_call_operand.vmem [shape: f32[16,16], index: 0, kind: input, shape index: {}]   ;;  %s114_s2 = inlined_call_operand.vmem [shape: f32[1,16], index: 2, kind: input, shape index: {}]   ;;  %s115_s3 = inlined_call_operand.vmem [shape: f32[1,16], index: 3, kind: input, shape index: {}]   ;;  %s116_s4 = inlined_call_operand.vmem [shape: f32[16,16], index: 4, kind: output, shape index: {}]  }
   0x1   :  { %v17_v0 = vld [vmem:[%s112_s1] sm:$0x1]  ;;  %v19_v1 = vld [vmem:[%s112_s1 + $0x1] sm:$0x1]  ;;  %v27_v14 = vld [vmem:[%s113_s0 + $0x8] sm:$0xff] }
   0x2   :  { %v18_v2 = vmul.f32 0.0625, %v17_v0  ;;  %v20_v3 = vmul.f32 0.0625, %v19_v1  ;;  %v29_v9 = vshrl.u32 %v28_v6, 7  ;;  %v26_v12 = vld [vmem:[%s113_s0] sm:$0xff] }
   0x3   :  { %v34_v13 = vld [vmem:[%s114_s2] sm:$0x1] }
   0x4   :  { %v21_v4 = vmul.f32 %v18_v2, %v18_v2  ;;  %v30_v10 = vsub.s32 0, %v29_v9  ;;  %v60_v20 = vld [vmem:[%s115_s3] ss:$0 sm:$0xff] }
   0x6   :  { %v22_v5 = vsub.f32 %v20_v3, %v21_v4  ;;  %v31_v11 = vrot.slane %v18_v2, %v30_v10 }
   0x8   :  { %v23_v7 = vmax.f32 %v22_v5, 0.0  ;;  %v32_v16 = vsub.f32 %v26_v12, %v31_v11  ;;  %v33_v18 = vsub.f32 %v27_v14, %v31_v11 }
   0xa   :  { %v24_v8 = vadd.f32 1e-05, %v23_v7 }
   0xc   :  { %61 = vrsqrt.f32 %v24_v8 }
  0x16   :  { %v62_v15 = vpop.eup %61 }
  0x17   :  { %v35_v17 = vmul.f32 %v62_v15, %v34_v13 }
  0x19   :  { %v39_v19 = vrot.slane %v35_v17, %v30_v10 }
  0x1b   :  { %v40_v21 = vmul.f32 %v39_v19, %v32_v16  ;;  %v41_v22 = vmul.f32 %v39_v19, %v33_v18 }
  0x1d   :  { %v49_v23 = vadd.f32 %v60_v20, %v40_v21  ;;  %v50_v24 = vadd.f32 %v60_v20, %v41_v22 }
  0x1f   :  { %v51_v25 = vmax.f32 %v49_v23, 0.0  ;;  %v52_v26 = vmax.f32 %v50_v24, 0.0 }
  0x21   :  { %54 = vst.msk [vmem:[%s116_s4] sm:$0xff] %vm53_vm0, %v51_v25  ;;  %55 = vst.msk [vmem:[%s116_s4 + $0x8] sm:$0xff] %vm53_vm0, %v52_v26 }

// kernel: phasen_fwd.109
= control target key start
LH: loop header
LB: loop body
LE: loop exit
PB: predicated region body
PF: predicated region fallthrough
CT: control target
= control target key end

     0   :  { %vm12_vm0 = vcmask 130048   ;;  %v65_v0 = vmov 0.0   ;;  %vm39_vm1 = vcmask 122880   ;;  %s91_s0 = inlined_call_operand.vmem [shape: f32[16,16], index: 0, kind: input, shape index: {}]   ;;  %s92_s1 = inlined_call_operand.vmem [shape: f32[8,16], index: 1, kind: output, shape index: {}]  }
   0x1   :  { %13 = vst.msk [vmem:[#allocation2] sm:$0xff] %vm12_vm0, %v65_v0  ;;  %v14_v1 = vld [vmem:[%s91_s0] sm:$0xff]  ;;  %v15_v2 = vld [vmem:[%s91_s0 + $0x8] sm:$0xff] }
   0x2   :  { %v29_v3 = vsel %vm12_vm0, %v14_v1, 0.0  ;;  %v30_v4 = vsel %vm12_vm0, %v15_v2, 0.0  ;;  %v42_v5 = vmul.f32 %v14_v1, %v14_v1  ;;  %v43_v6 = vmul.f32 %v15_v2, %v15_v2 }
   0x3   :  { %v31_v7 = vadd.f32 %v30_v4, %v29_v3 }
   0x4   :  { %v44_v8 = vsel %vm12_vm0, %v42_v5, 0.0  ;;  %v45_v9 = vsel %vm12_vm0, %v43_v6, 0.0 }
   0x5   :  { %v32_v10 = vrot.slane %v31_v7, 4  ;;  %v46_v11 = vadd.f32 %v45_v9, %v44_v8 }
   0x7   :  { %v33_v12 = vadd.f32 %v32_v10, %v31_v7  ;;  %v47_v13 = vrot.slane %v46_v11, 4 }
   0x8   :  { %v27_v20 = vld [vmem:[#allocation2] sm:$0x1]  ;;  %v41_v23 = vld [vmem:[#allocation2 + $0x1] sm:$0x1] }
   0x9   :  { %v34_v14 = vrot.slane %v33_v12, 2  ;;  %v48_v15 = vadd.f32 %v47_v13, %v46_v11 }
   0xb   :  { %v35_v16 = vadd.f32 %v34_v14, %v33_v12  ;;  %v49_v17 = vrot.slane %v48_v15, 2 }
   0xd   :  { %v36_v18 = vrot.slane %v35_v16, 1  ;;  %v50_v19 = vadd.f32 %v49_v17, %v48_v15 }
   0xf   :  { %v37_v21 = vadd.f32 %v36_v18, %v35_v16  ;;  %v51_v22 = vrot.slane %v50_v19, 1 }
  0x11   :  { %v38_v24 = vadd.f32 %v37_v21, %v27_v20  ;;  %v52_v25 = vadd.f32 %v51_v22, %v50_v19 }
  0x13   :  { %40 = vst.msk [vmem:[#allocation2] sm:$0x1] %vm39_vm1, %v38_v24  ;;  %v53_v26 = vadd.f32 %v52_v25, %v41_v23 }
  0x15   :  { %54 = vst.msk [vmem:[#allocation2 + $0x1] sm:$0x1] %vm39_vm1, %v53_v26 }
  0x1c   :  { %v58_v27 = vld [vmem:[#allocation2] sm:$0xff] }
  0x1d   :  { %59 = vst.msk [vmem:[%s92_s1] sm:$0xff] %vm12_vm0, %v58_v27 }

// kernel: phasen_fwd.111
= control target key start
LH: loop header
LB: loop body
LE: loop exit
PB: predicated region body
PF: predicated region fallthrough
CT: control target
= control target key end

     0   :  { %v307_v0 = vmov 0   ;;  %vm267_vm0 = vcmask 64512   ;;  %s643_s1 = inlined_call_operand.vmem [shape: f32[256,1], index: 1, kind: input, shape index: {}]   ;;  %s644_s0 = inlined_call_operand.vmem [shape: f32[256,8], index: 0, kind: input, shape index: {}]   ;;  %s645_s2 = inlined_call_operand.vmem [shape: f32[256,8], index: 2, kind: output, shape index: {}]  }
   0x1   :  { %306 = vset.pattern.permute.xlu1 %v307_v0  ;;  %305 = vset.pattern.permute.xlu0 %v307_v0  ;;  %v45_v1 = vld [vmem:[%s643_s1 + $0x10] sm:$0xff]  ;;  %v43_v2 = vld [vmem:[%s643_s1] sm:$0xff]  ;;  %v46_v3 = vld [vmem:[%s643_s1 + $0x18] sm:$0xff] }
   0x2   :  { %87 = vperm.xlu1 %306, %v45_v1   ;;  %77 = vperm.xlu0 %305, %v43_v2   ;;  %v44_v4 = vld [vmem:[%s643_s1 + $0x8] sm:$0xff]  ;;  %v47_v6 = vld [vmem:[%s643_s1 + $0x20] sm:$0xff]  ;;  %v50_v7 = vld [vmem:[%s643_s1 + $0x38] sm:$0xff] }
   0x3   :  { %v48_v5 = vld [vmem:[%s643_s1 + $0x28] sm:$0xff]  ;;  %v49_v8 = vld [vmem:[%s643_s1 + $0x30] sm:$0xff]  ;;  %v51_v10 = vld [vmem:[%s643_s1 + $0x40] sm:$0xff] }
   0x4   :  { %v52_v9 = vld [vmem:[%s643_s1 + $0x48] sm:$0xff]  ;;  %v54_v11 = vld [vmem:[%s643_s1 + $0x58] sm:$0xff]  ;;  %v53_v12 = vld [vmem:[%s643_s1 + $0x50] sm:$0xff] }
   0x5   :  { %v56_v13 = vld [vmem:[%s643_s1 + $0x68] sm:$0xff]  ;;  %v55_v14 = vld [vmem:[%s643_s1 + $0x60] sm:$0xff]  ;;  %v58_v15 = vld [vmem:[%s643_s1 + $0x78] sm:$0xff] }
   0x6   :  { %92 = vperm.xlu1 %306, %v46_v3   ;;  %82 = vperm.xlu0 %305, %v44_v4   ;;  %v57_v16 = vld [vmem:[%s643_s1 + $0x70] sm:$0xff]  ;;  %v60_v17 = vld [vmem:[%s643_s1 + $0x88] sm:$0xff]  ;;  %v59_v18 = vld [vmem:[%s643_s1 + $0x80] sm:$0xff] }
   0x7   :  { %v62_v19 = vld [vmem:[%s643_s1 + $0x98] sm:$0xff]  ;;  %v61_v20 = vld [vmem:[%s643_s1 + $0x90] sm:$0xff]  ;;  %v64_v21 = vld [vmem:[%s643_s1 + $0xa8] sm:$0xff] }
   0x8   :  { %v63_v22 = vld [vmem:[%s643_s1 + $0xa0] sm:$0xff]  ;;  %v66_v23 = vld [vmem:[%s643_s1 + $0xb8] sm:$0xff]  ;;  %v65_v24 = vld [vmem:[%s643_s1 + $0xb0] sm:$0xff] }
   0x9   :  { %v68_v25 = vld [vmem:[%s643_s1 + $0xc8] sm:$0xff]  ;;  %v67_v26 = vld [vmem:[%s643_s1 + $0xc0] sm:$0xff]  ;;  %v70_v27 = vld [vmem:[%s643_s1 + $0xd8] sm:$0xff] }
   0xa   :  { %102 = vperm.xlu1 %306, %v48_v5   ;;  %97 = vperm.xlu0 %305, %v47_v6   ;;  %v69_v28 = vld [vmem:[%s643_s1 + $0xd0] sm:$0xff]  ;;  %v72_v29 = vld [vmem:[%s643_s1 + $0xe8] sm:$0xff]  ;;  %v71_v30 = vld [vmem:[%s643_s1 + $0xe0] sm:$0xff] }
   0xb   :  { %v74_v31 = vld [vmem:[%s643_s1 + $0xf8] sm:$0xff]  ;;  %v73_v32 = vld [vmem:[%s643_s1 + $0xf0] sm:$0xff]  ;;  %v11_v34 = vld [vmem:[%s644_s0] sm:$0xff] }
   0xc   :  { %v13_v33 = vld [vmem:[%s644_s0 + $0x10] sm:$0xff]  ;;  %v14_v39 = vld [vmem:[%s644_s0 + $0x18] sm:$0xff]  ;;  %v12_v40 = vld [vmem:[%s644_s0 + $0x8] sm:$0xff] }
   0xd   :  { %v16_v45 = vld [vmem:[%s644_s0 + $0x28] sm:$0xff]  ;;  %v15_v46 = vld [vmem:[%s644_s0 + $0x20] sm:$0xff]  ;;  %v18_v51 = vld [vmem:[%s644_s0 + $0x38] sm:$0xff] }
   0xe   :  { %112 = vperm.xlu1 %306, %v50_v7   ;;  %107 = vperm.xlu0 %305, %v49_v8   ;;  %v17_v52 = vld [vmem:[%s644_s0 + $0x30] sm:$0xff]  ;;  %v20_v57 = vld [vmem:[%s644_s0 + $0x48] sm:$0xff]  ;;  %v19_v58 = vld [vmem:[%s644_s0 + $0x40] sm:$0xff] }
   0xf   :  { %v22_v63 = vld [vmem:[%s644_s0 + $0x58] sm:$0xff]  ;;  %v21_v0 = vld [vmem:[%s644_s0 + $0x50] sm:$0xff]  ;;  %v24_v5 = vld [vmem:[%s644_s0 + $0x68] sm:$0xff] }
  0x10   :  { %v23_v6 = vld [vmem:[%s644_s0 + $0x60] sm:$0xff] }
  0x12   :  { %122 = vperm.xlu1 %306, %v52_v9   ;;  %117 = vperm.xlu0 %305, %v51_v10  }
  0x16   :  { %132 = vperm.xlu1 %306, %v54_v11   ;;  %127 = vperm.xlu0 %305, %v53_v12   ;;  %v26_v11 = vld [vmem:[%s644_s0 + $0x78] sm:$0xff]  ;;  %v25_v12 = vld [vmem:[%s644_s0 + $0x70] sm:$0xff] }
  0x1a   :  { %142 = vperm.xlu1 %306, %v56_v13   ;;  %137 = vperm.xlu0 %305, %v55_v14  }
  0x1e   :  { %152 = vperm.xlu1 %306, %v58_v15   ;;  %147 = vperm.xlu0 %305, %v57_v16  }
  0x22   :  { %162 = vperm.xlu1 %306, %v60_v17   ;;  %157 = vperm.xlu0 %305, %v59_v18   ;;  %v28_v17 = vld [vmem:[%s644_s0 + $0x88] sm:$0xff]  ;;  %v27_v18 = vld [vmem:[%s644_s0 + $0x80] sm:$0xff] }
  0x26   :  { %172 = vperm.xlu1 %306, %v62_v19   ;;  %167 = vperm.xlu0 %305, %v61_v20  }
  0x2a   :  { %182 = vperm.xlu1 %306, %v64_v21   ;;  %177 = vperm.xlu0 %305, %v63_v22  }
  0x2e   :  { %192 = vperm.xlu1 %306, %v66_v23   ;;  %187 = vperm.xlu0 %305, %v65_v24   ;;  %v30_v23 = vld [vmem:[%s644_s0 + $0x98] sm:$0xff]  ;;  %v29_v24 = vld [vmem:[%s644_s0 + $0x90] sm:$0xff] }
  0x32   :  { %202 = vperm.xlu1 %306, %v68_v25   ;;  %197 = vperm.xlu0 %305, %v67_v26  }
  0x36   :  { %212 = vperm.xlu1 %306, %v70_v27   ;;  %207 = vperm.xlu0 %305, %v69_v28  }
  0x3a   :  { %222 = vperm.xlu1 %306, %v72_v29   ;;  %217 = vperm.xlu0 %305, %v71_v30   ;;  %v32_v29 = vld [vmem:[%s644_s0 + $0xa8] sm:$0xff]  ;;  %v31_v30 = vld [vmem:[%s644_s0 + $0xa0] sm:$0xff] }
  0x3e   :  { %232 = vperm.xlu1 %306, %v74_v31   ;;  %227 = vperm.xlu0 %305, %v73_v32  }
  0x81   :  { %v88_v35 = vpop.permute.xlu1 %87  ;;  %v78_v36 = vpop.permute.xlu0 %77 }
  0x82   :  { %v237_v37 = vmul.f32 %v88_v35, %v13_v33  ;;  %v235_v38 = vmul.f32 %v78_v36, %v11_v34  ;;  %v34_v35 = vld [vmem:[%s644_s0 + $0xb8] sm:$0xff]  ;;  %v33_v36 = vld [vmem:[%s644_s0 + $0xb0] sm:$0xff] }
  0x84   :  { %270 = vst.msk [vmem:[%s645_s2 + $0x10] sm:$0xff] %vm267_vm0, %v237_v37  ;;  %268 = vst.msk [vmem:[%s645_s2] sm:$0xff] %vm267_vm0, %v235_v38 }
  0x85   :  { %v93_v41 = vpop.permute.xlu1 %92  ;;  %v83_v42 = vpop.permute.xlu0 %82 }
  0x86   :  { %v238_v43 = vmul.f32 %v93_v41, %v14_v39  ;;  %v236_v44 = vmul.f32 %v83_v42, %v12_v40  ;;  %v36_v41 = vld [vmem:[%s644_s0 + $0xc8] sm:$0xff]  ;;  %v35_v42 = vld [vmem:[%s644_s0 + $0xc0] sm:$0xff] }
  0x88   :  { %271 = vst.msk [vmem:[%s645_s2 + $0x18] sm:$0xff] %vm267_vm0, %v238_v43  ;;  %269 = vst.msk [vmem:[%s645_s2 + $0x8] sm:$0xff] %vm267_vm0, %v236_v44 }
  0x89   :  { %v103_v47 = vpop.permute.xlu1 %102  ;;  %v98_v48 = vpop.permute.xlu0 %97 }
  0x8a   :  { %v240_v49 = vmul.f32 %v103_v47, %v16_v45  ;;  %v239_v50 = vmul.f32 %v98_v48, %v15_v46  ;;  %v38_v47 = vld [vmem:[%s644_s0 + $0xd8] sm:$0xff]  ;;  %v37_v48 = vld [vmem:[%s644_s0 + $0xd0] sm:$0xff] }
  0x8c   :  { %273 = vst.msk [vmem:[%s645_s2 + $0x28] sm:$0xff] %vm267_vm0, %v240_v49  ;;  %272 = vst.msk [vmem:[%s645_s2 + $0x20] sm:$0xff] %vm267_vm0, %v239_v50 }
  0x8d   :  { %v113_v53 = vpop.permute.xlu1 %112  ;;  %v108_v54 = vpop.permute.xlu0 %107 }
  0x8e   :  { %v242_v55 = vmul.f32 %v113_v53, %v18_v51  ;;  %v241_v56 = vmul.f32 %v108_v54, %v17_v52  ;;  %v40_v53 = vld [vmem:[%s644_s0 + $0xe8] sm:$0xff]  ;;  %v39_v54 = vld [vmem:[%s644_s0 + $0xe0] sm:$0xff] }
  0x90   :  { %275 = vst.msk [vmem:[%s645_s2 + $0x38] sm:$0xff] %vm267_vm0, %v242_v55  ;;  %274 = vst.msk [vmem:[%s645_s2 + $0x30] sm:$0xff] %vm267_vm0, %v241_v56 }
  0x91   :  { %v123_v59 = vpop.permute.xlu1 %122  ;;  %v118_v60 = vpop.permute.xlu0 %117 }
  0x92   :  { %v244_v61 = vmul.f32 %v123_v59, %v20_v57  ;;  %v243_v62 = vmul.f32 %v118_v60, %v19_v58  ;;  %v42_v59 = vld [vmem:[%s644_s0 + $0xf8] sm:$0xff]  ;;  %v41_v60 = vld [vmem:[%s644_s0 + $0xf0] sm:$0xff] }
  0x94   :  { %277 = vst.msk [vmem:[%s645_s2 + $0x48] sm:$0xff] %vm267_vm0, %v244_v61  ;;  %276 = vst.msk [vmem:[%s645_s2 + $0x40] sm:$0xff] %vm267_vm0, %v243_v62 }
  0x95   :  { %v133_v1 = vpop.permute.xlu1 %132  ;;  %v128_v2 = vpop.permute.xlu0 %127 }
  0x96   :  { %v246_v3 = vmul.f32 %v133_v1, %v22_v63  ;;  %v245_v4 = vmul.f32 %v128_v2, %v21_v0 }
  0x98   :  { %279 = vst.msk [vmem:[%s645_s2 + $0x58] sm:$0xff] %vm267_vm0, %v246_v3  ;;  %278 = vst.msk [vmem:[%s645_s2 + $0x50] sm:$0xff] %vm267_vm0, %v245_v4 }
  0x99   :  { %v143_v7 = vpop.permute.xlu1 %142  ;;  %v138_v8 = vpop.permute.xlu0 %137 }
  0x9a   :  { %v248_v9 = vmul.f32 %v143_v7, %v24_v5  ;;  %v247_v10 = vmul.f32 %v138_v8, %v23_v6 }
  0x9c   :  { %281 = vst.msk [vmem:[%s645_s2 + $0x68] sm:$0xff] %vm267_vm0, %v248_v9  ;;  %280 = vst.msk [vmem:[%s645_s2 + $0x60] sm:$0xff] %vm267_vm0, %v247_v10 }
  0x9d   :  { %v153_v13 = vpop.permute.xlu1 %152  ;;  %v148_v14 = vpop.permute.xlu0 %147 }
  0x9e   :  { %v250_v15 = vmul.f32 %v153_v13, %v26_v11  ;;  %v249_v16 = vmul.f32 %v148_v14, %v25_v12 }
  0xa0   :  { %283 = vst.msk [vmem:[%s645_s2 + $0x78] sm:$0xff] %vm267_vm0, %v250_v15  ;;  %282 = vst.msk [vmem:[%s645_s2 + $0x70] sm:$0xff] %vm267_vm0, %v249_v16 }
  0xa1   :  { %v163_v19 = vpop.permute.xlu1 %162  ;;  %v158_v20 = vpop.permute.xlu0 %157 }
  0xa2   :  { %v252_v21 = vmul.f32 %v163_v19, %v28_v17  ;;  %v251_v22 = vmul.f32 %v158_v20, %v27_v18 }
  0xa4   :  { %285 = vst.msk [vmem:[%s645_s2 + $0x88] sm:$0xff] %vm267_vm0, %v252_v21  ;;  %284 = vst.msk [vmem:[%s645_s2 + $0x80] sm:$0xff] %vm267_vm0, %v251_v22 }
  0xa5   :  { %v173_v25 = vpop.permute.xlu1 %172  ;;  %v168_v26 = vpop.permute.xlu0 %167 }
  0xa6   :  { %v254_v27 = vmul.f32 %v173_v25, %v30_v23  ;;  %v253_v28 = vmul.f32 %v168_v26, %v29_v24 }
  0xa8   :  { %287 = vst.msk [vmem:[%s645_s2 + $0x98] sm:$0xff] %vm267_vm0, %v254_v27  ;;  %286 = vst.msk [vmem:[%s645_s2 + $0x90] sm:$0xff] %vm267_vm0, %v253_v28 }
  0xa9   :  { %v183_v31 = vpop.permute.xlu1 %182  ;;  %v178_v32 = vpop.permute.xlu0 %177 }
  0xaa   :  { %v256_v33 = vmul.f32 %v183_v31, %v32_v29  ;;  %v255_v34 = vmul.f32 %v178_v32, %v31_v30 }
  0xac   :  { %289 = vst.msk [vmem:[%s645_s2 + $0xa8] sm:$0xff] %vm267_vm0, %v256_v33  ;;  %288 = vst.msk [vmem:[%s645_s2 + $0xa0] sm:$0xff] %vm267_vm0, %v255_v34 }
  0xad   :  { %v193_v37 = vpop.permute.xlu1 %192  ;;  %v188_v38 = vpop.permute.xlu0 %187 }
  0xae   :  { %v258_v39 = vmul.f32 %v193_v37, %v34_v35  ;;  %v257_v40 = vmul.f32 %v188_v38, %v33_v36 }
  0xb0   :  { %291 = vst.msk [vmem:[%s645_s2 + $0xb8] sm:$0xff] %vm267_vm0, %v258_v39  ;;  %290 = vst.msk [vmem:[%s645_s2 + $0xb0] sm:$0xff] %vm267_vm0, %v257_v40 }
  0xb1   :  { %v203_v43 = vpop.permute.xlu1 %202  ;;  %v198_v44 = vpop.permute.xlu0 %197 }
  0xb2   :  { %v260_v45 = vmul.f32 %v203_v43, %v36_v41  ;;  %v259_v46 = vmul.f32 %v198_v44, %v35_v42 }
  0xb4   :  { %293 = vst.msk [vmem:[%s645_s2 + $0xc8] sm:$0xff] %vm267_vm0, %v260_v45  ;;  %292 = vst.msk [vmem:[%s645_s2 + $0xc0] sm:$0xff] %vm267_vm0, %v259_v46 }
  0xb5   :  { %v213_v49 = vpop.permute.xlu1 %212  ;;  %v208_v50 = vpop.permute.xlu0 %207 }
  0xb6   :  { %v262_v51 = vmul.f32 %v213_v49, %v38_v47  ;;  %v261_v52 = vmul.f32 %v208_v50, %v37_v48 }
  0xb8   :  { %295 = vst.msk [vmem:[%s645_s2 + $0xd8] sm:$0xff] %vm267_vm0, %v262_v51  ;;  %294 = vst.msk [vmem:[%s645_s2 + $0xd0] sm:$0xff] %vm267_vm0, %v261_v52 }
  0xb9   :  { %v223_v55 = vpop.permute.xlu1 %222  ;;  %v218_v56 = vpop.permute.xlu0 %217 }
  0xba   :  { %v264_v57 = vmul.f32 %v223_v55, %v40_v53  ;;  %v263_v58 = vmul.f32 %v218_v56, %v39_v54 }
  0xbc   :  { %297 = vst.msk [vmem:[%s645_s2 + $0xe8] sm:$0xff] %vm267_vm0, %v264_v57  ;;  %296 = vst.msk [vmem:[%s645_s2 + $0xe0] sm:$0xff] %vm267_vm0, %v263_v58 }
  0xbd   :  { %v233_v61 = vpop.permute.xlu1 %232  ;;  %v228_v62 = vpop.permute.xlu0 %227 }
  0xbe   :  { %v266_v63 = vmul.f32 %v233_v61, %v42_v59  ;;  %v265_v0 = vmul.f32 %v228_v62, %v41_v60 }
  0xc0   :  { %299 = vst.msk [vmem:[%s645_s2 + $0xf8] sm:$0xff] %vm267_vm0, %v266_v63  ;;  %298 = vst.msk [vmem:[%s645_s2 + $0xf0] sm:$0xff] %vm267_vm0, %v265_v0 }

// kernel: phasen_fwd.112
= control target key start
LH: loop header
LB: loop body
LE: loop exit
PB: predicated region body
PF: predicated region fallthrough
CT: control target
= control target key end

     0   :  { %vm54_vm0 = vcmask 130048   ;;  %s382_s1 = inlined_call_operand.vmem [shape: bf16[16,16], index: 1, kind: input, shape index: {}]   ;;  %s383_s0 = inlined_call_operand.vmem [shape: f32[128,16], index: 0, kind: input, shape index: {}]   ;;  %s384_s2 = inlined_call_operand.vmem [shape: f32[1,16], index: 2, kind: input, shape index: {}]   ;;  %s385_s3 = inlined_call_operand.vmem [shape: f32[128,16], index: 3, kind: output, shape index: {}]  }
   0x1   :  { %v235_v0 = vld [vmem:[%s382_s1] sm:$0xff]   ;;  %v16_v2 = vld [vmem:[%s383_s0 + $0x8] sm:$0xff]  ;;  %v17_v6 = vld [vmem:[%s383_s0 + $0x10] sm:$0xff] }
   0x2   :  { %v15_v1 = vld [vmem:[%s383_s0] sm:$0xff]  ;;  %215 = vmatprep.subr.bf16.mxu0 %v235_v0  ;;  %233 = vmatprep.subr.bf16.mxu1 %v235_v0  ;;  %v24_v5 = vld [vmem:[%s383_s0 + $0x48] sm:$0xff]  ;;  %v18_v7 = vld [vmem:[%s383_s0 + $0x18] sm:$0xff] }
   0x3   :  { %v23_v3 = vld [vmem:[%s383_s0 + $0x40] sm:$0xff]  ;;  %v31_v4 = vpack.c.bf16 %v16_v2, %v15_v1  ;;  %216 = vmatpush3.bf16.msra.mxu0 %v235_v0  ;;  %234 = vmatpush3.bf16.msra.mxu1 %v235_v0  ;;  %v32_v9 = vpack.c.bf16 %v18_v7, %v17_v6  ;;  %v25_v10 = vld [vmem:[%s383_s0 + $0x50] sm:$0xff]  ;;  %v26_v11 = vld [vmem:[%s383_s0 + $0x58] sm:$0xff] }
   0x4   :  { %v35_v8 = vpack.c.bf16 %v24_v5, %v23_v3  ;;  %v19_v12 = vld [vmem:[%s383_s0 + $0x20] sm:$0xff]  ;;  %v36_v13 = vpack.c.bf16 %v26_v11, %v25_v10  ;;  %v20_v14 = vld [vmem:[%s383_s0 + $0x28] sm:$0xff]  ;;  %v21_v19 = vld [vmem:[%s383_s0 + $0x30] sm:$0xff] }
   0x5   :  { %217 = vmatprep.mubr.msk.bf16.mxu0 %vm54_vm0, %v31_v4  ;;  %v27_v15 = vld [vmem:[%s383_s0 + $0x60] sm:$0xff]  ;;  %v28_v16 = vld [vmem:[%s383_s0 + $0x68] sm:$0xff]  ;;  %v33_v17 = vpack.c.bf16 %v20_v14, %v19_v12  ;;  %v22_v20 = vld [vmem:[%s383_s0 + $0x38] sm:$0xff] }
   0x6   :  { %225 = vmatprep.mubr.msk.bf16.mxu1 %vm54_vm0, %v35_v8  ;;  %v37_v18 = vpack.c.bf16 %v28_v16, %v27_v15  ;;  %218 = vmatmul.mubr.msk.bf16.vlgmr.msra.gmra.mrb[0].mxu0 %vm54_vm0, %v32_v9  ;;  %v29_v21 = vld [vmem:[%s383_s0 + $0x70] sm:$0xff]  ;;  %v30_v22 = vld [vmem:[%s383_s0 + $0x78] sm:$0xff]  ;;  %v34_v23 = vpack.c.bf16 %v22_v20, %v21_v19  ;;  %v196_v25 = vld [vmem:[%s384_s2] ss:$0 sm:$0xff] }
   0x7   :  { %226 = vmatmul.mubr.msk.bf16.vlgmr.msra.gmra.mrb[0].mxu1 %vm54_vm0, %v36_v13  ;;  %221 = vmatprep.mubr.msk.bf16.mxu0 %vm54_vm0, %v33_v17  ;;  %v38_v24 = vpack.c.bf16 %v30_v22, %v29_v21 }
   0x8   :  { %229 = vmatprep.mubr.msk.bf16.mxu1 %vm54_vm0, %v37_v18 }
   0xe   :  { %222 = vmatmul.mubr.msk.bf16.gmra.mrb[4].mxu0 %vm54_vm0, %v34_v23 }
   0xf   :  { %230 = vmatmul.mubr.msk.bf16.gmra.mrb[4].mxu1 %vm54_vm0, %v38_v24 }
  0xd9   :  { %v219_v26 = vpop.f32.mrb[0].mxu0 }
  0xda   :  { %v227_v27 = vpop.f32.mrb[0].mxu1  ;;  %v122_v28 = vadd.f32 %v219_v26, %v196_v25  ;;  %v113_v30 = vpop.f32.mrb[1].mxu0 }
  0xdb   :  { %v154_v29 = vadd.f32 %v227_v27, %v196_v25  ;;  %v145_v31 = vpop.f32.mrb[1].mxu1  ;;  %v114_v32 = vadd.f32 %v196_v25, %v113_v30  ;;  %v220_v34 = vpop.f32.mrb[2].mxu0 }
  0xdc   :  { %v146_v33 = vadd.f32 %v196_v25, %v145_v31  ;;  %v228_v35 = vpop.f32.mrb[2].mxu1  ;;  %178 = vst.msk [vmem:[%s385_s3 + $0x10] sm:$0xff] %vm54_vm0, %v122_v28  ;;  %v125_v36 = vadd.f32 %v220_v34, %v196_v25  ;;  %v116_v38 = vpop.f32.mrb[3].mxu0 }
  0xdd   :  { %186 = vst.msk [vmem:[%s385_s3 + $0x50] sm:$0xff] %vm54_vm0, %v154_v29  ;;  %v157_v37 = vadd.f32 %v228_v35, %v196_v25  ;;  %v148_v39 = vpop.f32.mrb[3].mxu1  ;;  %176 = vst.msk [vmem:[%s385_s3] sm:$0xff] %vm54_vm0, %v114_v32  ;;  %v117_v40 = vadd.f32 %v196_v25, %v116_v38 }
  0xde   :  { %184 = vst.msk [vmem:[%s385_s3 + $0x40] sm:$0xff] %vm54_vm0, %v146_v33  ;;  %v149_v41 = vadd.f32 %v196_v25, %v148_v39  ;;  %179 = vst.msk [vmem:[%s385_s3 + $0x18] sm:$0xff] %vm54_vm0, %v125_v36 }
  0xdf   :  { %187 = vst.msk [vmem:[%s385_s3 + $0x58] sm:$0xff] %vm54_vm0, %v157_v37  ;;  %177 = vst.msk [vmem:[%s385_s3 + $0x8] sm:$0xff] %vm54_vm0, %v117_v40 }
  0xe0   :  { %185 = vst.msk [vmem:[%s385_s3 + $0x48] sm:$0xff] %vm54_vm0, %v149_v41 }
  0xe1   :  { %v223_v42 = vpop.f32.mrb[4].mxu0 }
  0xe2   :  { %v231_v43 = vpop.f32.mrb[4].mxu1  ;;  %v138_v44 = vadd.f32 %v223_v42, %v196_v25  ;;  %v129_v46 = vpop.f32.mrb[5].mxu0 }
  0xe3   :  { %v170_v45 = vadd.f32 %v231_v43, %v196_v25  ;;  %v161_v47 = vpop.f32.mrb[5].mxu1  ;;  %v130_v48 = vadd.f32 %v196_v25, %v129_v46  ;;  %v224_v50 = vpop.f32.mrb[6].mxu0 }
  0xe4   :  { %v162_v49 = vadd.f32 %v196_v25, %v161_v47  ;;  %v232_v51 = vpop.f32.mrb[6].mxu1  ;;  %182 = vst.msk [vmem:[%s385_s3 + $0x30] sm:$0xff] %vm54_vm0, %v138_v44  ;;  %v141_v52 = vadd.f32 %v224_v50, %v196_v25  ;;  %v132_v54 = vpop.f32.mrb[7].mxu0 }
  0xe5   :  { %190 = vst.msk [vmem:[%s385_s3 + $0x70] sm:$0xff] %vm54_vm0, %v170_v45  ;;  %v173_v53 = vadd.f32 %v232_v51, %v196_v25  ;;  %v164_v55 = vpop.f32.mrb[7].mxu1  ;;  %180 = vst.msk [vmem:[%s385_s3 + $0x20] sm:$0xff] %vm54_vm0, %v130_v48  ;;  %v133_v56 = vadd.f32 %v196_v25, %v132_v54 }
  0xe6   :  { %188 = vst.msk [vmem:[%s385_s3 + $0x60] sm:$0xff] %vm54_vm0, %v162_v49  ;;  %v165_v57 = vadd.f32 %v196_v25, %v164_v55  ;;  %183 = vst.msk [vmem:[%s385_s3 + $0x38] sm:$0xff] %vm54_vm0, %v141_v52 }
  0xe7   :  { %191 = vst.msk [vmem:[%s385_s3 + $0x78] sm:$0xff] %vm54_vm0, %v173_v53  ;;  %181 = vst.msk [vmem:[%s385_s3 + $0x28] sm:$0xff] %vm54_vm0, %v133_v56 }
  0xe8   :  { %189 = vst.msk [vmem:[%s385_s3 + $0x68] sm:$0xff] %vm54_vm0, %v165_v57 }

// kernel: phasen_fwd.113
= control target key start
LH: loop header
LB: loop body
LE: loop exit
PB: predicated region body
PF: predicated region fallthrough
CT: control target
= control target key end

     0   :  { %vm78_vm0 = vcmask 130048   ;;  %vm288_vm1 = vcmask 64512   ;;  %s697_s1 = inlined_call_operand.vmem [shape: bf16[16,8], index: 1, kind: input, shape index: {}]   ;;  %s698_s0 = inlined_call_operand.vmem [shape: f32[256,16], index: 0, kind: input, shape index: {}]   ;;  %s699_s2 = inlined_call_operand.vmem [shape: f32[1,8], index: 2, kind: input, shape index: {}]   ;;  %s700_s3 = inlined_call_operand.vmem [shape: f32[256,8], index: 3, kind: output, shape index: {}]  }
   0x1   :  { %v396_v0 = vld [vmem:[%s697_s1] sm:$0xff]   ;;  %v16_v2 = vld [vmem:[%s698_s0 + $0x8] sm:$0xff]  ;;  %v17_v6 = vld [vmem:[%s698_s0 + $0x10] sm:$0xff] }
   0x2   :  { %v15_v1 = vld [vmem:[%s698_s0] sm:$0xff]  ;;  %360 = vmatprep.subr.bf16.mxu0 %v396_v0  ;;  %394 = vmatprep.subr.bf16.mxu1 %v396_v0  ;;  %v32_v5 = vld [vmem:[%s698_s0 + $0x88] sm:$0xff]  ;;  %v18_v7 = vld [vmem:[%s698_s0 + $0x18] sm:$0xff] }
   0x3   :  { %v31_v3 = vld [vmem:[%s698_s0 + $0x80] sm:$0xff]  ;;  %v47_v4 = vpack.c.bf16 %v16_v2, %v15_v1  ;;  %361 = vmatpush3.bf16.msra.mxu0 %v396_v0  ;;  %395 = vmatpush3.bf16.msra.mxu1 %v396_v0  ;;  %v48_v9 = vpack.c.bf16 %v18_v7, %v17_v6  ;;  %v33_v10 = vld [vmem:[%s698_s0 + $0x90] sm:$0xff]  ;;  %v34_v11 = vld [vmem:[%s698_s0 + $0x98] sm:$0xff] }
   0x4   :  { %v55_v8 = vpack.c.bf16 %v32_v5, %v31_v3  ;;  %v19_v12 = vld [vmem:[%s698_s0 + $0x20] sm:$0xff]  ;;  %v56_v13 = vpack.c.bf16 %v34_v11, %v33_v10  ;;  %v20_v14 = vld [vmem:[%s698_s0 + $0x28] sm:$0xff]  ;;  %v21_v19 = vld [vmem:[%s698_s0 + $0x30] sm:$0xff] }
   0x5   :  { %362 = vmatprep.mubr.msk.bf16.mxu0 %vm78_vm0, %v47_v4  ;;  %v35_v15 = vld [vmem:[%s698_s0 + $0xa0] sm:$0xff]  ;;  %v36_v16 = vld [vmem:[%s698_s0 + $0xa8] sm:$0xff]  ;;  %v49_v17 = vpack.c.bf16 %v20_v14, %v19_v12  ;;  %v22_v20 = vld [vmem:[%s698_s0 + $0x38] sm:$0xff] }
   0x6   :  { %378 = vmatprep.mubr.msk.bf16.mxu1 %vm78_vm0, %v55_v8  ;;  %v57_v18 = vpack.c.bf16 %v36_v16, %v35_v15  ;;  %363 = vmatmul.mubr.msk.bf16.vlgmr.msra.gmra.mrb[0].mxu0 %vm78_vm0, %v48_v9  ;;  %v37_v21 = vld [vmem:[%s698_s0 + $0xb0] sm:$0xff]  ;;  %v38_v22 = vld [vmem:[%s698_s0 + $0xb8] sm:$0xff]  ;;  %v23_v23 = vld [vmem:[%s698_s0 + $0x40] sm:$0xff]  ;;  %v50_v27 = vpack.c.bf16 %v22_v20, %v21_v19 }
   0x7   :  { %379 = vmatmul.mubr.msk.bf16.vlgmr.msra.gmra.mrb[0].mxu1 %vm78_vm0, %v56_v13  ;;  %366 = vmatprep.mubr.msk.bf16.mxu0 %vm78_vm0, %v49_v17  ;;  %v24_v24 = vld [vmem:[%s698_s0 + $0x48] sm:$0xff]  ;;  %v39_v25 = vld [vmem:[%s698_s0 + $0xc0] sm:$0xff]  ;;  %v58_v28 = vpack.c.bf16 %v38_v22, %v37_v21  ;;  %v25_v31 = vld [vmem:[%s698_s0 + $0x50] sm:$0xff] }
   0x8   :  { %382 = vmatprep.mubr.msk.bf16.mxu1 %vm78_vm0, %v57_v18  ;;  %v40_v26 = vld [vmem:[%s698_s0 + $0xc8] sm:$0xff]  ;;  %v51_v29 = vpack.c.bf16 %v24_v24, %v23_v23  ;;  %v26_v32 = vld [vmem:[%s698_s0 + $0x58] sm:$0xff]  ;;  %v41_v33 = vld [vmem:[%s698_s0 + $0xd0] sm:$0xff] }
   0x9   :  { %v59_v30 = vpack.c.bf16 %v40_v26, %v39_v25  ;;  %v42_v34 = vld [vmem:[%s698_s0 + $0xd8] sm:$0xff]  ;;  %v27_v35 = vld [vmem:[%s698_s0 + $0x60] sm:$0xff]  ;;  %v28_v36 = vld [vmem:[%s698_s0 + $0x68] sm:$0xff]  ;;  %v52_v39 = vpack.c.bf16 %v26_v32, %v25_v31 }
   0xa   :  { %v43_v37 = vld [vmem:[%s698_s0 + $0xe0] sm:$0xff]  ;;  %v44_v38 = vld [vmem:[%s698_s0 + $0xe8] sm:$0xff]  ;;  %v60_v40 = vpack.c.bf16 %v42_v34, %v41_v33  ;;  %v53_v41 = vpack.c.bf16 %v28_v36, %v27_v35  ;;  %v29_v43 = vld [vmem:[%s698_s0 + $0x70] sm:$0xff] }
   0xb   :  { %v61_v42 = vpack.c.bf16 %v44_v38, %v43_v37  ;;  %v30_v44 = vld [vmem:[%s698_s0 + $0x78] sm:$0xff]  ;;  %v45_v45 = vld [vmem:[%s698_s0 + $0xf0] sm:$0xff]  ;;  %v535_v49 = vld [vmem:[%s699_s2] ss:$0 sm:$0xff] }
   0xc   :  { %v46_v46 = vld [vmem:[%s698_s0 + $0xf8] sm:$0xff]  ;;  %v54_v47 = vpack.c.bf16 %v30_v44, %v29_v43 }
   0xd   :  { %v62_v48 = vpack.c.bf16 %v46_v46, %v45_v45 }
   0xe   :  { %367 = vmatmul.mubr.msk.bf16.gmra.mrb[4].mxu0 %vm78_vm0, %v50_v27 }
   0xf   :  { %383 = vmatmul.mubr.msk.bf16.gmra.mrb[4].mxu1 %vm78_vm0, %v58_v28  ;;  %370 = vmatprep.mubr.msk.bf16.mxu0 %vm78_vm0, %v51_v29 }
  0x10   :  { %386 = vmatprep.mubr.msk.bf16.mxu1 %vm78_vm0, %v59_v30 }
  0x16   :  { %371 = vmatmul.mubr.msk.bf16.gmra.mrb[8].mxu0 %vm78_vm0, %v52_v39 }
  0x17   :  { %387 = vmatmul.mubr.msk.bf16.gmra.mrb[8].mxu1 %vm78_vm0, %v60_v40  ;;  %374 = vmatprep.mubr.msk.bf16.mxu0 %vm78_vm0, %v53_v41 }
  0x18   :  { %390 = vmatprep.mubr.msk.bf16.mxu1 %vm78_vm0, %v61_v42 }
  0x1e   :  { %375 = vmatmul.mubr.msk.bf16.gmra.mrb[12].mxu0 %vm78_vm0, %v54_v47 }
  0x1f   :  { %391 = vmatmul.mubr.msk.bf16.gmra.mrb[12].mxu1 %vm78_vm0, %v62_v48 }
  0xd9   :  { %v364_v50 = vpop.f32.mrb[0].mxu0 }
  0xda   :  { %v380_v51 = vpop.f32.mrb[0].mxu1  ;;  %v170_v52 = vadd.f32 %v364_v50, %v535_v49  ;;  %v161_v54 = vpop.f32.mrb[1].mxu0 }
  0xdb   :  { %v234_v53 = vadd.f32 %v380_v51, %v535_v49  ;;  %v225_v55 = vpop.f32.mrb[1].mxu1  ;;  %v162_v56 = vadd.f32 %v535_v49, %v161_v54  ;;  %v365_v58 = vpop.f32.mrb[2].mxu0 }
  0xdc   :  { %v226_v57 = vadd.f32 %v535_v49, %v225_v55  ;;  %v381_v59 = vpop.f32.mrb[2].mxu1  ;;  %291 = vst.msk [vmem:[%s700_s3 + $0x10] sm:$0xff] %vm288_vm1, %v170_v52  ;;  %v173_v60 = vadd.f32 %v365_v58, %v535_v49  ;;  %v164_v62 = vpop.f32.mrb[3].mxu0 }
  0xdd   :  { %307 = vst.msk [vmem:[%s700_s3 + $0x90] sm:$0xff] %vm288_vm1, %v234_v53  ;;  %v237_v61 = vadd.f32 %v381_v59, %v535_v49  ;;  %v228_v63 = vpop.f32.mrb[3].mxu1  ;;  %289 = vst.msk [vmem:[%s700_s3] sm:$0xff] %vm288_vm1, %v162_v56  ;;  %v165_v0 = vadd.f32 %v535_v49, %v164_v62 }
  0xde   :  { %305 = vst.msk [vmem:[%s700_s3 + $0x80] sm:$0xff] %vm288_vm1, %v226_v57  ;;  %v229_v1 = vadd.f32 %v535_v49, %v228_v63  ;;  %292 = vst.msk [vmem:[%s700_s3 + $0x18] sm:$0xff] %vm288_vm1, %v173_v60 }
  0xdf   :  { %308 = vst.msk [vmem:[%s700_s3 + $0x98] sm:$0xff] %vm288_vm1, %v237_v61  ;;  %290 = vst.msk [vmem:[%s700_s3 + $0x8] sm:$0xff] %vm288_vm1, %v165_v0 }
  0xe0   :  { %306 = vst.msk [vmem:[%s700_s3 + $0x88] sm:$0xff] %vm288_vm1, %v229_v1 }
  0xe1   :  { %v368_v2 = vpop.f32.mrb[4].mxu0 }
  0xe2   :  { %v384_v3 = vpop.f32.mrb[4].mxu1  ;;  %v186_v4 = vadd.f32 %v368_v2, %v535_v49  ;;  %v177_v6 = vpop.f32.mrb[5].mxu0 }
  0xe3   :  { %v250_v5 = vadd.f32 %v384_v3, %v535_v49  ;;  %v241_v7 = vpop.f32.mrb[5].mxu1  ;;  %v178_v8 = vadd.f32 %v535_v49, %v177_v6  ;;  %v369_v10 = vpop.f32.mrb[6].mxu0 }
  0xe4   :  { %v242_v9 = vadd.f32 %v535_v49, %v241_v7  ;;  %v385_v11 = vpop.f32.mrb[6].mxu1  ;;  %295 = vst.msk [vmem:[%s700_s3 + $0x30] sm:$0xff] %vm288_vm1, %v186_v4  ;;  %v189_v12 = vadd.f32 %v369_v10, %v535_v49  ;;  %v180_v14 = vpop.f32.mrb[7].mxu0 }
  0xe5   :  { %311 = vst.msk [vmem:[%s700_s3 + $0xb0] sm:$0xff] %vm288_vm1, %v250_v5  ;;  %v253_v13 = vadd.f32 %v385_v11, %v535_v49  ;;  %v244_v15 = vpop.f32.mrb[7].mxu1  ;;  %293 = vst.msk [vmem:[%s700_s3 + $0x20] sm:$0xff] %vm288_vm1, %v178_v8  ;;  %v181_v16 = vadd.f32 %v535_v49, %v180_v14 }
  0xe6   :  { %309 = vst.msk [vmem:[%s700_s3 + $0xa0] sm:$0xff] %vm288_vm1, %v242_v9  ;;  %v245_v17 = vadd.f32 %v535_v49, %v244_v15  ;;  %296 = vst.msk [vmem:[%s700_s3 + $0x38] sm:$0xff] %vm288_vm1, %v189_v12 }
  0xe7   :  { %312 = vst.msk [vmem:[%s700_s3 + $0xb8] sm:$0xff] %vm288_vm1, %v253_v13  ;;  %294 = vst.msk [vmem:[%s700_s3 + $0x28] sm:$0xff] %vm288_vm1, %v181_v16 }
  0xe8   :  { %310 = vst.msk [vmem:[%s700_s3 + $0xa8] sm:$0xff] %vm288_vm1, %v245_v17 }
  0xe9   :  { %v372_v18 = vpop.f32.mrb[8].mxu0 }
  0xea   :  { %v388_v19 = vpop.f32.mrb[8].mxu1  ;;  %v202_v20 = vadd.f32 %v372_v18, %v535_v49  ;;  %v193_v22 = vpop.f32.mrb[9].mxu0 }
  0xeb   :  { %v266_v21 = vadd.f32 %v388_v19, %v535_v49  ;;  %v257_v23 = vpop.f32.mrb[9].mxu1  ;;  %v194_v24 = vadd.f32 %v535_v49, %v193_v22  ;;  %v373_v26 = vpop.f32.mrb[10].mxu0 }
  0xec   :  { %v258_v25 = vadd.f32 %v535_v49, %v257_v23  ;;  %v389_v27 = vpop.f32.mrb[10].mxu1  ;;  %299 = vst.msk [vmem:[%s700_s3 + $0x50] sm:$0xff] %vm288_vm1, %v202_v20  ;;  %v205_v28 = vadd.f32 %v373_v26, %v535_v49  ;;  %v196_v30 = vpop.f32.mrb[11].mxu0 }
  0xed   :  { %315 = vst.msk [vmem:[%s700_s3 + $0xd0] sm:$0xff] %vm288_vm1, %v266_v21  ;;  %v269_v29 = vadd.f32 %v389_v27, %v535_v49  ;;  %v260_v31 = vpop.f32.mrb[11].mxu1  ;;  %297 = vst.msk [vmem:[%s700_s3 + $0x40] sm:$0xff] %vm288_vm1, %v194_v24  ;;  %v197_v32 = vadd.f32 %v535_v49, %v196_v30 }
  0xee   :  { %313 = vst.msk [vmem:[%s700_s3 + $0xc0] sm:$0xff] %vm288_vm1, %v258_v25  ;;  %v261_v33 = vadd.f32 %v535_v49, %v260_v31  ;;  %300 = vst.msk [vmem:[%s700_s3 + $0x58] sm:$0xff] %vm288_vm1, %v205_v28 }
  0xef   :  { %316 = vst.msk [vmem:[%s700_s3 + $0xd8] sm:$0xff] %vm288_vm1, %v269_v29  ;;  %298 = vst.msk [vmem:[%s700_s3 + $0x48] sm:$0xff] %vm288_vm1, %v197_v32 }
  0xf0   :  { %314 = vst.msk [vmem:[%s700_s3 + $0xc8] sm:$0xff] %vm288_vm1, %v261_v33 }
  0xf1   :  { %v376_v34 = vpop.f32.mrb[12].mxu0 }
  0xf2   :  { %v392_v35 = vpop.f32.mrb[12].mxu1  ;;  %v218_v36 = vadd.f32 %v376_v34, %v535_v49  ;;  %v209_v38 = vpop.f32.mrb[13].mxu0 }
  0xf3   :  { %v282_v37 = vadd.f32 %v392_v35, %v535_v49  ;;  %v273_v39 = vpop.f32.mrb[13].mxu1  ;;  %v210_v40 = vadd.f32 %v535_v49, %v209_v38  ;;  %v377_v42 = vpop.f32.mrb[14].mxu0 }
  0xf4   :  { %v274_v41 = vadd.f32 %v535_v49, %v273_v39  ;;  %v393_v43 = vpop.f32.mrb[14].mxu1  ;;  %303 = vst.msk [vmem:[%s700_s3 + $0x70] sm:$0xff] %vm288_vm1, %v218_v36  ;;  %v221_v44 = vadd.f32 %v377_v42, %v535_v49  ;;  %v212_v46 = vpop.f32.mrb[15].mxu0 }
  0xf5   :  { %319 = vst.msk [vmem:[%s700_s3 + $0xf0] sm:$0xff] %vm288_vm1, %v282_v37  ;;  %v285_v45 = vadd.f32 %v393_v43, %v535_v49  ;;  %v276_v47 = vpop.f32.mrb[15].mxu1  ;;  %301 = vst.msk [vmem:[%s700_s3 + $0x60] sm:$0xff] %vm288_vm1, %v210_v40  ;;  %v213_v48 = vadd.f32 %v535_v49, %v212_v46 }
  0xf6   :  { %317 = vst.msk [vmem:[%s700_s3 + $0xe0] sm:$0xff] %vm288_vm1, %v274_v41  ;;  %v277_v50 = vadd.f32 %v535_v49, %v276_v47  ;;  %304 = vst.msk [vmem:[%s700_s3 + $0x78] sm:$0xff] %vm288_vm1, %v221_v44 }
  0xf7   :  { %320 = vst.msk [vmem:[%s700_s3 + $0xf8] sm:$0xff] %vm288_vm1, %v285_v45  ;;  %302 = vst.msk [vmem:[%s700_s3 + $0x68] sm:$0xff] %vm288_vm1, %v213_v48 }
  0xf8   :  { %318 = vst.msk [vmem:[%s700_s3 + $0xe8] sm:$0xff] %vm288_vm1, %v277_v50 }

// kernel: phasen_fwd.115
= control target key start
LH: loop header
LB: loop body
LE: loop exit
PB: predicated region body
PF: predicated region fallthrough
CT: control target
= control target key end

     0   :  { %v58_v4 = vlaneseq  ;;  %vm203_vm0 = vcmask 64512   ;;  %s781_s1 = inlined_call_operand.vmem [shape: f32[8,8], index: 1, kind: input, shape index: {}]   ;;  %s782_s0 = inlined_call_operand.vmem [shape: f32[256,8], index: 0, kind: input, shape index: {}]   ;;  %s783_s2 = inlined_call_operand.vmem [shape: f32[1,8], index: 2, kind: input, shape index: {}]   ;;  %s784_s3 = inlined_call_operand.vmem [shape: f32[1,8], index: 3, kind: input, shape index: {}]   ;;  %s785_s4 = inlined_call_operand.vmem [shape: f32[256,8], index: 4, kind: output, shape index: {}]  }
   0x1   :  { %v17_v0 = vld [vmem:[%s781_s1] sm:$0x1]  ;;  %v19_v1 = vld [vmem:[%s781_s1 + $0x1] sm:$0x1]  ;;  %v285_v12 = vld [vmem:[%s782_s0 + $0x8] sm:$0xff] }
   0x2   :  { %v18_v2 = vmul.f32 0.00390625, %v17_v0  ;;  %v20_v3 = vmul.f32 0.00390625, %v19_v1  ;;  %v274_v7 = vshrl.u32 %v58_v4, 7  ;;  %v280_v11 = vld [vmem:[%s782_s0] sm:$0xff]  ;;  %v294_v14 = vld [vmem:[%s782_s0 + $0x10] sm:$0xff]  ;;  %v299_v15 = vld [vmem:[%s782_s0 + $0x18] sm:$0xff] }
   0x3   :  { %v304_v16 = vld [vmem:[%s782_s0 + $0x20] sm:$0xff]  ;;  %v309_v17 = vld [vmem:[%s782_s0 + $0x28] sm:$0xff]  ;;  %v314_v18 = vld [vmem:[%s782_s0 + $0x30] sm:$0xff] }
   0x4   :  { %v21_v5 = vmul.f32 %v18_v2, %v18_v2  ;;  %v60_v10 = vsub.s32 0, %v274_v7  ;;  %v319_v19 = vld [vmem:[%s782_s0 + $0x38] sm:$0xff]  ;;  %v324_v20 = vld [vmem:[%s782_s0 + $0x40] sm:$0xff]  ;;  %v329_v21 = vld [vmem:[%s782_s0 + $0x48] sm:$0xff] }
   0x5   :  { %v334_v22 = vld [vmem:[%s782_s0 + $0x50] sm:$0xff]  ;;  %v339_v23 = vld [vmem:[%s782_s0 + $0x58] sm:$0xff]  ;;  %v344_v24 = vld [vmem:[%s782_s0 + $0x60] sm:$0xff] }
   0x6   :  { %v22_v6 = vsub.f32 %v20_v3, %v21_v5  ;;  %v289_v13 = vrot.slane %v18_v2, %v60_v10  ;;  %v349_v25 = vld [vmem:[%s782_s0 + $0x68] sm:$0xff]  ;;  %v94_v27 = vld [vmem:[%s783_s2] sm:$0x1]  ;;  %v361_v29 = vld [vmem:[%s782_s0 + $0x70] sm:$0xff] }
   0x7   :  { %v366_v30 = vld [vmem:[%s782_s0 + $0x78] sm:$0xff]  ;;  %v371_v31 = vld [vmem:[%s782_s0 + $0x80] sm:$0xff]  ;;  %v384_v36 = vld [vmem:[%s782_s0 + $0x88] sm:$0xff] }
   0x8   :  { %v23_v8 = vmax.f32 %v22_v6, 0.0  ;;  %v62_v26 = vsub.f32 %v280_v11, %v289_v13  ;;  %v63_v28 = vsub.f32 %v285_v12, %v289_v13  ;;  %v64_v32 = vsub.f32 %v294_v14, %v289_v13  ;;  %v389_v37 = vld [vmem:[%s782_s0 + $0x90] sm:$0xff]  ;;  %v394_v38 = vld [vmem:[%s782_s0 + $0x98] sm:$0xff]  ;;  %v407_v43 = vld [vmem:[%s782_s0 + $0xa0] sm:$0xff] }
   0x9   :  { %v65_v33 = vsub.f32 %v299_v15, %v289_v13  ;;  %v66_v34 = vsub.f32 %v304_v16, %v289_v13  ;;  %v67_v35 = vsub.f32 %v309_v17, %v289_v13  ;;  %v68_v39 = vsub.f32 %v314_v18, %v289_v13  ;;  %v412_v44 = vld [vmem:[%s782_s0 + $0xa8] sm:$0xff]  ;;  %v417_v45 = vld [vmem:[%s782_s0 + $0xb0] sm:$0xff]  ;;  %v430_v50 = vld [vmem:[%s782_s0 + $0xb8] sm:$0xff] }
   0xa   :  { %v24_v9 = vadd.f32 1e-05, %v23_v8  ;;  %v69_v40 = vsub.f32 %v319_v19, %v289_v13  ;;  %v70_v41 = vsub.f32 %v324_v20, %v289_v13  ;;  %v71_v42 = vsub.f32 %v329_v21, %v289_v13  ;;  %v435_v51 = vld [vmem:[%s782_s0 + $0xc0] sm:$0xff]  ;;  %v440_v52 = vld [vmem:[%s782_s0 + $0xc8] sm:$0xff]  ;;  %v453_v58 = vld [vmem:[%s782_s0 + $0xd0] sm:$0xff] }
   0xb   :  { %v72_v46 = vsub.f32 %v334_v22, %v289_v13  ;;  %v73_v47 = vsub.f32 %v339_v23, %v289_v13  ;;  %v74_v48 = vsub.f32 %v344_v24, %v289_v13  ;;  %v75_v49 = vsub.f32 %v349_v25, %v289_v13  ;;  %v458_v59 = vld [vmem:[%s782_s0 + $0xd8] sm:$0xff]  ;;  %v463_v60 = vld [vmem:[%s782_s0 + $0xe0] sm:$0xff]  ;;  %v474_v1 = vld [vmem:[%s782_s0 + $0xe8] sm:$0xff] }
   0xc   :  { %241 = vrsqrt.f32 %v24_v9  ;;  %v76_v54 = vsub.f32 %v361_v29, %v289_v13  ;;  %v77_v55 = vsub.f32 %v366_v30, %v289_v13  ;;  %v78_v56 = vsub.f32 %v371_v31, %v289_v13  ;;  %v479_v2 = vld [vmem:[%s782_s0 + $0xf0] sm:$0xff]  ;;  %v484_v3 = vld [vmem:[%s782_s0 + $0xf8] sm:$0xff]  ;;  %v507_v15 = vld [vmem:[%s784_s3] ss:$0 sm:$0xff] }
   0xd   :  { %v79_v57 = vsub.f32 %v384_v36, %v289_v13  ;;  %v80_v62 = vsub.f32 %v389_v37, %v289_v13  ;;  %v81_v63 = vsub.f32 %v394_v38, %v289_v13  ;;  %v82_v0 = vsub.f32 %v407_v43, %v289_v13 }
   0xe   :  { %v83_v4 = vsub.f32 %v412_v44, %v289_v13  ;;  %v84_v5 = vsub.f32 %v417_v45, %v289_v13  ;;  %v786_v38 = vsub.f32 %v430_v50, %v289_v13 }
  0x16   :  { %v242_v53 = vpop.eup %241 }
  0x17   :  { %v95_v61 = vmul.f32 %v242_v53, %v94_v27 }
  0x19   :  { %v496_v9 = vrot.slane %v95_v61, %v60_v10 }
  0x1b   :  { %v100_v18 = vmul.f32 %v496_v9, %v62_v26  ;;  %v101_v19 = vmul.f32 %v496_v9, %v63_v28  ;;  %v102_v27 = vmul.f32 %v496_v9, %v64_v32  ;;  %v103_v53 = vmul.f32 %v496_v9, %v65_v33 }
  0x1c   :  { %v104_v61 = vmul.f32 %v496_v9, %v66_v34  ;;  %v105_v16 = vmul.f32 %v496_v9, %v67_v35  ;;  %v106_v7 = vmul.f32 %v496_v9, %v68_v39  ;;  %v107_v14 = vmul.f32 %v496_v9, %v69_v40 }
  0x1d   :  { %v139_v10 = vadd.f32 %v507_v15, %v100_v18  ;;  %v140_v17 = vadd.f32 %v507_v15, %v101_v19  ;;  %v141_v26 = vadd.f32 %v507_v15, %v102_v27  ;;  %v142_v28 = vadd.f32 %v507_v15, %v103_v53 }
  0x1e   :  { %v143_v32 = vadd.f32 %v507_v15, %v104_v61  ;;  %v144_v33 = vadd.f32 %v507_v15, %v105_v16  ;;  %v145_v34 = vadd.f32 %v507_v15, %v106_v7  ;;  %v146_v35 = vadd.f32 %v507_v15, %v107_v14 }
  0x1f   :  { %v171_v12 = vmax.f32 %v139_v10, 0.0  ;;  %v172_v39 = vmax.f32 %v140_v17, 0.0  ;;  %v173_v11 = vmax.f32 %v141_v26, 0.0  ;;  %v174_v40 = vmax.f32 %v142_v28, 0.0 }
  0x20   :  { %v175_v8 = vmax.f32 %v143_v32, 0.0  ;;  %v176_v18 = vmax.f32 %v144_v33, 0.0  ;;  %v177_v6 = vmax.f32 %v145_v34, 0.0  ;;  %v178_v19 = vmax.f32 %v146_v35, 0.0 }
  0x21   :  { %204 = vst.msk [vmem:[%s785_s4] sm:$0xff] %vm203_vm0, %v171_v12  ;;  %205 = vst.msk [vmem:[%s785_s4 + $0x8] sm:$0xff] %vm203_vm0, %v172_v39  ;;  %v108_v12 = vmul.f32 %v496_v9, %v70_v41  ;;  %v109_v14 = vmul.f32 %v496_v9, %v71_v42  ;;  %v111_v16 = vmul.f32 %v496_v9, %v73_v47 }
  0x22   :  { %206 = vst.msk [vmem:[%s785_s4 + $0x10] sm:$0xff] %vm203_vm0, %v173_v11  ;;  %207 = vst.msk [vmem:[%s785_s4 + $0x18] sm:$0xff] %vm203_vm0, %v174_v40  ;;  %v110_v11 = vmul.f32 %v496_v9, %v72_v46  ;;  %v112_v20 = vmul.f32 %v496_v9, %v74_v48  ;;  %v113_v21 = vmul.f32 %v496_v9, %v75_v49 }
  0x23   :  { %208 = vst.msk [vmem:[%s785_s4 + $0x20] sm:$0xff] %vm203_vm0, %v175_v8  ;;  %209 = vst.msk [vmem:[%s785_s4 + $0x28] sm:$0xff] %vm203_vm0, %v176_v18  ;;  %v114_v22 = vmul.f32 %v496_v9, %v76_v54  ;;  %v115_v23 = vmul.f32 %v496_v9, %v77_v55  ;;  %v147_v41 = vadd.f32 %v507_v15, %v108_v12 }
  0x24   :  { %210 = vst.msk [vmem:[%s785_s4 + $0x30] sm:$0xff] %vm203_vm0, %v177_v6  ;;  %211 = vst.msk [vmem:[%s785_s4 + $0x38] sm:$0xff] %vm203_vm0, %v178_v19  ;;  %v148_v24 = vadd.f32 %v507_v15, %v109_v14  ;;  %v149_v42 = vadd.f32 %v507_v15, %v110_v11  ;;  %v150_v25 = vadd.f32 %v507_v15, %v111_v16 }
  0x25   :  { %v151_v46 = vadd.f32 %v507_v15, %v112_v20  ;;  %v152_v47 = vadd.f32 %v507_v15, %v113_v21  ;;  %v153_v29 = vadd.f32 %v507_v15, %v114_v22  ;;  %v154_v48 = vadd.f32 %v507_v15, %v115_v23 }
  0x26   :  { %v179_v49 = vmax.f32 %v147_v41, 0.0  ;;  %v180_v30 = vmax.f32 %v148_v24, 0.0  ;;  %v181_v54 = vmax.f32 %v149_v42, 0.0  ;;  %v182_v55 = vmax.f32 %v150_v25, 0.0 }
  0x27   :  { %v183_v6 = vmax.f32 %v151_v46, 0.0  ;;  %v184_v8 = vmax.f32 %v152_v47, 0.0  ;;  %v185_v7 = vmax.f32 %v153_v29, 0.0  ;;  %v186_v10 = vmax.f32 %v154_v48, 0.0 }
  0x28   :  { %212 = vst.msk [vmem:[%s785_s4 + $0x40] sm:$0xff] %vm203_vm0, %v179_v49  ;;  %213 = vst.msk [vmem:[%s785_s4 + $0x48] sm:$0xff] %vm203_vm0, %v180_v30  ;;  %v116_v17 = vmul.f32 %v496_v9, %v78_v56  ;;  %v117_v27 = vmul.f32 %v496_v9, %v79_v57  ;;  %v118_v53 = vmul.f32 %v496_v9, %v80_v62 }
  0x29   :  { %214 = vst.msk [vmem:[%s785_s4 + $0x50] sm:$0xff] %vm203_vm0, %v181_v54  ;;  %215 = vst.msk [vmem:[%s785_s4 + $0x58] sm:$0xff] %vm203_vm0, %v182_v55  ;;  %v119_v61 = vmul.f32 %v496_v9, %v81_v63  ;;  %v120_v31 = vmul.f32 %v496_v9, %v82_v0  ;;  %v121_v36 = vmul.f32 %v496_v9, %v83_v4 }
  0x2a   :  { %216 = vst.msk [vmem:[%s785_s4 + $0x60] sm:$0xff] %vm203_vm0, %v183_v6  ;;  %217 = vst.msk [vmem:[%s785_s4 + $0x68] sm:$0xff] %vm203_vm0, %v184_v8  ;;  %v122_v37 = vmul.f32 %v496_v9, %v84_v5  ;;  %v123_v56 = vmul.f32 %v496_v9, %v786_v38  ;;  %v155_v57 = vadd.f32 %v507_v15, %v116_v17 }
  0x2b   :  { %218 = vst.msk [vmem:[%s785_s4 + $0x70] sm:$0xff] %vm203_vm0, %v185_v7  ;;  %219 = vst.msk [vmem:[%s785_s4 + $0x78] sm:$0xff] %vm203_vm0, %v186_v10  ;;  %v156_v43 = vadd.f32 %v507_v15, %v117_v27  ;;  %v157_v62 = vadd.f32 %v507_v15, %v118_v53  ;;  %v158_v44 = vadd.f32 %v507_v15, %v119_v61 }
  0x2c   :  { %v159_v63 = vadd.f32 %v507_v15, %v120_v31  ;;  %v160_v0 = vadd.f32 %v507_v15, %v121_v36  ;;  %v161_v45 = vadd.f32 %v507_v15, %v122_v37  ;;  %v162_v4 = vadd.f32 %v507_v15, %v123_v56 }
  0x2d   :  { %v187_v5 = vmax.f32 %v155_v57, 0.0  ;;  %v188_v50 = vmax.f32 %v156_v43, 0.0  ;;  %v189_v26 = vmax.f32 %v157_v62, 0.0  ;;  %v190_v28 = vmax.f32 %v158_v44, 0.0 }
  0x2e   :  { %v191_v32 = vmax.f32 %v159_v63, 0.0  ;;  %v192_v33 = vmax.f32 %v160_v0, 0.0  ;;  %v193_v34 = vmax.f32 %v161_v45, 0.0  ;;  %v194_v35 = vmax.f32 %v162_v4, 0.0 }
  0x2f   :  { %220 = vst.msk [vmem:[%s785_s4 + $0x80] sm:$0xff] %vm203_vm0, %v187_v5  ;;  %221 = vst.msk [vmem:[%s785_s4 + $0x88] sm:$0xff] %vm203_vm0, %v188_v50  ;;  %v787_v39 = vsub.f32 %v435_v51, %v289_v13  ;;  %v788_v18 = vsub.f32 %v440_v52, %v289_v13  ;;  %v789_v12 = vsub.f32 %v453_v58, %v289_v13 }
  0x30   :  { %222 = vst.msk [vmem:[%s785_s4 + $0x90] sm:$0xff] %vm203_vm0, %v189_v26  ;;  %223 = vst.msk [vmem:[%s785_s4 + $0x98] sm:$0xff] %vm203_vm0, %v190_v28  ;;  %v790_v11 = vsub.f32 %v458_v59, %v289_v13  ;;  %v791_v51 = vsub.f32 %v463_v60, %v289_v13  ;;  %v792_v58 = vsub.f32 %v474_v1, %v289_v13 }
  0x31   :  { %v124_v40 = vmul.f32 %v496_v9, %v787_v39  ;;  %v125_v19 = vmul.f32 %v496_v9, %v788_v18  ;;  %v126_v14 = vmul.f32 %v496_v9, %v789_v12  ;;  %224 = vst.msk [vmem:[%s785_s4 + $0xa0] sm:$0xff] %vm203_vm0, %v191_v32  ;;  %225 = vst.msk [vmem:[%s785_s4 + $0xa8] sm:$0xff] %vm203_vm0, %v192_v33 }
  0x32   :  { %v127_v16 = vmul.f32 %v496_v9, %v790_v11  ;;  %226 = vst.msk [vmem:[%s785_s4 + $0xb0] sm:$0xff] %vm203_vm0, %v193_v34  ;;  %227 = vst.msk [vmem:[%s785_s4 + $0xb8] sm:$0xff] %vm203_vm0, %v194_v35  ;;  %v128_v52 = vmul.f32 %v496_v9, %v791_v51  ;;  %v129_v59 = vmul.f32 %v496_v9, %v792_v58 }
  0x33   :  { %v793_v20 = vsub.f32 %v479_v2, %v289_v13  ;;  %v794_v22 = vsub.f32 %v484_v3, %v289_v13  ;;  %v163_v41 = vadd.f32 %v507_v15, %v124_v40  ;;  %v164_v60 = vadd.f32 %v507_v15, %v125_v19 }
  0x34   :  { %v165_v24 = vadd.f32 %v507_v15, %v126_v14  ;;  %v166_v1 = vadd.f32 %v507_v15, %v127_v16  ;;  %v167_v42 = vadd.f32 %v507_v15, %v128_v52  ;;  %v168_v25 = vadd.f32 %v507_v15, %v129_v59 }
  0x35   :  { %v130_v21 = vmul.f32 %v496_v9, %v793_v20  ;;  %v131_v23 = vmul.f32 %v496_v9, %v794_v22  ;;  %v195_v47 = vmax.f32 %v163_v41, 0.0  ;;  %v196_v13 = vmax.f32 %v164_v60, 0.0 }
  0x36   :  { %v197_v3 = vmax.f32 %v165_v24, 0.0  ;;  %v198_v9 = vmax.f32 %v166_v1, 0.0  ;;  %v199_v29 = vmax.f32 %v167_v42, 0.0  ;;  %v200_v48 = vmax.f32 %v168_v25, 0.0 }
  0x37   :  { %v169_v2 = vadd.f32 %v507_v15, %v130_v21  ;;  %v170_v46 = vadd.f32 %v507_v15, %v131_v23  ;;  %228 = vst.msk [vmem:[%s785_s4 + $0xc0] sm:$0xff] %vm203_vm0, %v195_v47  ;;  %229 = vst.msk [vmem:[%s785_s4 + $0xc8] sm:$0xff] %vm203_vm0, %v196_v13 }
  0x38   :  { %230 = vst.msk [vmem:[%s785_s4 + $0xd0] sm:$0xff] %vm203_vm0, %v197_v3  ;;  %231 = vst.msk [vmem:[%s785_s4 + $0xd8] sm:$0xff] %vm203_vm0, %v198_v9 }
  0x39   :  { %v201_v49 = vmax.f32 %v169_v2, 0.0  ;;  %v202_v30 = vmax.f32 %v170_v46, 0.0  ;;  %232 = vst.msk [vmem:[%s785_s4 + $0xe0] sm:$0xff] %vm203_vm0, %v199_v29  ;;  %233 = vst.msk [vmem:[%s785_s4 + $0xe8] sm:$0xff] %vm203_vm0, %v200_v48 }
  0x3b   :  { %234 = vst.msk [vmem:[%s785_s4 + $0xf0] sm:$0xff] %vm203_vm0, %v201_v49  ;;  %235 = vst.msk [vmem:[%s785_s4 + $0xf8] sm:$0xff] %vm203_vm0, %v202_v30 }

// kernel: phasen_fwd.114
= control target key start
LH: loop header
LB: loop body
LE: loop exit
PB: predicated region body
PF: predicated region fallthrough
CT: control target
= control target key end

     0   :  { %vm12_vm0 = vcmask 64512   ;;  %v365_v0 = vmov 0.0   ;;  %vm249_vm1 = vcmask 57344   ;;  %s543_s0 = inlined_call_operand.vmem [shape: f32[256,8], index: 0, kind: input, shape index: {}]   ;;  %s544_s1 = inlined_call_operand.vmem [shape: f32[8,8], index: 1, kind: output, shape index: {}]  }
   0x1   :  { %13 = vst.msk [vmem:[#allocation2] sm:$0xff] %vm12_vm0, %v365_v0  ;;  %v14_v1 = vld [vmem:[%s543_s0] sm:$0xff]  ;;  %v15_v2 = vld [vmem:[%s543_s0 + $0x8] sm:$0xff]  ;;  %v16_v3 = vld [vmem:[%s543_s0 + $0x10] sm:$0xff] }
   0x2   :  { %v179_v4 = vsel %vm12_vm0, %v14_v1, 0.0  ;;  %v180_v5 = vsel %vm12_vm0, %v15_v2, 0.0  ;;  %v182_v6 = vsel %vm12_vm0, %v16_v3, 0.0  ;;  %v17_v7 = vld [vmem:[%s543_s0 + $0x18] sm:$0xff]  ;;  %v18_v10 = vld [vmem:[%s543_s0 + $0x20] sm:$0xff]  ;;  %v19_v13 = vld [vmem:[%s543_s0 + $0x28] sm:$0xff]  ;;  %v252_v28 = vmul.f32 %v14_v1, %v14_v1 }
   0x3   :  { %v181_v8 = vadd.f32 %v180_v5, %v179_v4  ;;  %v184_v9 = vsel %vm12_vm0, %v17_v7, 0.0  ;;  %v186_v12 = vsel %vm12_vm0, %v18_v10, 0.0  ;;  %v188_v15 = vsel %vm12_vm0, %v19_v13, 0.0  ;;  %v20_v16 = vld [vmem:[%s543_s0 + $0x30] sm:$0xff]  ;;  %v21_v19 = vld [vmem:[%s543_s0 + $0x38] sm:$0xff]  ;;  %v22_v22 = vld [vmem:[%s543_s0 + $0x40] sm:$0xff] }
   0x4   :  { %v190_v18 = vsel %vm12_vm0, %v20_v16, 0.0  ;;  %v192_v21 = vsel %vm12_vm0, %v21_v19, 0.0  ;;  %v194_v24 = vsel %vm12_vm0, %v22_v22, 0.0  ;;  %v23_v25 = vld [vmem:[%s543_s0 + $0x48] sm:$0xff]  ;;  %v253_v29 = vmul.f32 %v15_v2, %v15_v2  ;;  %v24_v31 = vld [vmem:[%s543_s0 + $0x50] sm:$0xff]  ;;  %v25_v33 = vld [vmem:[%s543_s0 + $0x58] sm:$0xff] }
   0x5   :  { %v183_v11 = vadd.f32 %v182_v6, %v181_v8  ;;  %v196_v27 = vsel %vm12_vm0, %v23_v25, 0.0  ;;  %v254_v30 = vmul.f32 %v16_v3, %v16_v3  ;;  %v198_v34 = vsel %vm12_vm0, %v24_v31, 0.0  ;;  %v26_v42 = vld [vmem:[%s543_s0 + $0x60] sm:$0xff]  ;;  %v27_v48 = vld [vmem:[%s543_s0 + $0x68] sm:$0xff]  ;;  %v28_v54 = vld [vmem:[%s543_s0 + $0x70] sm:$0xff] }
   0x6   :  { %v255_v35 = vmul.f32 %v17_v7, %v17_v7  ;;  %v200_v37 = vsel %vm12_vm0, %v25_v33, 0.0  ;;  %v256_v38 = vmul.f32 %v18_v10, %v18_v10  ;;  %v284_v39 = vsel %vm12_vm0, %v252_v28, 0.0  ;;  %v29_v60 = vld [vmem:[%s543_s0 + $0x78] sm:$0xff]  ;;  %v30_v2 = vld [vmem:[%s543_s0 + $0x80] sm:$0xff]  ;;  %v31_v8 = vld [vmem:[%s543_s0 + $0x88] sm:$0xff] }
   0x7   :  { %v185_v14 = vadd.f32 %v184_v9, %v183_v11  ;;  %v285_v40 = vsel %vm12_vm0, %v253_v29, 0.0  ;;  %v287_v41 = vsel %vm12_vm0, %v254_v30, 0.0  ;;  %v202_v45 = vsel %vm12_vm0, %v26_v42, 0.0 }
   0x8   :  { %v286_v44 = vadd.f32 %v285_v40, %v284_v39  ;;  %v257_v46 = vmul.f32 %v19_v13, %v19_v13  ;;  %v289_v47 = vsel %vm12_vm0, %v255_v35, 0.0  ;;  %v204_v51 = vsel %vm12_vm0, %v27_v48, 0.0 }
   0x9   :  { %v187_v17 = vadd.f32 %v186_v12, %v185_v14  ;;  %v258_v52 = vmul.f32 %v20_v16, %v20_v16  ;;  %v291_v53 = vsel %vm12_vm0, %v256_v38, 0.0  ;;  %v206_v57 = vsel %vm12_vm0, %v28_v54, 0.0  ;;  %v32_v14 = vld [vmem:[%s543_s0 + $0x90] sm:$0xff] }
   0xa   :  { %v288_v50 = vadd.f32 %v287_v41, %v286_v44  ;;  %v259_v58 = vmul.f32 %v21_v19, %v21_v19  ;;  %v293_v59 = vsel %vm12_vm0, %v257_v46, 0.0  ;;  %v208_v63 = vsel %vm12_vm0, %v29_v60, 0.0  ;;  %v36_v38 = vld [vmem:[%s543_s0 + $0xb0] sm:$0xff]  ;;  %v37_v44 = vld [vmem:[%s543_s0 + $0xb8] sm:$0xff] }
   0xb   :  { %v189_v20 = vadd.f32 %v188_v15, %v187_v17  ;;  %v260_v0 = vmul.f32 %v22_v22, %v22_v22  ;;  %v295_v1 = vsel %vm12_vm0, %v258_v52, 0.0  ;;  %v210_v5 = vsel %vm12_vm0, %v30_v2, 0.0 }
   0xc   :  { %v290_v56 = vadd.f32 %v289_v47, %v288_v50  ;;  %v261_v6 = vmul.f32 %v23_v25, %v23_v25  ;;  %v297_v7 = vsel %vm12_vm0, %v259_v58, 0.0  ;;  %v212_v11 = vsel %vm12_vm0, %v31_v8, 0.0  ;;  %v38_v50 = vld [vmem:[%s543_s0 + $0xc0] sm:$0xff] }
   0xd   :  { %v191_v23 = vadd.f32 %v190_v18, %v189_v20  ;;  %v262_v12 = vmul.f32 %v24_v31, %v24_v31  ;;  %v299_v13 = vsel %vm12_vm0, %v260_v0, 0.0  ;;  %v214_v17 = vsel %vm12_vm0, %v32_v14, 0.0  ;;  %v33_v20 = vld [vmem:[%s543_s0 + $0x98] sm:$0xff] }
   0xe   :  { %v292_v62 = vadd.f32 %v291_v53, %v290_v56  ;;  %v263_v18 = vmul.f32 %v25_v33, %v25_v33  ;;  %v301_v19 = vsel %vm12_vm0, %v261_v6, 0.0  ;;  %v265_v30 = vmul.f32 %v27_v48, %v27_v48  ;;  %v39_v56 = vld [vmem:[%s543_s0 + $0xc8] sm:$0xff] }
   0xf   :  { %v193_v26 = vadd.f32 %v192_v21, %v191_v23  ;;  %v216_v23 = vsel %vm12_vm0, %v33_v20, 0.0  ;;  %v303_v25 = vsel %vm12_vm0, %v262_v12, 0.0  ;;  %v222_v41 = vsel %vm12_vm0, %v36_v38, 0.0 }
  0x10   :  { %v294_v4 = vadd.f32 %v293_v59, %v292_v62  ;;  %v305_v31 = vsel %vm12_vm0, %v263_v18, 0.0  ;;  %v224_v47 = vsel %vm12_vm0, %v37_v44, 0.0  ;;  %v268_v48 = vmul.f32 %v30_v2, %v30_v2  ;;  %v40_v62 = vld [vmem:[%s543_s0 + $0xd0] sm:$0xff] }
  0x11   :  { %v195_v32 = vadd.f32 %v194_v24, %v193_v26  ;;  %v264_v24 = vmul.f32 %v26_v42, %v26_v42  ;;  %v34_v26 = vld [vmem:[%s543_s0 + $0xa0] sm:$0xff]  ;;  %v267_v42 = vmul.f32 %v29_v60, %v29_v60  ;;  %v226_v53 = vsel %vm12_vm0, %v38_v50, 0.0 }
  0x12   :  { %v296_v10 = vadd.f32 %v295_v1, %v294_v4  ;;  %v218_v29 = vsel %vm12_vm0, %v34_v26, 0.0  ;;  %v228_v59 = vsel %vm12_vm0, %v39_v56, 0.0  ;;  %v270_v60 = vmul.f32 %v32_v14, %v32_v14  ;;  %v41_v4 = vld [vmem:[%s543_s0 + $0xd8] sm:$0xff] }
  0x13   :  { %v197_v36 = vadd.f32 %v196_v27, %v195_v32  ;;  %v35_v32 = vld [vmem:[%s543_s0 + $0xa8] sm:$0xff]  ;;  %v230_v1 = vsel %vm12_vm0, %v40_v62, 0.0  ;;  %v271_v2 = vmul.f32 %v33_v20, %v33_v20  ;;  %v274_v20 = vmul.f32 %v36_v38, %v36_v38 }
  0x14   :  { %v298_v16 = vadd.f32 %v297_v7, %v296_v10  ;;  %v220_v35 = vsel %vm12_vm0, %v35_v32, 0.0  ;;  %v232_v7 = vsel %vm12_vm0, %v41_v4, 0.0  ;;  %v42_v10 = vld [vmem:[%s543_s0 + $0xe0] sm:$0xff]  ;;  %v273_v14 = vmul.f32 %v35_v32, %v35_v32 }
  0x15   :  { %v199_v43 = vadd.f32 %v198_v34, %v197_v36  ;;  %v266_v36 = vmul.f32 %v28_v54, %v28_v54  ;;  %v269_v54 = vmul.f32 %v31_v8, %v31_v8  ;;  %v272_v8 = vmul.f32 %v34_v26, %v34_v26 }
  0x16   :  { %v300_v22 = vadd.f32 %v299_v13, %v298_v16  ;;  %v234_v13 = vsel %vm12_vm0, %v42_v10, 0.0  ;;  %v43_v16 = vld [vmem:[%s543_s0 + $0xe8] sm:$0xff]  ;;  %v275_v26 = vmul.f32 %v37_v44, %v37_v44  ;;  %v276_v32 = vmul.f32 %v38_v50, %v38_v50 }
  0x17   :  { %v201_v49 = vadd.f32 %v200_v37, %v199_v43  ;;  %v307_v37 = vsel %vm12_vm0, %v264_v24, 0.0  ;;  %v309_v43 = vsel %vm12_vm0, %v265_v30, 0.0  ;;  %v279_v44 = vmul.f32 %v41_v4, %v41_v4 }
  0x18   :  { %v302_v28 = vadd.f32 %v301_v19, %v300_v22  ;;  %v236_v19 = vsel %vm12_vm0, %v43_v16, 0.0  ;;  %v44_v22 = vld [vmem:[%s543_s0 + $0xf0] sm:$0xff] }
  0x19   :  { %v203_v55 = vadd.f32 %v202_v45, %v201_v49  ;;  %v311_v49 = vsel %vm12_vm0, %v266_v36, 0.0  ;;  %v277_v36 = vmul.f32 %v39_v56, %v39_v56  ;;  %v282_v56 = vmul.f32 %v44_v22, %v44_v22 }
  0x1a   :  { %v304_v34 = vadd.f32 %v303_v25, %v302_v28  ;;  %v238_v25 = vsel %vm12_vm0, %v44_v22, 0.0  ;;  %v45_v28 = vld [vmem:[%s543_s0 + $0xf8] sm:$0xff] }
  0x1b   :  { %v205_v61 = vadd.f32 %v204_v51, %v203_v55  ;;  %v313_v55 = vsel %vm12_vm0, %v267_v42, 0.0 }
  0x1c   :  { %v306_v40 = vadd.f32 %v305_v31, %v304_v34  ;;  %v240_v31 = vsel %vm12_vm0, %v45_v28, 0.0 }
  0x1d   :  { %v207_v3 = vadd.f32 %v206_v57, %v205_v61  ;;  %v315_v61 = vsel %vm12_vm0, %v268_v48, 0.0  ;;  %v280_v48 = vmul.f32 %v42_v10, %v42_v10 }
  0x1e   :  { %v308_v46 = vadd.f32 %v307_v37, %v306_v40  ;;  %v329_v37 = vsel %vm12_vm0, %v275_v26, 0.0  ;;  %v278_v40 = vmul.f32 %v40_v62, %v40_v62 }
  0x1f   :  { %v209_v9 = vadd.f32 %v208_v63, %v207_v3  ;;  %v317_v3 = vsel %vm12_vm0, %v269_v54, 0.0 }
  0x20   :  { %v310_v52 = vadd.f32 %v309_v43, %v308_v46 }
  0x21   :  { %v211_v15 = vadd.f32 %v210_v5, %v209_v9  ;;  %v319_v9 = vsel %vm12_vm0, %v270_v60, 0.0  ;;  %v177_v60 = vld [vmem:[#allocation2] sm:$0x1] }
  0x22   :  { %v312_v58 = vadd.f32 %v311_v49, %v310_v52  ;;  %v335_v49 = vsel %vm12_vm0, %v278_v40, 0.0  ;;  %v281_v52 = vmul.f32 %v43_v16, %v43_v16 }
  0x23   :  { %v213_v21 = vadd.f32 %v212_v11, %v211_v15  ;;  %v321_v15 = vsel %vm12_vm0, %v271_v2, 0.0 }
  0x24   :  { %v314_v0 = vadd.f32 %v313_v55, %v312_v58  ;;  %v341_v62 = vsel %vm12_vm0, %v281_v52, 0.0 }
  0x25   :  { %v215_v27 = vadd.f32 %v214_v17, %v213_v21  ;;  %v323_v21 = vsel %vm12_vm0, %v272_v8, 0.0 }
  0x26   :  { %v316_v6 = vadd.f32 %v315_v61, %v314_v0  ;;  %v283_v61 = vmul.f32 %v45_v28, %v45_v28 }
  0x27   :  { %v217_v33 = vadd.f32 %v216_v23, %v215_v27  ;;  %v325_v27 = vsel %vm12_vm0, %v273_v14, 0.0 }
  0x28   :  { %v318_v12 = vadd.f32 %v317_v3, %v316_v6  ;;  %v345_v4 = vsel %vm12_vm0, %v283_v61, 0.0 }
  0x29   :  { %v219_v39 = vadd.f32 %v218_v29, %v217_v33  ;;  %v327_v33 = vsel %vm12_vm0, %v274_v20, 0.0 }
  0x2a   :  { %v320_v18 = vadd.f32 %v319_v9, %v318_v12  ;;  %v251_v12 = vld [vmem:[#allocation2 + $0x1] sm:$0x1] }
  0x2b   :  { %v221_v45 = vadd.f32 %v220_v35, %v219_v39 }
  0x2c   :  { %v322_v24 = vadd.f32 %v321_v15, %v320_v18 }
  0x2d   :  { %v223_v51 = vadd.f32 %v222_v41, %v221_v45  ;;  %v331_v41 = vsel %vm12_vm0, %v276_v32, 0.0  ;;  %v333_v45 = vsel %vm12_vm0, %v277_v36, 0.0 }
  0x2e   :  { %v324_v30 = vadd.f32 %v323_v21, %v322_v24 }
  0x2f   :  { %v225_v57 = vadd.f32 %v224_v47, %v223_v51 }
  0x30   :  { %v326_v35 = vadd.f32 %v325_v27, %v324_v30 }
  0x31   :  { %v227_v63 = vadd.f32 %v226_v53, %v225_v57  ;;  %v337_v53 = vsel %vm12_vm0, %v279_v44, 0.0  ;;  %v339_v57 = vsel %vm12_vm0, %v280_v48, 0.0 }
  0x32   :  { %v328_v39 = vadd.f32 %v327_v33, %v326_v35 }
  0x33   :  { %v229_v5 = vadd.f32 %v228_v59, %v227_v63 }
  0x34   :  { %v330_v43 = vadd.f32 %v329_v37, %v328_v39 }
  0x35   :  { %v231_v11 = vadd.f32 %v230_v1, %v229_v5  ;;  %v343_v1 = vsel %vm12_vm0, %v282_v56, 0.0 }
  0x36   :  { %v332_v47 = vadd.f32 %v331_v41, %v330_v43 }
  0x37   :  { %v233_v17 = vadd.f32 %v232_v7, %v231_v11 }
  0x38   :  { %v334_v51 = vadd.f32 %v333_v45, %v332_v47 }
  0x39   :  { %v235_v23 = vadd.f32 %v234_v13, %v233_v17 }
  0x3a   :  { %v336_v55 = vadd.f32 %v335_v49, %v334_v51 }
  0x3b   :  { %v237_v29 = vadd.f32 %v236_v19, %v235_v23 }
  0x3c   :  { %v338_v59 = vadd.f32 %v337_v53, %v336_v55 }
  0x3d   :  { %v239_v34 = vadd.f32 %v238_v25, %v237_v29 }
  0x3e   :  { %v340_v0 = vadd.f32 %v339_v57, %v338_v59 }
  0x3f   :  { %v241_v38 = vadd.f32 %v240_v31, %v239_v34 }
  0x40   :  { %v342_v3 = vadd.f32 %v341_v62, %v340_v0 }
  0x41   :  { %v242_v42 = vrot.slane %v241_v38, 4 }
  0x42   :  { %v344_v5 = vadd.f32 %v343_v1, %v342_v3 }
  0x43   :  { %v243_v46 = vadd.f32 %v242_v42, %v241_v38 }
  0x44   :  { %v346_v6 = vadd.f32 %v345_v4, %v344_v5 }
  0x45   :  { %v244_v50 = vrot.slane %v243_v46, 2 }
  0x46   :  { %v347_v7 = vrot.slane %v346_v6, 4 }
  0x47   :  { %v245_v54 = vadd.f32 %v244_v50, %v243_v46 }
  0x48   :  { %v348_v8 = vadd.f32 %v347_v7, %v346_v6 }
  0x49   :  { %v246_v58 = vrot.slane %v245_v54, 1 }
  0x4a   :  { %v349_v9 = vrot.slane %v348_v8, 2 }
  0x4b   :  { %v247_v63 = vadd.f32 %v246_v58, %v245_v54 }
  0x4c   :  { %v350_v10 = vadd.f32 %v349_v9, %v348_v8 }
  0x4d   :  { %v248_v2 = vadd.f32 %v247_v63, %v177_v60 }
  0x4e   :  { %v351_v11 = vrot.slane %v350_v10, 1 }
  0x4f   :  { %250 = vst.msk [vmem:[#allocation2] sm:$0x1] %vm249_vm1, %v248_v2 }
  0x50   :  { %v352_v13 = vadd.f32 %v351_v11, %v350_v10 }
  0x52   :  { %v353_v14 = vadd.f32 %v352_v13, %v251_v12 }
  0x54   :  { %354 = vst.msk [vmem:[#allocation2 + $0x1] sm:$0x1] %vm249_vm1, %v353_v14 }
  0x5b   :  { %v358_v15 = vld [vmem:[#allocation2] sm:$0xff] }
  0x5c   :  { %359 = vst.msk [vmem:[%s544_s1] sm:$0xff] %vm12_vm0, %v358_v15 }

// kernel: phasen_fwd.116
= control target key start
LH: loop header
LB: loop body
LE: loop exit
PB: predicated region body
PF: predicated region fallthrough
CT: control target
= control target key end

     0   :  { %v699_v0 = vmov 0   ;;  %vm298_vm0 = vcmask 588800   ;;  %vm347_vm1 = vcmask 1043456   ;;  %vm512_vm2 = vcmask 64512   ;;  %s1062_s1 = inlined_call_operand.vmem [shape: bf16[200,8], index: 1, kind: input, shape index: {}]   ;;  %s1063_s0 = inlined_call_operand.vmem [shape: bf16[256,200], index: 0, kind: input, shape index: {}]   ;;  %s1064_s2 = inlined_call_operand.vmem [shape: f32[1,8], index: 2, kind: input, shape index: {}]   ;;  %s1065_s3 = inlined_call_operand.vmem [shape: f32[256,8], index: 3, kind: output, shape index: {}]  }
   0x1   :  { %351 = vmatprep.subr.bf16.mxu0 %v699_v0  ;;  %611 = vmatprep.subr.bf16.mxu1 %v699_v0  ;;  %v638_v1 = vld [vmem:[%s1062_s1] sm:$0xff]   ;;  %v639_v2 = vld [vmem:[%s1062_s1 + $0x8] sm:$0xff]   ;;  %v640_v3 = vld [vmem:[%s1062_s1 + $0x10] sm:$0xff]  }
   0x2   :  { %352 = vmatpush1.bf16.msra.mxu0 %v638_v1  ;;  %624 = vmatpush1.bf16.msra.mxu1 %v638_v1  ;;  %v641_v4 = vld [vmem:[%s1062_s1 + $0x18] sm:$0xff]   ;;  %v653_v5 = vld [vmem:[%s1063_s0 + $0x4] ss:$8 sps:$4 sm:$0xff]   ;;  %v644_v9 = vld [vmem:[%s1062_s1 + $0x30] sm:$0xff]  }
   0x3   :  { %353 = vmatprep.subr.bf16.mxu0 %v699_v0  ;;  %612 = vmatprep.subr.bf16.mxu1 %v699_v0  ;;  %v642_v6 = vld [vmem:[%s1062_s1 + $0x20] sm:$0xff]   ;;  %v643_v8 = vld [vmem:[%s1062_s1 + $0x28] sm:$0xff]   ;;  %v645_v10 = vld [vmem:[%s1062_s1 + $0x38] sm:$0xff]  }
   0x4   :  { %v656_v7 = vld [vmem:[%s1063_s0 + $0x84] ss:$8 sps:$4 sm:$0xff]   ;;  %595 = vmatprep.mubr.msk.bf16.mxu0 %vm298_vm0, %v653_v5  ;;  %v648_v13 = vld [vmem:[%s1062_s1 + $0x50] sm:$0xff]   ;;  %v649_v14 = vld [vmem:[%s1062_s1 + $0x58] sm:$0xff]  }
   0x5   :  { %603 = vmatprep.mubr.msk.bf16.mxu1 %vm298_vm0, %v656_v7  ;;  %v646_v11 = vld [vmem:[%s1062_s1 + $0x40] sm:$0xff]   ;;  %v647_v12 = vld [vmem:[%s1062_s1 + $0x48] sm:$0xff]   ;;  %v657_v19 = vld [vmem:[%s1063_s0 + $0x14] ss:$8 sps:$4 sm:$0xff]  }
   0x6   :  { %354 = vmatpush1.bf16.msra.mxu0 %v639_v2  ;;  %625 = vmatpush1.bf16.msra.mxu1 %v639_v2  ;;  %v650_v15 = vld [vmem:[%s1062_s1 + $0x60] ss:$0 sps:$4 sm:$0xff]   ;;  %v659_v20 = vld [vmem:[%s1063_s0 + $0x94] ss:$8 sps:$4 sm:$0xff]   ;;  %v661_v21 = vld [vmem:[%s1063_s0 + $0x10] ss:$8 sps:$4 sm:$0xff]  }
   0x7   :  { %355 = vmatprep.subr.bf16.mxu0 %v699_v0  ;;  %613 = vmatprep.subr.bf16.mxu1 %v699_v0  ;;  %v349_v16 = vsel %vm347_vm1, %v650_v15, 0  ;;  %v651_v17 = vld [vmem:[%s1063_s0] ss:$8 sps:$4 sm:$0xff]   ;;  %v662_v22 = vld [vmem:[%s1063_s0 + $0x90] ss:$8 sps:$4 sm:$0xff]  }
   0x8   :  { %v654_v18 = vld [vmem:[%s1063_s0 + $0x80] ss:$8 sps:$4 sm:$0xff]   ;;  %v663_v23 = vld [vmem:[%s1063_s0 + $0x24] ss:$8 sps:$4 sm:$0xff]   ;;  %v669_v27 = vld [vmem:[%s1063_s0 + $0x34] ss:$8 sps:$4 sm:$0xff]  }
   0x9   :  { %v665_v24 = vld [vmem:[%s1063_s0 + $0xa4] ss:$8 sps:$4 sm:$0xff]   ;;  %v667_v25 = vld [vmem:[%s1063_s0 + $0x20] ss:$8 sps:$4 sm:$0xff]   ;;  %v671_v28 = vld [vmem:[%s1063_s0 + $0xb4] ss:$8 sps:$4 sm:$0xff]  }
   0xa   :  { %356 = vmatpush1.bf16.msra.mxu0 %v640_v3  ;;  %626 = vmatpush1.bf16.msra.mxu1 %v640_v3  ;;  %v668_v26 = vld [vmem:[%s1063_s0 + $0xa0] ss:$8 sps:$4 sm:$0xff]   ;;  %v673_v29 = vld [vmem:[%s1063_s0 + $0x30] ss:$8 sps:$4 sm:$0xff]   ;;  %v675_v31 = vld [vmem:[%s1063_s0 + $0x44] ss:$8 sps:$4 sm:$0xff]  }
   0xb   :  { %357 = vmatprep.subr.bf16.mxu0 %v699_v0  ;;  %614 = vmatprep.subr.bf16.mxu1 %v699_v0  ;;  %v674_v30 = vld [vmem:[%s1063_s0 + $0xb0] ss:$8 sps:$4 sm:$0xff]   ;;  %v677_v32 = vld [vmem:[%s1063_s0 + $0xc4] ss:$8 sps:$4 sm:$0xff]   ;;  %v679_v33 = vld [vmem:[%s1063_s0 + $0x40] ss:$8 sps:$4 sm:$0xff]  }
   0xc   :  { %v680_v34 = vld [vmem:[%s1063_s0 + $0xc0] ss:$8 sps:$4 sm:$0xff]   ;;  %v681_v35 = vld [vmem:[%s1063_s0 + $0x54] ss:$8 sps:$4 sm:$0xff]   ;;  %v685_v37 = vld [vmem:[%s1063_s0 + $0x50] ss:$8 sps:$4 sm:$0xff]  }
   0xd   :  { %v683_v36 = vld [vmem:[%s1063_s0 + $0xd4] ss:$8 sps:$4 sm:$0xff]   ;;  %v686_v38 = vld [vmem:[%s1063_s0 + $0xd0] ss:$8 sps:$4 sm:$0xff]   ;;  %v687_v39 = vld [vmem:[%s1063_s0 + $0x64] ss:$8 sps:$4 sm:$0xff]  }
   0xe   :  { %358 = vmatpush1.bf16.msra.mxu0 %v641_v4  ;;  %627 = vmatpush1.bf16.msra.mxu1 %v641_v4  ;;  %v689_v40 = vld [vmem:[%s1063_s0 + $0xe4] ss:$8 sps:$4 sm:$0xff]   ;;  %v691_v41 = vld [vmem:[%s1063_s0 + $0x60] ss:$8 sps:$4 sm:$0xff]   ;;  %v693_v43 = vld [vmem:[%s1063_s0 + $0x74] ss:$8 sps:$4 sm:$0xff]  }
   0xf   :  { %359 = vmatprep.subr.bf16.mxu0 %v699_v0  ;;  %615 = vmatprep.subr.bf16.mxu1 %v699_v0  ;;  %v692_v42 = vld [vmem:[%s1063_s0 + $0xe0] ss:$8 sps:$4 sm:$0xff]   ;;  %v695_v44 = vld [vmem:[%s1063_s0 + $0xf4] ss:$8 sps:$4 sm:$0xff]   ;;  %v697_v45 = vld [vmem:[%s1063_s0 + $0x70] ss:$8 sps:$4 sm:$0xff]  }
  0x10   :  { %v698_v46 = vld [vmem:[%s1063_s0 + $0xf0] ss:$8 sps:$4 sm:$0xff]   ;;  %v900_v47 = vld [vmem:[%s1064_s2] ss:$0 sm:$0xff] }
  0x12   :  { %360 = vmatpush1.bf16.msra.mxu0 %v642_v6  ;;  %628 = vmatpush1.bf16.msra.mxu1 %v642_v6 }
  0x13   :  { %361 = vmatprep.subr.bf16.mxu0 %v699_v0  ;;  %616 = vmatprep.subr.bf16.mxu1 %v699_v0 }
  0x16   :  { %362 = vmatpush1.bf16.msra.mxu0 %v643_v8  ;;  %629 = vmatpush1.bf16.msra.mxu1 %v643_v8 }
  0x17   :  { %363 = vmatprep.subr.bf16.mxu0 %v699_v0  ;;  %617 = vmatprep.subr.bf16.mxu1 %v699_v0 }
  0x1a   :  { %364 = vmatpush1.bf16.msra.mxu0 %v644_v9  ;;  %630 = vmatpush1.bf16.msra.mxu1 %v644_v9 }
  0x1b   :  { %365 = vmatprep.subr.bf16.mxu0 %v699_v0  ;;  %618 = vmatprep.subr.bf16.mxu1 %v699_v0 }
  0x1e   :  { %366 = vmatpush1.bf16.msra.mxu0 %v645_v10  ;;  %631 = vmatpush1.bf16.msra.mxu1 %v645_v10 }
  0x1f   :  { %367 = vmatprep.subr.bf16.mxu0 %v699_v0  ;;  %619 = vmatprep.subr.bf16.mxu1 %v699_v0 }
  0x22   :  { %368 = vmatpush1.bf16.msra.mxu0 %v646_v11  ;;  %632 = vmatpush1.bf16.msra.mxu1 %v646_v11 }
  0x23   :  { %369 = vmatprep.subr.bf16.mxu0 %v699_v0  ;;  %620 = vmatprep.subr.bf16.mxu1 %v699_v0 }
  0x26   :  { %370 = vmatpush1.bf16.msra.mxu0 %v647_v12  ;;  %633 = vmatpush1.bf16.msra.mxu1 %v647_v12 }
  0x27   :  { %371 = vmatprep.subr.bf16.mxu0 %v699_v0  ;;  %621 = vmatprep.subr.bf16.mxu1 %v699_v0 }
  0x2a   :  { %372 = vmatpush1.bf16.msra.mxu0 %v648_v13  ;;  %634 = vmatpush1.bf16.msra.mxu1 %v648_v13 }
  0x2b   :  { %373 = vmatprep.subr.bf16.mxu0 %v699_v0  ;;  %622 = vmatprep.subr.bf16.mxu1 %v699_v0 }
  0x2e   :  { %374 = vmatpush1.bf16.msra.mxu0 %v649_v14  ;;  %635 = vmatpush1.bf16.msra.mxu1 %v649_v14 }
  0x2f   :  { %375 = vmatprep.subr.bf16.mxu0 %v699_v0  ;;  %623 = vmatprep.subr.bf16.mxu1 %v699_v0 }
  0x32   :  { %376 = vmatpush1.bf16.msra.mxu0 %v349_v16  ;;  %636 = vmatpush1.bf16.msra.mxu1 %v349_v16 }
  0x35   :  { %384 = vmatmul.mubr.bf16.vlgmr.msra.gmra.mrb[0].mxu0 %v651_v17  ;;  %448 = vmatmul.mubr.bf16.vlgmr.msra.gmra.mrb[0].mxu1 %v654_v18 }
  0x36   :  { %596 = vmatprep.mubr.msk.bf16.mxu0 %vm298_vm0, %v657_v19  ;;  %604 = vmatprep.mubr.msk.bf16.mxu1 %vm298_vm0, %v659_v20 }
  0x3d   :  { %392 = vmatmul.mubr.bf16.gmra.mrb[4].mxu0 %v661_v21  ;;  %456 = vmatmul.mubr.bf16.gmra.mrb[4].mxu1 %v662_v22 }
  0x3e   :  { %597 = vmatprep.mubr.msk.bf16.mxu0 %vm298_vm0, %v663_v23  ;;  %605 = vmatprep.mubr.msk.bf16.mxu1 %vm298_vm0, %v665_v24 }
  0x45   :  { %400 = vmatmul.mubr.bf16.gmra.mrb[8].mxu0 %v667_v25  ;;  %464 = vmatmul.mubr.bf16.gmra.mrb[8].mxu1 %v668_v26 }
  0x46   :  { %598 = vmatprep.mubr.msk.bf16.mxu0 %vm298_vm0, %v669_v27  ;;  %606 = vmatprep.mubr.msk.bf16.mxu1 %vm298_vm0, %v671_v28 }
  0x4d   :  { %408 = vmatmul.mubr.bf16.gmra.mrb[12].mxu0 %v673_v29  ;;  %472 = vmatmul.mubr.bf16.gmra.mrb[12].mxu1 %v674_v30 }
  0x4e   :  { %599 = vmatprep.mubr.msk.bf16.mxu0 %vm298_vm0, %v675_v31  ;;  %607 = vmatprep.mubr.msk.bf16.mxu1 %vm298_vm0, %v677_v32 }
  0x55   :  { %416 = vmatmul.mubr.bf16.gmra.mrb[16].mxu0 %v679_v33  ;;  %480 = vmatmul.mubr.bf16.gmra.mrb[16].mxu1 %v680_v34 }
  0x56   :  { %600 = vmatprep.mubr.msk.bf16.mxu0 %vm298_vm0, %v681_v35  ;;  %608 = vmatprep.mubr.msk.bf16.mxu1 %vm298_vm0, %v683_v36 }
  0x5d   :  { %424 = vmatmul.mubr.bf16.gmra.mrb[20].mxu0 %v685_v37  ;;  %488 = vmatmul.mubr.bf16.gmra.mrb[20].mxu1 %v686_v38 }
  0x5e   :  { %601 = vmatprep.mubr.msk.bf16.mxu0 %vm298_vm0, %v687_v39  ;;  %609 = vmatprep.mubr.msk.bf16.mxu1 %vm298_vm0, %v689_v40 }
  0x65   :  { %432 = vmatmul.mubr.bf16.gmra.mrb[24].mxu0 %v691_v41  ;;  %496 = vmatmul.mubr.bf16.gmra.mrb[24].mxu1 %v692_v42 }
  0x66   :  { %602 = vmatprep.mubr.msk.bf16.mxu0 %vm298_vm0, %v693_v43  ;;  %610 = vmatprep.mubr.msk.bf16.mxu1 %vm298_vm0, %v695_v44 }
  0x6d   :  { %440 = vmatmul.mubr.bf16.gmra.mrb[28].mxu0 %v697_v45  ;;  %504 = vmatmul.mubr.bf16.gmra.mrb[28].mxu1 %v698_v46 }
 0x108   :  { %v385_v48 = vpop.f32.mrb[0].mxu0  ;;  %v449_v49 = vpop.f32.mrb[0].mxu1 }
 0x109   :  { %v386_v50 = vadd.f32 %v900_v47, %v385_v48  ;;  %v450_v51 = vadd.f32 %v900_v47, %v449_v49  ;;  %v387_v52 = vpop.f32.mrb[1].mxu0  ;;  %v451_v53 = vpop.f32.mrb[1].mxu1 }
 0x10a   :  { %v388_v54 = vpop.f32.mrb[2].mxu0  ;;  %v452_v55 = vpop.f32.mrb[2].mxu1 }
 0x10b   :  { %513 = vst.msk [vmem:[%s1065_s3] sm:$0xff] %vm512_vm2, %v386_v50  ;;  %529 = vst.msk [vmem:[%s1065_s3 + $0x80] sm:$0xff] %vm512_vm2, %v450_v51  ;;  %v389_v56 = vadd.f32 %v900_v47, %v388_v54  ;;  %v453_v57 = vadd.f32 %v900_v47, %v452_v55  ;;  %v390_v58 = vpop.f32.mrb[3].mxu0  ;;  %v454_v59 = vpop.f32.mrb[3].mxu1 }
 0x10d   :  { %514 = vst.msk [vmem:[%s1065_s3 + $0x8] sm:$0xff] %vm512_vm2, %v389_v56  ;;  %530 = vst.msk [vmem:[%s1065_s3 + $0x88] sm:$0xff] %vm512_vm2, %v453_v57 }
 0x110   :  { %v393_v60 = vpop.f32.mrb[4].mxu0  ;;  %v457_v61 = vpop.f32.mrb[4].mxu1 }
 0x111   :  { %v394_v62 = vadd.f32 %v900_v47, %v393_v60  ;;  %v458_v63 = vadd.f32 %v900_v47, %v457_v61  ;;  %v395_v0 = vpop.f32.mrb[5].mxu0  ;;  %v459_v1 = vpop.f32.mrb[5].mxu1 }
 0x112   :  { %v396_v2 = vpop.f32.mrb[6].mxu0  ;;  %v460_v3 = vpop.f32.mrb[6].mxu1 }
 0x113   :  { %515 = vst.msk [vmem:[%s1065_s3 + $0x10] sm:$0xff] %vm512_vm2, %v394_v62  ;;  %531 = vst.msk [vmem:[%s1065_s3 + $0x90] sm:$0xff] %vm512_vm2, %v458_v63  ;;  %v397_v4 = vadd.f32 %v900_v47, %v396_v2  ;;  %v461_v5 = vadd.f32 %v900_v47, %v460_v3  ;;  %v398_v6 = vpop.f32.mrb[7].mxu0  ;;  %v462_v7 = vpop.f32.mrb[7].mxu1 }
 0x115   :  { %516 = vst.msk [vmem:[%s1065_s3 + $0x18] sm:$0xff] %vm512_vm2, %v397_v4  ;;  %532 = vst.msk [vmem:[%s1065_s3 + $0x98] sm:$0xff] %vm512_vm2, %v461_v5 }
 0x118   :  { %v401_v8 = vpop.f32.mrb[8].mxu0  ;;  %v465_v9 = vpop.f32.mrb[8].mxu1 }
 0x119   :  { %v402_v10 = vadd.f32 %v900_v47, %v401_v8  ;;  %v466_v11 = vadd.f32 %v900_v47, %v465_v9  ;;  %v403_v12 = vpop.f32.mrb[9].mxu0  ;;  %v467_v13 = vpop.f32.mrb[9].mxu1 }
 0x11a   :  { %v404_v14 = vpop.f32.mrb[10].mxu0  ;;  %v468_v15 = vpop.f32.mrb[10].mxu1 }
 0x11b   :  { %517 = vst.msk [vmem:[%s1065_s3 + $0x20] sm:$0xff] %vm512_vm2, %v402_v10  ;;  %533 = vst.msk [vmem:[%s1065_s3 + $0xa0] sm:$0xff] %vm512_vm2, %v466_v11  ;;  %v405_v16 = vadd.f32 %v900_v47, %v404_v14  ;;  %v469_v17 = vadd.f32 %v900_v47, %v468_v15  ;;  %v406_v18 = vpop.f32.mrb[11].mxu0  ;;  %v470_v19 = vpop.f32.mrb[11].mxu1 }
 0x11d   :  { %518 = vst.msk [vmem:[%s1065_s3 + $0x28] sm:$0xff] %vm512_vm2, %v405_v16  ;;  %534 = vst.msk [vmem:[%s1065_s3 + $0xa8] sm:$0xff] %vm512_vm2, %v469_v17 }
 0x120   :  { %v409_v20 = vpop.f32.mrb[12].mxu0  ;;  %v473_v21 = vpop.f32.mrb[12].mxu1 }
 0x121   :  { %v410_v22 = vadd.f32 %v900_v47, %v409_v20  ;;  %v474_v23 = vadd.f32 %v900_v47, %v473_v21  ;;  %v411_v24 = vpop.f32.mrb[13].mxu0  ;;  %v475_v25 = vpop.f32.mrb[13].mxu1 }
 0x122   :  { %v412_v26 = vpop.f32.mrb[14].mxu0  ;;  %v476_v27 = vpop.f32.mrb[14].mxu1 }
 0x123   :  { %519 = vst.msk [vmem:[%s1065_s3 + $0x30] sm:$0xff] %vm512_vm2, %v410_v22  ;;  %535 = vst.msk [vmem:[%s1065_s3 + $0xb0] sm:$0xff] %vm512_vm2, %v474_v23  ;;  %v413_v28 = vadd.f32 %v900_v47, %v412_v26  ;;  %v477_v29 = vadd.f32 %v900_v47, %v476_v27  ;;  %v414_v30 = vpop.f32.mrb[15].mxu0  ;;  %v478_v31 = vpop.f32.mrb[15].mxu1 }
 0x125   :  { %520 = vst.msk [vmem:[%s1065_s3 + $0x38] sm:$0xff] %vm512_vm2, %v413_v28  ;;  %536 = vst.msk [vmem:[%s1065_s3 + $0xb8] sm:$0xff] %vm512_vm2, %v477_v29 }
 0x128   :  { %v417_v32 = vpop.f32.mrb[16].mxu0  ;;  %v481_v33 = vpop.f32.mrb[16].mxu1 }
 0x129   :  { %v418_v34 = vadd.f32 %v900_v47, %v417_v32  ;;  %v482_v35 = vadd.f32 %v900_v47, %v481_v33  ;;  %v419_v36 = vpop.f32.mrb[17].mxu0  ;;  %v483_v37 = vpop.f32.mrb[17].mxu1 }
 0x12a   :  { %v420_v38 = vpop.f32.mrb[18].mxu0  ;;  %v484_v39 = vpop.f32.mrb[18].mxu1 }
 0x12b   :  { %521 = vst.msk [vmem:[%s1065_s3 + $0x40] sm:$0xff] %vm512_vm2, %v418_v34  ;;  %537 = vst.msk [vmem:[%s1065_s3 + $0xc0] sm:$0xff] %vm512_vm2, %v482_v35  ;;  %v421_v40 = vadd.f32 %v900_v47, %v420_v38  ;;  %v485_v41 = vadd.f32 %v900_v47, %v484_v39  ;;  %v422_v42 = vpop.f32.mrb[19].mxu0  ;;  %v486_v43 = vpop.f32.mrb[19].mxu1 }
 0x12d   :  { %522 = vst.msk [vmem:[%s1065_s3 + $0x48] sm:$0xff] %vm512_vm2, %v421_v40  ;;  %538 = vst.msk [vmem:[%s1065_s3 + $0xc8] sm:$0xff] %vm512_vm2, %v485_v41 }
 0x130   :  { %v425_v44 = vpop.f32.mrb[20].mxu0  ;;  %v489_v45 = vpop.f32.mrb[20].mxu1 }
 0x131   :  { %v426_v46 = vadd.f32 %v900_v47, %v425_v44  ;;  %v490_v48 = vadd.f32 %v900_v47, %v489_v45  ;;  %v427_v49 = vpop.f32.mrb[21].mxu0  ;;  %v491_v50 = vpop.f32.mrb[21].mxu1 }
 0x132   :  { %v428_v51 = vpop.f32.mrb[22].mxu0  ;;  %v492_v52 = vpop.f32.mrb[22].mxu1 }
 0x133   :  { %523 = vst.msk [vmem:[%s1065_s3 + $0x50] sm:$0xff] %vm512_vm2, %v426_v46  ;;  %539 = vst.msk [vmem:[%s1065_s3 + $0xd0] sm:$0xff] %vm512_vm2, %v490_v48  ;;  %v429_v53 = vadd.f32 %v900_v47, %v428_v51  ;;  %v493_v54 = vadd.f32 %v900_v47, %v492_v52  ;;  %v430_v55 = vpop.f32.mrb[23].mxu0  ;;  %v494_v56 = vpop.f32.mrb[23].mxu1 }
 0x135   :  { %524 = vst.msk [vmem:[%s1065_s3 + $0x58] sm:$0xff] %vm512_vm2, %v429_v53  ;;  %540 = vst.msk [vmem:[%s1065_s3 + $0xd8] sm:$0xff] %vm512_vm2, %v493_v54 }
 0x138   :  { %v433_v57 = vpop.f32.mrb[24].mxu0  ;;  %v497_v58 = vpop.f32.mrb[24].mxu1 }
 0x139   :  { %v434_v59 = vadd.f32 %v900_v47, %v433_v57  ;;  %v498_v60 = vadd.f32 %v900_v47, %v497_v58  ;;  %v435_v61 = vpop.f32.mrb[25].mxu0  ;;  %v499_v62 = vpop.f32.mrb[25].mxu1 }
 0x13a   :  { %v436_v63 = vpop.f32.mrb[26].mxu0  ;;  %v500_v0 = vpop.f32.mrb[26].mxu1 }
 0x13b   :  { %525 = vst.msk [vmem:[%s1065_s3 + $0x60] sm:$0xff] %vm512_vm2, %v434_v59  ;;  %541 = vst.msk [vmem:[%s1065_s3 + $0xe0] sm:$0xff] %vm512_vm2, %v498_v60  ;;  %v437_v1 = vadd.f32 %v900_v47, %v436_v63  ;;  %v501_v2 = vadd.f32 %v900_v47, %v500_v0  ;;  %v438_v3 = vpop.f32.mrb[27].mxu0  ;;  %v502_v4 = vpop.f32.mrb[27].mxu1 }
 0x13d   :  { %526 = vst.msk [vmem:[%s1065_s3 + $0x68] sm:$0xff] %vm512_vm2, %v437_v1  ;;  %542 = vst.msk [vmem:[%s1065_s3 + $0xe8] sm:$0xff] %vm512_vm2, %v501_v2 }
 0x140   :  { %v441_v5 = vpop.f32.mrb[28].mxu0  ;;  %v505_v6 = vpop.f32.mrb[28].mxu1 }
 0x141   :  { %v442_v7 = vadd.f32 %v900_v47, %v441_v5  ;;  %v506_v8 = vadd.f32 %v900_v47, %v505_v6  ;;  %v443_v9 = vpop.f32.mrb[29].mxu0  ;;  %v507_v10 = vpop.f32.mrb[29].mxu1 }
 0x142   :  { %v444_v11 = vpop.f32.mrb[30].mxu0  ;;  %v508_v12 = vpop.f32.mrb[30].mxu1 }
 0x143   :  { %527 = vst.msk [vmem:[%s1065_s3 + $0x70] sm:$0xff] %vm512_vm2, %v442_v7  ;;  %543 = vst.msk [vmem:[%s1065_s3 + $0xf0] sm:$0xff] %vm512_vm2, %v506_v8  ;;  %v445_v13 = vadd.f32 %v900_v47, %v444_v11  ;;  %v509_v14 = vadd.f32 %v900_v47, %v508_v12  ;;  %v446_v15 = vpop.f32.mrb[31].mxu0  ;;  %v510_v16 = vpop.f32.mrb[31].mxu1 }
 0x145   :  { %528 = vst.msk [vmem:[%s1065_s3 + $0x78] sm:$0xff] %vm512_vm2, %v445_v13  ;;  %544 = vst.msk [vmem:[%s1065_s3 + $0xf8] sm:$0xff] %vm512_vm2, %v509_v14 }

// kernel: phasen_fwd.198
= control target key start
LH: loop header
LB: loop body
LE: loop exit
PB: predicated region body
PF: predicated region fallthrough
CT: control target
= control target key end

     0   :  { %vm120_vm0 = vcmask 1043456   ;;  %vm71_vm1 = vcmask 64512   ;;  %vm285_vm2 = vcmask 31744   ;;  %s694_s1 = inlined_call_operand.vmem [shape: bf16[8,4], index: 1, kind: input, shape index: {}]   ;;  %s695_s0 = inlined_call_operand.vmem [shape: f32[256,8], index: 0, kind: input, shape index: {}]   ;;  %s696_s2 = inlined_call_operand.vmem [shape: f32[1,4], index: 2, kind: input, shape index: {}]   ;;  %s697_s3 = inlined_call_operand.vmem [shape: f32[256,4], index: 3, kind: output, shape index: {}]  }
   0x1   :  { %v63_v0 = vld [vmem:[%s694_s1] sm:$0xf]  ;;  %v16_v2 = vld [vmem:[%s695_s0 + $0x8] sm:$0xff]  ;;  %v17_v7 = vld [vmem:[%s695_s0 + $0x10] sm:$0xff] }
   0x2   :  { %v15_v1 = vld [vmem:[%s695_s0] sm:$0xff]  ;;  %392 = vmatprep.subr.msk.bf16.mxu0 %vm120_vm0, %v63_v0  ;;  %393 = vmatprep.subr.msk.bf16.mxu1 %vm120_vm0, %v63_v0  ;;  %v122_v3 = vsel %vm120_vm0, %v63_v0, 0  ;;  %v32_v6 = vld [vmem:[%s695_s0 + $0x88] sm:$0xff]  ;;  %v18_v9 = vld [vmem:[%s695_s0 + $0x18] sm:$0xff] }
   0x3   :  { %v47_v4 = vpack.c.bf16 %v16_v2, %v15_v1  ;;  %v31_v5 = vld [vmem:[%s695_s0 + $0x80] sm:$0xff]  ;;  %357 = vmatpush3.bf16.msra.mxu0 %v122_v3  ;;  %391 = vmatpush3.bf16.msra.mxu1 %v122_v3  ;;  %v33_v10 = vld [vmem:[%s695_s0 + $0x90] sm:$0xff]  ;;  %v34_v11 = vld [vmem:[%s695_s0 + $0x98] sm:$0xff]  ;;  %v48_v12 = vpack.c.bf16 %v18_v9, %v17_v7 }
   0x4   :  { %v55_v8 = vpack.c.bf16 %v32_v6, %v31_v5  ;;  %v56_v13 = vpack.c.bf16 %v34_v11, %v33_v10  ;;  %v19_v14 = vld [vmem:[%s695_s0 + $0x20] sm:$0xff]  ;;  %v20_v15 = vld [vmem:[%s695_s0 + $0x28] sm:$0xff]  ;;  %v21_v20 = vld [vmem:[%s695_s0 + $0x30] sm:$0xff] }
   0x5   :  { %358 = vmatprep.mubr.msk.bf16.mxu0 %vm71_vm1, %v47_v4  ;;  %v35_v16 = vld [vmem:[%s695_s0 + $0xa0] sm:$0xff]  ;;  %v49_v17 = vpack.c.bf16 %v20_v15, %v19_v14  ;;  %v36_v18 = vld [vmem:[%s695_s0 + $0xa8] sm:$0xff]  ;;  %v22_v21 = vld [vmem:[%s695_s0 + $0x38] sm:$0xff] }
   0x6   :  { %374 = vmatprep.mubr.msk.bf16.mxu1 %vm71_vm1, %v55_v8  ;;  %359 = vmatmul.mubr.msk.bf16.vlgmr.msra.gmra.mrb[0].mxu0 %vm71_vm1, %v48_v12  ;;  %v57_v19 = vpack.c.bf16 %v36_v18, %v35_v16  ;;  %v37_v22 = vld [vmem:[%s695_s0 + $0xb0] sm:$0xff]  ;;  %v38_v23 = vld [vmem:[%s695_s0 + $0xb8] sm:$0xff]  ;;  %v23_v24 = vld [vmem:[%s695_s0 + $0x40] sm:$0xff]  ;;  %v50_v28 = vpack.c.bf16 %v22_v21, %v21_v20 }
   0x7   :  { %375 = vmatmul.mubr.msk.bf16.vlgmr.msra.gmra.mrb[0].mxu1 %vm71_vm1, %v56_v13  ;;  %362 = vmatprep.mubr.msk.bf16.mxu0 %vm71_vm1, %v49_v17  ;;  %v24_v25 = vld [vmem:[%s695_s0 + $0x48] sm:$0xff]  ;;  %v39_v26 = vld [vmem:[%s695_s0 + $0xc0] sm:$0xff]  ;;  %v58_v29 = vpack.c.bf16 %v38_v23, %v37_v22  ;;  %v25_v32 = vld [vmem:[%s695_s0 + $0x50] sm:$0xff] }
   0x8   :  { %378 = vmatprep.mubr.msk.bf16.mxu1 %vm71_vm1, %v57_v19  ;;  %v40_v27 = vld [vmem:[%s695_s0 + $0xc8] sm:$0xff]  ;;  %v51_v30 = vpack.c.bf16 %v24_v25, %v23_v24  ;;  %v26_v33 = vld [vmem:[%s695_s0 + $0x58] sm:$0xff]  ;;  %v41_v34 = vld [vmem:[%s695_s0 + $0xd0] sm:$0xff] }
   0x9   :  { %v59_v31 = vpack.c.bf16 %v40_v27, %v39_v26  ;;  %v42_v35 = vld [vmem:[%s695_s0 + $0xd8] sm:$0xff]  ;;  %v27_v36 = vld [vmem:[%s695_s0 + $0x60] sm:$0xff]  ;;  %v28_v37 = vld [vmem:[%s695_s0 + $0x68] sm:$0xff]  ;;  %v52_v40 = vpack.c.bf16 %v26_v33, %v25_v32 }
   0xa   :  { %v43_v38 = vld [vmem:[%s695_s0 + $0xe0] sm:$0xff]  ;;  %v44_v39 = vld [vmem:[%s695_s0 + $0xe8] sm:$0xff]  ;;  %v60_v41 = vpack.c.bf16 %v42_v35, %v41_v34  ;;  %v53_v42 = vpack.c.bf16 %v28_v37, %v27_v36  ;;  %v29_v44 = vld [vmem:[%s695_s0 + $0x70] sm:$0xff] }
   0xb   :  { %v61_v43 = vpack.c.bf16 %v44_v39, %v43_v38  ;;  %v30_v45 = vld [vmem:[%s695_s0 + $0x78] sm:$0xff]  ;;  %v45_v46 = vld [vmem:[%s695_s0 + $0xf0] sm:$0xff]  ;;  %v532_v50 = vld [vmem:[%s696_s2] ss:$0 sm:$0xff] }
   0xc   :  { %v46_v47 = vld [vmem:[%s695_s0 + $0xf8] sm:$0xff]  ;;  %v54_v48 = vpack.c.bf16 %v30_v45, %v29_v44 }
   0xd   :  { %v62_v49 = vpack.c.bf16 %v46_v47, %v45_v46 }
   0xe   :  { %363 = vmatmul.mubr.msk.bf16.gmra.mrb[4].mxu0 %vm71_vm1, %v50_v28 }
   0xf   :  { %379 = vmatmul.mubr.msk.bf16.gmra.mrb[4].mxu1 %vm71_vm1, %v58_v29  ;;  %366 = vmatprep.mubr.msk.bf16.mxu0 %vm71_vm1, %v51_v30 }
  0x10   :  { %382 = vmatprep.mubr.msk.bf16.mxu1 %vm71_vm1, %v59_v31 }
  0x16   :  { %367 = vmatmul.mubr.msk.bf16.gmra.mrb[8].mxu0 %vm71_vm1, %v52_v40 }
  0x17   :  { %383 = vmatmul.mubr.msk.bf16.gmra.mrb[8].mxu1 %vm71_vm1, %v60_v41  ;;  %370 = vmatprep.mubr.msk.bf16.mxu0 %vm71_vm1, %v53_v42 }
  0x18   :  { %386 = vmatprep.mubr.msk.bf16.mxu1 %vm71_vm1, %v61_v43 }
  0x1e   :  { %371 = vmatmul.mubr.msk.bf16.gmra.mrb[12].mxu0 %vm71_vm1, %v54_v48 }
  0x1f   :  { %387 = vmatmul.mubr.msk.bf16.gmra.mrb[12].mxu1 %vm71_vm1, %v62_v49 }
  0xd9   :  { %v360_v51 = vpop.f32.mrb[0].mxu0 }
  0xda   :  { %v376_v52 = vpop.f32.mrb[0].mxu1  ;;  %v167_v53 = vadd.f32 %v360_v51, %v532_v50  ;;  %v158_v55 = vpop.f32.mrb[1].mxu0 }
  0xdb   :  { %v231_v54 = vadd.f32 %v376_v52, %v532_v50  ;;  %v222_v56 = vpop.f32.mrb[1].mxu1  ;;  %v159_v57 = vadd.f32 %v532_v50, %v158_v55  ;;  %v361_v59 = vpop.f32.mrb[2].mxu0 }
  0xdc   :  { %v223_v58 = vadd.f32 %v532_v50, %v222_v56  ;;  %v377_v60 = vpop.f32.mrb[2].mxu1  ;;  %288 = vst.msk [vmem:[%s697_s3 + $0x10] sm:$0xff] %vm285_vm2, %v167_v53  ;;  %v170_v61 = vadd.f32 %v361_v59, %v532_v50  ;;  %v161_v63 = vpop.f32.mrb[3].mxu0 }
  0xdd   :  { %304 = vst.msk [vmem:[%s697_s3 + $0x90] sm:$0xff] %vm285_vm2, %v231_v54  ;;  %v234_v62 = vadd.f32 %v377_v60, %v532_v50  ;;  %v225_v0 = vpop.f32.mrb[3].mxu1  ;;  %286 = vst.msk [vmem:[%s697_s3] sm:$0xff] %vm285_vm2, %v159_v57  ;;  %v162_v1 = vadd.f32 %v532_v50, %v161_v63 }
  0xde   :  { %302 = vst.msk [vmem:[%s697_s3 + $0x80] sm:$0xff] %vm285_vm2, %v223_v58  ;;  %v226_v2 = vadd.f32 %v532_v50, %v225_v0  ;;  %289 = vst.msk [vmem:[%s697_s3 + $0x18] sm:$0xff] %vm285_vm2, %v170_v61 }
  0xdf   :  { %305 = vst.msk [vmem:[%s697_s3 + $0x98] sm:$0xff] %vm285_vm2, %v234_v62  ;;  %287 = vst.msk [vmem:[%s697_s3 + $0x8] sm:$0xff] %vm285_vm2, %v162_v1 }
  0xe0   :  { %303 = vst.msk [vmem:[%s697_s3 + $0x88] sm:$0xff] %vm285_vm2, %v226_v2 }
  0xe1   :  { %v364_v3 = vpop.f32.mrb[4].mxu0 }
  0xe2   :  { %v380_v4 = vpop.f32.mrb[4].mxu1  ;;  %v183_v5 = vadd.f32 %v364_v3, %v532_v50  ;;  %v174_v7 = vpop.f32.mrb[5].mxu0 }
  0xe3   :  { %v247_v6 = vadd.f32 %v380_v4, %v532_v50  ;;  %v238_v8 = vpop.f32.mrb[5].mxu1  ;;  %v175_v9 = vadd.f32 %v532_v50, %v174_v7  ;;  %v365_v11 = vpop.f32.mrb[6].mxu0 }
  0xe4   :  { %v239_v10 = vadd.f32 %v532_v50, %v238_v8  ;;  %v381_v12 = vpop.f32.mrb[6].mxu1  ;;  %292 = vst.msk [vmem:[%s697_s3 + $0x30] sm:$0xff] %vm285_vm2, %v183_v5  ;;  %v186_v13 = vadd.f32 %v365_v11, %v532_v50  ;;  %v177_v15 = vpop.f32.mrb[7].mxu0 }
  0xe5   :  { %308 = vst.msk [vmem:[%s697_s3 + $0xb0] sm:$0xff] %vm285_vm2, %v247_v6  ;;  %v250_v14 = vadd.f32 %v381_v12, %v532_v50  ;;  %v241_v16 = vpop.f32.mrb[7].mxu1  ;;  %290 = vst.msk [vmem:[%s697_s3 + $0x20] sm:$0xff] %vm285_vm2, %v175_v9  ;;  %v178_v17 = vadd.f32 %v532_v50, %v177_v15 }
  0xe6   :  { %306 = vst.msk [vmem:[%s697_s3 + $0xa0] sm:$0xff] %vm285_vm2, %v239_v10  ;;  %v242_v18 = vadd.f32 %v532_v50, %v241_v16  ;;  %293 = vst.msk [vmem:[%s697_s3 + $0x38] sm:$0xff] %vm285_vm2, %v186_v13 }
  0xe7   :  { %309 = vst.msk [vmem:[%s697_s3 + $0xb8] sm:$0xff] %vm285_vm2, %v250_v14  ;;  %291 = vst.msk [vmem:[%s697_s3 + $0x28] sm:$0xff] %vm285_vm2, %v178_v17 }
  0xe8   :  { %307 = vst.msk [vmem:[%s697_s3 + $0xa8] sm:$0xff] %vm285_vm2, %v242_v18 }
  0xe9   :  { %v368_v19 = vpop.f32.mrb[8].mxu0 }
  0xea   :  { %v384_v20 = vpop.f32.mrb[8].mxu1  ;;  %v199_v21 = vadd.f32 %v368_v19, %v532_v50  ;;  %v190_v23 = vpop.f32.mrb[9].mxu0 }
  0xeb   :  { %v263_v22 = vadd.f32 %v384_v20, %v532_v50  ;;  %v254_v24 = vpop.f32.mrb[9].mxu1  ;;  %v191_v25 = vadd.f32 %v532_v50, %v190_v23  ;;  %v369_v27 = vpop.f32.mrb[10].mxu0 }
  0xec   :  { %v255_v26 = vadd.f32 %v532_v50, %v254_v24  ;;  %v385_v28 = vpop.f32.mrb[10].mxu1  ;;  %296 = vst.msk [vmem:[%s697_s3 + $0x50] sm:$0xff] %vm285_vm2, %v199_v21  ;;  %v202_v29 = vadd.f32 %v369_v27, %v532_v50  ;;  %v193_v31 = vpop.f32.mrb[11].mxu0 }
  0xed   :  { %312 = vst.msk [vmem:[%s697_s3 + $0xd0] sm:$0xff] %vm285_vm2, %v263_v22  ;;  %v266_v30 = vadd.f32 %v385_v28, %v532_v50  ;;  %v257_v32 = vpop.f32.mrb[11].mxu1  ;;  %294 = vst.msk [vmem:[%s697_s3 + $0x40] sm:$0xff] %vm285_vm2, %v191_v25  ;;  %v194_v33 = vadd.f32 %v532_v50, %v193_v31 }
  0xee   :  { %310 = vst.msk [vmem:[%s697_s3 + $0xc0] sm:$0xff] %vm285_vm2, %v255_v26  ;;  %v258_v34 = vadd.f32 %v532_v50, %v257_v32  ;;  %297 = vst.msk [vmem:[%s697_s3 + $0x58] sm:$0xff] %vm285_vm2, %v202_v29 }
  0xef   :  { %313 = vst.msk [vmem:[%s697_s3 + $0xd8] sm:$0xff] %vm285_vm2, %v266_v30  ;;  %295 = vst.msk [vmem:[%s697_s3 + $0x48] sm:$0xff] %vm285_vm2, %v194_v33 }
  0xf0   :  { %311 = vst.msk [vmem:[%s697_s3 + $0xc8] sm:$0xff] %vm285_vm2, %v258_v34 }
  0xf1   :  { %v372_v35 = vpop.f32.mrb[12].mxu0 }
  0xf2   :  { %v388_v36 = vpop.f32.mrb[12].mxu1  ;;  %v215_v37 = vadd.f32 %v372_v35, %v532_v50  ;;  %v206_v39 = vpop.f32.mrb[13].mxu0 }
  0xf3   :  { %v279_v38 = vadd.f32 %v388_v36, %v532_v50  ;;  %v270_v40 = vpop.f32.mrb[13].mxu1  ;;  %v207_v41 = vadd.f32 %v532_v50, %v206_v39  ;;  %v373_v43 = vpop.f32.mrb[14].mxu0 }
  0xf4   :  { %v271_v42 = vadd.f32 %v532_v50, %v270_v40  ;;  %v389_v44 = vpop.f32.mrb[14].mxu1  ;;  %300 = vst.msk [vmem:[%s697_s3 + $0x70] sm:$0xff] %vm285_vm2, %v215_v37  ;;  %v218_v45 = vadd.f32 %v373_v43, %v532_v50  ;;  %v209_v47 = vpop.f32.mrb[15].mxu0 }
  0xf5   :  { %316 = vst.msk [vmem:[%s697_s3 + $0xf0] sm:$0xff] %vm285_vm2, %v279_v38  ;;  %v282_v46 = vadd.f32 %v389_v44, %v532_v50  ;;  %v273_v48 = vpop.f32.mrb[15].mxu1  ;;  %298 = vst.msk [vmem:[%s697_s3 + $0x60] sm:$0xff] %vm285_vm2, %v207_v41  ;;  %v210_v49 = vadd.f32 %v532_v50, %v209_v47 }
  0xf6   :  { %314 = vst.msk [vmem:[%s697_s3 + $0xe0] sm:$0xff] %vm285_vm2, %v271_v42  ;;  %v274_v51 = vadd.f32 %v532_v50, %v273_v48  ;;  %301 = vst.msk [vmem:[%s697_s3 + $0x78] sm:$0xff] %vm285_vm2, %v218_v45 }
  0xf7   :  { %317 = vst.msk [vmem:[%s697_s3 + $0xf8] sm:$0xff] %vm285_vm2, %v282_v46  ;;  %299 = vst.msk [vmem:[%s697_s3 + $0x68] sm:$0xff] %vm285_vm2, %v210_v49 }
  0xf8   :  { %315 = vst.msk [vmem:[%s697_s3 + $0xe8] sm:$0xff] %vm285_vm2, %v274_v51 }

// kernel: phasen_fwd.201
= control target key start
LH: loop header
LB: loop body
LE: loop exit
PB: predicated region body
PF: predicated region fallthrough
CT: control target
= control target key end

     0   :  { %v137_v0 = vmov 0.0   ;;  %vm138_vm0 = vmmov 0   ;;  %vm57_vm1 = vcmask 523264   ;;  %s186_s1 = inlined_call_operand.vmem [shape: bf16[64,64], index: 1, kind: input, shape index: {}]   ;;  %s187_s0 = inlined_call_operand.vmem [shape: f32[16,64], index: 0, kind: input, shape index: {}]   ;;  %s188_s2 = inlined_call_operand.vmem [shape: f32[1,64], index: 2, kind: input, shape index: {}]   ;;  %s189_s3 = inlined_call_operand.vmem [shape: f32[16,64], index: 3, kind: output, shape index: {}]  }
   0x1   :  { %119 = vmatprep.subr.bf16.mxu0 %v137_v0  ;;  %v133_v1 = vld [vmem:[%s186_s1] sm:$0xff]   ;;  %127 = vmatprep.mubr.msk.bf16.mxu0 %vm138_vm0, %v137_v0  ;;  %v134_v2 = vld [vmem:[%s186_s1 + $0x8] sm:$0xff]   ;;  %v135_v3 = vld [vmem:[%s186_s1 + $0x10] sm:$0xff]  }
   0x2   :  { %120 = vmatpush3.bf16.msra.mxu0 %v133_v1  ;;  %v136_v4 = vld [vmem:[%s186_s1 + $0x18] sm:$0xff]   ;;  %v15_v5 = vld [vmem:[%s187_s0] sm:$0xff]  ;;  %v16_v6 = vld [vmem:[%s187_s0 + $0x8] sm:$0xff] }
   0x3   :  { %121 = vmatprep.subr.bf16.mxu0 %v137_v0  ;;  %v17_v7 = vpack.c.bf16 %v16_v6, %v15_v5  ;;  %v108_v8 = vld [vmem:[%s188_s2] ss:$0 sm:$0xff] }
   0x6   :  { %122 = vmatpush3.bf16.msra.mxu0 %v134_v2 }
   0x7   :  { %123 = vmatprep.subr.bf16.mxu0 %v137_v0 }
   0xa   :  { %124 = vmatpush3.bf16.msra.mxu0 %v135_v3 }
   0xb   :  { %125 = vmatprep.subr.bf16.mxu0 %v137_v0 }
   0xe   :  { %126 = vmatpush3.bf16.msra.mxu0 %v136_v4 }
  0x11   :  { %128 = vmatmul.mubr.msk.bf16.vlgmr.msra.gmra.mrb[0].mxu0 %vm57_vm1, %v17_v7 }
  0xe4   :  { %v95_v9 = vpop.f32.mrb[0].mxu0 }
  0xe5   :  { %v96_v10 = vadd.f32 %v108_v8, %v95_v9  ;;  %v129_v11 = vpop.f32.mrb[1].mxu0 }
  0xe6   :  { %v98_v12 = vpop.f32.mrb[2].mxu0 }
  0xe7   :  { %102 = vst.msk [vmem:[%s189_s3] sm:$0xff] %vm57_vm1, %v96_v10  ;;  %v99_v13 = vadd.f32 %v108_v8, %v98_v12  ;;  %v130_v14 = vpop.f32.mrb[3].mxu0 }
  0xe9   :  { %103 = vst.msk [vmem:[%s189_s3 + $0x8] sm:$0xff] %vm57_vm1, %v99_v13 }

// kernel: phasen_fwd.202
= control target key start
LH: loop header
LB: loop body
LE: loop exit
PB: predicated region body
PF: predicated region fallthrough
CT: control target
= control target key end

     0   :  { %vm12_vm0 = vcmask 123904   ;;  %v178_v0 = vmov 0.0   ;;  %s203_s9 = smov 0   ;;  %s228_s0 = inlined_call_operand.vmem [shape: f32[8,2,64], index: 0, kind: input, shape index: {}]   ;;  %s229_s1 = inlined_call_operand.vmem [shape: bf16[16,64], index: 1, kind: input, shape index: {}]   ;;  %s230_s2 = inlined_call_operand.vmem [shape: f32[8,2,16], index: 2, kind: output, shape index: {}]  }
   0x1   :  { %13 = vst.msk [vmem:[#allocation2] sm:$0x3] %vm12_vm0, %v178_v0  ;;  %14 = vst.msk [vmem:[#allocation3] sm:$0x3] %vm12_vm0, %v178_v0 }
   0x2 LB: > { %v161_v1 = vld [vmem:[%s229_s1] sm:$0xff]   ;;  %v179_v2 = vmov 0.0   ;;  %vm180_vm1 = vmmov 0   ;;  %vm34_vm2 = vcmask 130048   ;;  %s133_s12 = sshll.u32 %s176_s9, 1  ;;  %s181_s16 = smov 96   ;;  %s176_s9 = sphi %s203_s9, %s20_s9  }
   0x3   : > { %139 = vmatprep.subr.bf16.mxu0 %v179_v2  ;;  %141 = vmatprep.mubr.msk.bf16.mxu0 %vm180_vm1, %v179_v2  ;;  %s22_s15 = scalar_lea.vmem %s228_s0, %s133_s12  ;;  %s182_s17 = smov 16  }
   0x4   : > { %140 = vmatpush3.bf16.msra.mxu0 %v161_v1  ;;  %v23_v5 = vld [vmem:[%s22_s15] sm:$0x3]  ;;  %s183_s18 = smov 112   ;;  %s184_s19 = smov 32  }
   0x5   : > { %s185_s20 = smov 80   ;;  %s118_s23 = scalar_lea.vmem %s230_s2, %s133_s12 }
   0x6   : > { %s20_s9 = sadd.s32 1, %s176_s9  }
   0x7   : > { %p17_p0 = scmp.ge.s32.totalorder %s20_s9, 8  }
   0x8   : > { %v24_v3 = vld [vmem:[#allocation2] sm:$0x3]  ;;  %v86_v12 = vld [vmem:[#allocation3] sm:$0x3] }
   0x9   : > { %v25_v4 = vpack.c.bf16 %v24_v3, %v24_v3 }
   0xb   : > { %142 = vmatmul.mubr.msk.bf16.vlgmr.msra.gmra.mrb[0].mxu0 %vm34_vm2, %v25_v4 }
  0xde   : > { %v72_v6 = vpop.f32.mrb[0].mxu0 }
  0xdf   : > { %v78_v7 = vadd.f32 %v72_v6, %v23_v5  ;;  %v143_v8 = vpop.f32.mrb[1].mxu0 }
  0xe0   : > { %v75_v9 = vpop.f32.mrb[2].mxu0 }
  0xe1   : > { %162 = vtanh.f32 %v78_v7  ;;  %v144_v10 = vpop.f32.mrb[3].mxu0  ;;  %v136_v13 = vmul.f32 -1.442695, %v78_v7 }
  0xe3   : > { %164 = vpow2.f32 %v136_v13 }
  0xeb   : > { %v163_v11 = vpop.eup %162 }
  0xec   : > { %93 = vrot.lane.b32.xlu0 %v163_v11, %s181_s16 }
  0xed   : > { %v165_v14 = vpop.eup %164 }
  0xee   : > { %v82_v15 = vadd.f32 1.0, %v165_v14 }
  0xf0   : > { %88 = vrot.lane.b32.xlu0 %v86_v12, %s182_s17  ;;  %166 = vrcp.f32 %v82_v15 }
  0xfa   : > { %v167_v16 = vpop.eup %166 }
 0x15e   : > { %v94_v17 = vpop.permute.xlu0 %93 }
 0x15f   : > { %v96_v18 = vmul.f32 %v167_v16, %v94_v17 }
 0x161   : > { %98 = vrot.lane.b32.xlu1 %v96_v18, %s182_s17 }
 0x162   : > { %v89_v19 = vpop.permute.xlu0 %88 }
 0x163   : > { %v91_v20 = vmul.f32 %v167_v16, %v89_v19 }
 0x1d3   : > { %v99_v21 = vpop.permute.xlu1 %98 }
 0x1d4   : > { %v101_v22 = vadd.f32 %v99_v21, %v91_v20 }
 0x1d6   : > { %168 = vtanh.f32 %v101_v22  ;;  %109 = vrot.lane.b32.xlu0 %v101_v22, %s183_s18 }
 0x1e0   : > { %v169_v23 = vpop.eup %168 }
 0x1e1   : > { %104 = vrot.lane.b32.xlu1 %v169_v23, %s184_s19 }
 0x248   : > { %v110_v24 = vpop.permute.xlu0 %109 }
 0x249   : > { %112 = vst.msk [vmem:[#allocation3] sm:$0x3] %vm12_vm0, %v110_v24 }
 0x253   : > { %v105_v25 = vpop.permute.xlu1 %104 }
 0x254   : > { %v107_v26 = vmul.f32 %v167_v16, %v105_v25 }
 0x256   : > { %114 = vrot.lane.b32.xlu1 %v107_v26, %s185_s20 }
 0x2c3   :  { %19 = sbr.rel (!%p17_p0) target bundleno = 2 (0x2), region = 37 }
 0x2c8   : > { %v115_v27 = vpop.permute.xlu1 %114 }
 0x2c9   : > { %117 = vst.msk [vmem:[#allocation2] sm:$0x3] %vm12_vm0, %v115_v27  ;;  %119 = vst.msk [vmem:[%s118_s23] sm:$0x3] %vm12_vm0, %v115_v27 }

// kernel: phasen_fwd.203
= control target key start
LH: loop header
LB: loop body
LE: loop exit
PB: predicated region body
PF: predicated region fallthrough
CT: control target
= control target key end

     0   :  { %v114_v0 = vmov 0.0   ;;  %vm115_vm0 = vmmov 0   ;;  %vm41_vm1 = vcmask 261120   ;;  %vm88_vm2 = vcmask 130048   ;;  %s157_s1 = inlined_call_operand.vmem [shape: bf16[32,16], index: 1, kind: input, shape index: {}]   ;;  %s158_s0 = inlined_call_operand.vmem [shape: f32[16,32], index: 0, kind: input, shape index: {}]   ;;  %s159_s2 = inlined_call_operand.vmem [shape: f32[1,16], index: 2, kind: input, shape index: {}]   ;;  %s160_s3 = inlined_call_operand.vmem [shape: f32[16,16], index: 3, kind: output, shape index: {}]  }
   0x1   :  { %102 = vmatprep.subr.bf16.mxu0 %v114_v0  ;;  %v112_v1 = vld [vmem:[%s157_s1] sm:$0xff]   ;;  %106 = vmatprep.mubr.msk.bf16.mxu0 %vm115_vm0, %v114_v0  ;;  %v113_v2 = vld [vmem:[%s157_s1 + $0x8] sm:$0xff]  }
   0x2   :  { %103 = vmatpush3.bf16.msra.mxu0 %v112_v1  ;;  %v15_v3 = vld [vmem:[%s158_s0] sm:$0xff]  ;;  %v16_v4 = vld [vmem:[%s158_s0 + $0x8] sm:$0xff] }
   0x3   :  { %104 = vmatprep.subr.bf16.mxu0 %v114_v0  ;;  %v17_v5 = vpack.c.bf16 %v16_v4, %v15_v3  ;;  %v95_v6 = vld [vmem:[%s159_s2] ss:$0 sm:$0xff] }
   0x6   :  { %105 = vmatpush3.bf16.msra.mxu0 %v113_v2 }
   0x9   :  { %107 = vmatmul.mubr.msk.bf16.vlgmr.msra.gmra.mrb[0].mxu0 %vm41_vm1, %v17_v5 }
  0xdc   :  { %v79_v7 = vpop.f32.mrb[0].mxu0 }
  0xdd   :  { %v80_v8 = vadd.f32 %v95_v6, %v79_v7  ;;  %v108_v9 = vpop.f32.mrb[1].mxu0 }
  0xde   :  { %v82_v10 = vpop.f32.mrb[2].mxu0 }
  0xdf   :  { %v86_v11 = vmax.f32 %v80_v8, 0.0  ;;  %v83_v12 = vadd.f32 %v95_v6, %v82_v10  ;;  %v109_v13 = vpop.f32.mrb[3].mxu0 }
  0xe1   :  { %89 = vst.msk [vmem:[%s160_s3] sm:$0xff] %vm88_vm2, %v86_v11  ;;  %v87_v14 = vmax.f32 %v83_v12, 0.0 }
  0xe3   :  { %90 = vst.msk [vmem:[%s160_s3 + $0x8] sm:$0xff] %vm88_vm2, %v87_v14 }

// kernel: phasen_fwd.204
= control target key start
LH: loop header
LB: loop body
LE: loop exit
PB: predicated region body
PF: predicated region fallthrough
CT: control target
= control target key end

     0   :  { %v100_v0 = vmov 0.0   ;;  %vm101_vm0 = vmmov 0   ;;  %vm33_vm1 = vcmask 130048   ;;  %s140_s1 = inlined_call_operand.vmem [shape: bf16[16,16], index: 1, kind: input, shape index: {}]   ;;  %s141_s0 = inlined_call_operand.vmem [shape: f32[16,16], index: 0, kind: input, shape index: {}]   ;;  %s142_s2 = inlined_call_operand.vmem [shape: f32[1,16], index: 2, kind: input, shape index: {}]   ;;  %s143_s3 = inlined_call_operand.vmem [shape: f32[16,16], index: 3, kind: output, shape index: {}]  }
   0x1   :  { %91 = vmatprep.subr.bf16.mxu0 %v100_v0  ;;  %v99_v1 = vld [vmem:[%s140_s1] sm:$0xff]   ;;  %93 = vmatprep.mubr.msk.bf16.mxu0 %vm101_vm0, %v100_v0  ;;  %v16_v3 = vld [vmem:[%s141_s0 + $0x8] sm:$0xff] }
   0x2   :  { %v15_v2 = vld [vmem:[%s141_s0] sm:$0xff]  ;;  %92 = vmatpush3.bf16.msra.mxu0 %v99_v1 }
   0x3   :  { %v17_v4 = vpack.c.bf16 %v16_v3, %v15_v2  ;;  %v86_v5 = vld [vmem:[%s142_s2] ss:$0 sm:$0xff] }
   0x5   :  { %94 = vmatmul.mubr.msk.bf16.vlgmr.msra.gmra.mrb[0].mxu0 %vm33_vm1, %v17_v4 }
  0xd8   :  { %v71_v6 = vpop.f32.mrb[0].mxu0 }
  0xd9   :  { %v72_v7 = vadd.f32 %v86_v5, %v71_v6  ;;  %v95_v8 = vpop.f32.mrb[1].mxu0 }
  0xda   :  { %v74_v9 = vpop.f32.mrb[2].mxu0 }
  0xdb   :  { %v78_v10 = vmax.f32 %v72_v7, 0.0  ;;  %v75_v11 = vadd.f32 %v86_v5, %v74_v9  ;;  %v96_v12 = vpop.f32.mrb[3].mxu0 }
  0xdd   :  { %80 = vst.msk [vmem:[%s143_s3] sm:$0xff] %vm33_vm1, %v78_v10  ;;  %v79_v13 = vmax.f32 %v75_v11, 0.0 }
  0xdf   :  { %81 = vst.msk [vmem:[%s143_s3 + $0x8] sm:$0xff] %vm33_vm1, %v79_v13 }

// kernel: phasen_fwd.205
= control target key start
LH: loop header
LB: loop body
LE: loop exit
PB: predicated region body
PF: predicated region fallthrough
CT: control target
= control target key end

     0   :  { %v121_v0 = vmov 0.0   ;;  %vm122_vm0 = vmmov 0   ;;  %vm33_vm1 = vcmask 130048   ;;  %vm90_vm2 = vcmask 261120   ;;  %s161_s1 = inlined_call_operand.vmem [shape: bf16[16,32], index: 1, kind: input, shape index: {}]   ;;  %s162_s0 = inlined_call_operand.vmem [shape: f32[16,16], index: 0, kind: input, shape index: {}]   ;;  %s163_s2 = inlined_call_operand.vmem [shape: f32[1,32], index: 2, kind: input, shape index: {}]   ;;  %s164_s3 = inlined_call_operand.vmem [shape: f32[16,32], index: 3, kind: output, shape index: {}]  }
   0x1   :  { %104 = vmatprep.subr.bf16.mxu0 %v121_v0  ;;  %v112_v1 = vld [vmem:[%s161_s1] sm:$0xff]   ;;  %106 = vmatprep.mubr.msk.bf16.mxu0 %vm122_vm0, %v121_v0  ;;  %v16_v3 = vld [vmem:[%s162_s0 + $0x8] sm:$0xff] }
   0x2   :  { %v15_v2 = vld [vmem:[%s162_s0] sm:$0xff]  ;;  %105 = vmatpush3.bf16.msra.mxu0 %v112_v1 }
   0x3   :  { %v17_v4 = vpack.c.bf16 %v16_v3, %v15_v2  ;;  %v97_v5 = vld [vmem:[%s163_s2] ss:$0 sm:$0xff] }
   0x5   :  { %107 = vmatmul.mubr.msk.bf16.vlgmr.msra.gmra.mrb[0].mxu0 %vm33_vm1, %v17_v4 }
  0xd8   :  { %v71_v6 = vpop.f32.mrb[0].mxu0 }
  0xd9   :  { %v72_v7 = vadd.f32 %v97_v5, %v71_v6  ;;  %v108_v8 = vpop.f32.mrb[1].mxu0 }
  0xda   :  { %v74_v9 = vpop.f32.mrb[2].mxu0 }
  0xdb   :  { %v100_v10 = vmul.f32 -1.442695, %v72_v7  ;;  %v75_v11 = vadd.f32 %v97_v5, %v74_v9  ;;  %v109_v12 = vpop.f32.mrb[3].mxu0 }
  0xdd   :  { %113 = vpow2.f32 %v100_v10  ;;  %v101_v13 = vmul.f32 -1.442695, %v75_v11 }
  0xdf   :  { %115 = vpow2.f32 %v101_v13 }
  0xe7   :  { %v114_v14 = vpop.eup %113 }
  0xe8   :  { %v84_v15 = vadd.f32 1.0, %v114_v14 }
  0xe9   :  { %v116_v16 = vpop.eup %115 }
  0xea   :  { %117 = vrcp.f32 %v84_v15  ;;  %v85_v17 = vadd.f32 1.0, %v116_v16 }
  0xec   :  { %119 = vrcp.f32 %v85_v17 }
  0xf4   :  { %v118_v18 = vpop.eup %117 }
  0xf5   :  { %91 = vst.msk [vmem:[%s164_s3] sm:$0xff] %vm90_vm2, %v118_v18 }
  0xf6   :  { %v120_v19 = vpop.eup %119 }
  0xf7   :  { %92 = vst.msk [vmem:[%s164_s3 + $0x8] sm:$0xff] %vm90_vm2, %v120_v19 }

</bundles_post_ra>
